<compile_context>
chip_gen: v6e
topology: v6e:2x2x1
jax: 0.10.0
libtpu: 0.0.40
codegen_flags: <defaults>
</compile_context>

<pallas_src>
import functools

import jax
import jax.numpy as jnp
from jax import lax
from jax.experimental import pallas as pl
from jax.experimental.pallas import tpu as pltpu


# --------------------------------------------------------------------------
# Fused kernel: all hidden convs + final conv + bilinear upsample, one image /
# grid step, activations never leave VMEM.
# --------------------------------------------------------------------------
def _fused_head_kernel(x_ref, w_hid_ref, b_hid_ref, wf_ref, bf_ref,
                       wh_ref, wwT_ref, logit_ref, up_ref,
                       xpad_ref, slab_ref):
    # x_ref    : (1, H, W, C)        one batch item, NHWC
    # w_hid_ref: (L, 3, 3C, C)       BN-folded hidden conv weights (slab layout)
    # b_hid_ref: (L, C)              BN-folded biases (f32)
    # wf_ref   : (3, 3C)             final conv weights (single output channel)
    # bf_ref   : (1,)                final conv bias, SMEM scalar (f32)
    # wh_ref   : (Ho, H)             row interpolation matrix (f32)
    # wwT_ref  : (W, Wo)             column interpolation matrix, transposed (f32)
    # logit_ref: (1, H, W)           lane-dense 1-channel logits
    # up_ref   : (1, Ho, Wo)         lane-dense upsampled logits
    # xpad_ref : (H, W+2, C)         W-padded scratch (builds the dx shifts once)
    # slab_ref : (H+2, W, 3C)        dx-expanded, H-padded conv input
    _, H, W, C = x_ref.shape
    L = w_hid_ref.shape[0]
    C3 = 3 * C
    f32 = jnp.float32
    cdt = slab_ref.dtype

    # Zero only the never-written borders, once per grid step (cheap; safe under
    # megacore sharding of the "parallel" batch axis).
    xpad_ref[:, 0:1, :] = jnp.zeros((H, 1, C), cdt)
    xpad_ref[:, W + 1:W + 2, :] = jnp.zeros((H, 1, C), cdt)
    slab_ref[0:1, :, :] = jnp.zeros((1, W, C3), cdt)
    slab_ref[H + 1:H + 2, :, :] = jnp.zeros((1, W, C3), cdt)

    def to_slab(a):
        # a: (H, W, C).  Build the dx-expanded, H-padded conv input:
        #   slab[1+h, w, kx*C + c] = a[h, w + kx - 1, c]   (zero out of bounds)
        xpad_ref[:, 1:W + 1, :] = a                 # single sublane-offset store
        a_left = xpad_ref[:, 0:W, :]                # a[h, w-1]   (kx = 0)
        a_right = xpad_ref[:, 2:W + 2, :]           # a[h, w+1]   (kx = 2)
        slab_ref[1:H + 1, :, :] = jnp.concatenate([a_left, a, a_right], axis=-1)

    to_slab(x_ref[0].astype(cdt))

    # Hidden Conv3x3 + folded-BN bias + ReLU layers:
    # 3 MXU matmuls (K = 3C) per layer, f32 accumulation + f32 epilogue.
    for l in range(L):
        acc = jnp.zeros((H * W, C), f32)
        for ky in range(3):
            lhs = slab_ref[ky:ky + H].reshape(H * W, C3)   # major-axis offset view
            acc = acc + jnp.dot(lhs, w_hid_ref[l, ky],
                                preferred_element_type=f32)
        a = jnp.maximum(acc + b_hid_ref[l].astype(f32), 0.0)
        to_slab(a.reshape(H, W, C).astype(cdt))

    # Final Conv3x3(C -> 1): VPU multiply + lane reduction over the 3C-wide slab
    # rows (MXU would produce an (H*W, 1) column needing a costly relayout).
    logits = jnp.zeros((H, W), f32)
    for ky in range(3):
        sl = slab_ref[ky:ky + H].astype(f32)               # (H, W, 3C)
        logits = logits + jnp.sum(sl * wf_ref[ky].astype(f32), axis=-1)
    logits = logits + bf_ref[0]
    logit_ref[...] = logits[None].astype(logit_ref.dtype)

    # Separable bilinear upsample (align_corners=True):  Wh @ logits @ Ww^T (f32).
    tmp = jnp.dot(wh_ref[...], logits, preferred_element_type=f32)
    up = jnp.dot(tmp, wwT_ref[...], preferred_element_type=f32)
    up_ref[...] = up[None].astype(up_ref.dtype)


# --------------------------------------------------------------------------
# Trace-time helpers (BN folding, weight relayout, interpolation matrices)
# --------------------------------------------------------------------------
def _fold_bn(w, b, gamma, beta, mean, var, eps):
    """Fold eval-mode BN into the preceding conv. w: (Cout,Cin,3,3), b: (Cout,)."""
    scale = gamma / jnp.sqrt(var + eps)
    w_f = w * scale[:, None, None, None]
    b_f = (b - mean) * scale + beta
    return w_f, b_f


def _w_to_slab(w):
    """(Cout, Cin, 3, 3) -> (3, 3*Cin, Cout): slab[ky][kx*Cin+cin, cout]."""
    cout, cin = w.shape[0], w.shape[1]
    return jnp.transpose(w, (2, 3, 1, 0)).reshape(3, 3 * cin, cout)


def _bilinear_matrix(in_size, out_size):
    """Interpolation matrix (out_size, in_size), align_corners=True semantics
    (matches torch.nn.UpsamplingBilinear2d).  Always f32."""
    if in_size == 1:
        return jnp.ones((out_size, 1), jnp.float32)
    src = jnp.arange(out_size, dtype=jnp.float32) * (
        (in_size - 1) / max(out_size - 1, 1))
    i0 = jnp.clip(jnp.floor(src).astype(jnp.int32), 0, in_size - 2)
    frac = src - i0.astype(jnp.float32)
    rows = jnp.arange(out_size)
    m = jnp.zeros((out_size, in_size), jnp.float32)
    m = m.at[rows, i0].add(1.0 - frac)
    m = m.at[rows, i0 + 1].add(frac)
    return m


# --------------------------------------------------------------------------
# Full forward (matches ChangeDetectionHead.forward, fusion='diff', eval BN)
# --------------------------------------------------------------------------
def change_detection_head_forward(x_nchw, params, *, upsampling=4,
                                  with_tcl=True, compute_dtype=None):
    """x_nchw: (N, C, H, W).
    params = {'hidden': [{w,b,gamma,beta,mean,var,eps}, ...], 'cls': {w,b}}.
    compute_dtype: e.g. jnp.bfloat16 on v6e/v7x (f32 accumulation kept).
    Returns (logits, upsampled) if with_tcl else (0, upsampled), NCHW outputs."""
    N, C, H, W = x_nchw.shape
    hidden = params['hidden']
    L = len(hidden)
    if L == 0:
        # TODO(synk): num_convs == 0 (head is just the cls conv) not implemented.
        raise NotImplementedError("num_convs == 0 is not supported")

    cdt = jnp.dtype(compute_dtype) if compute_dtype is not None else x_nchw.dtype
    out_dtype = x_nchw.dtype

    # Single boundary transpose to NHWC (channels on the lane axis).
    x = jnp.transpose(x_nchw, (0, 2, 3, 1)).astype(cdt)

    # Fold eval-mode BN into conv weights/bias; relayout for the 3-matmul slab
    # formulation.  (fusion='diff' => every hidden conv is C -> C.)
    w_stack, b_stack = [], []
    for layer in hidden:
        w_f, b_f = _fold_bn(layer['w'], layer['b'], layer['gamma'],
                            layer['beta'], layer['mean'], layer['var'],
                            layer['eps'])
        w_stack.append(_w_to_slab(w_f))
        b_stack.append(b_f)
    w_hid = jnp.stack(w_stack).astype(cdt)             # (L, 3, 3C, C)
    b_hid = jnp.stack(b_stack).astype(jnp.float32)     # (L, C)   f32 epilogue

    wf = _w_to_slab(params['cls']['w'])[:, :, 0].astype(jnp.float32)   # (3, 3C)
    bf = params['cls']['b'].reshape(1).astype(jnp.float32)             # (1,)

    scale = upsampling if upsampling > 1 else 1
    Ho, Wo = H * scale, W * scale
    wh = _bilinear_matrix(H, Ho)          # (Ho, H)  f32 always
    wwT = _bilinear_matrix(W, Wo).T       # (W, Wo)  f32 always

    # Explicit scoped-VMEM budget: double-buffered blocks + scratch + headroom.
    isz = jnp.dtype(cdt).itemsize
    osz = jnp.dtype(out_dtype).itemsize
    need = (2 * H * W * C * isz                           # input block (x2 buffers)
            + 2 * (H * W + Ho * Wo) * osz                 # output blocks
            + 2 * (w_hid.size * isz + b_hid.size * 4 + wf.size * 4
                   + wh.size * 4 + wwT.size * 4)          # resident operands
            + ((H + 2) * W * 3 * C + H * (W + 2) * C) * isz)   # scratch
    vmem_limit = int(min(max(2 * need, 32 << 20), 128 << 20))

    logits_nhw, up_nhw = pl.pallas_call(
        _fused_head_kernel,
        out_shape=(jax.ShapeDtypeStruct((N, H, W), out_dtype),
                   jax.ShapeDtypeStruct((N, Ho, Wo), out_dtype)),
        grid=(N,),
        in_specs=[
            pl.BlockSpec((1, H, W, C), lambda n: (n, 0, 0, 0)),
            # Constant index_maps: weights / interp matrices stay resident in VMEM.
            pl.BlockSpec((L, 3, 3 * C, C), lambda n: (0, 0, 0, 0)),
            pl.BlockSpec((L, C), lambda n: (0, 0)),
            pl.BlockSpec((3, 3 * C), lambda n: (0, 0)),
            pl.BlockSpec(memory_space=pltpu.MemorySpace.SMEM),
            pl.BlockSpec((Ho, H), lambda n: (0, 0)),
            pl.BlockSpec((W, Wo), lambda n: (0, 0)),
        ],
        out_specs=(pl.BlockSpec((1, H, W), lambda n: (n, 0, 0)),
                   pl.BlockSpec((1, Ho, Wo), lambda n: (n, 0, 0))),
        scratch_shapes=[pltpu.VMEM((H, W + 2, C), cdt),        # xpad
                        pltpu.VMEM((H + 2, W, 3 * C), cdt)],   # slab
        compiler_params=pltpu.CompilerParams(
            dimension_semantics=("parallel",),
            vmem_limit_bytes=vmem_limit),
    )(x, w_hid, b_hid, wf, bf, wh, wwT)

    logits = logits_nhw[:, None, :, :]            # (N,1,H,W)   C==1, no data move
    up = up_nhw[:, None, :, :]                    # (N,1,Ho,Wo)
    if with_tcl:
        return logits, up
    return jnp.array(0), up                       # mirrors torch.tensor(0)


# --------------------------------------------------------------------------
# Pure-JAX reference (unfolded conv + explicit BN) for correctness checking
# --------------------------------------------------------------------------
def _reference_forward(x, params, upsampling):
    for layer in params['hidden']:
        x = lax.conv_general_dilated(
            x, layer['w'], (1, 1), ((1, 1), (1, 1)),
            dimension_numbers=('NCHW', 'OIHW', 'NCHW'))
        x = x + layer['b'][None, :, None, None]
        inv = 1.0 / jnp.sqrt(layer['var'] + layer['eps'])
        x = ((x - layer['mean'][None, :, None, None])
             * (layer['gamma'] * inv)[None, :, None, None]
             + layer['beta'][None, :, None, None])
        x = jnp.maximum(x, 0.0)
    x = lax.conv_general_dilated(
        x, params['cls']['w'], (1, 1), ((1, 1), (1, 1)),
        dimension_numbers=('NCHW', 'OIHW', 'NCHW'))
    x = x + params['cls']['b'][None, :, None, None]
    H, W = x.shape[2], x.shape[3]
    wh = _bilinear_matrix(H, H * upsampling)
    ww = _bilinear_matrix(W, W * upsampling)
    up = jnp.einsum('ph,nchw,qw->ncpq', wh, x, ww)
    return x, up


# --------------------------------------------------------------------------
if __name__ == "__main__":
    key = jax.random.PRNGKey(0)
    N, C, H, W = 2, 4, 16, 16          # small demo shapes (fusion='diff' -> inner=C)
    num_convs = 2
    upsampling = 4

    ks = iter(jax.random.split(key, 4 + 6 * num_convs))
    x = jax.random.normal(next(ks), (N, C, H, W), jnp.float32)

    hidden = []
    for _ in range(num_convs):
        hidden.append(dict(
            w=0.3 * jax.random.normal(next(ks), (C, C, 3, 3), jnp.float32),
            b=0.1 * jax.random.normal(next(ks), (C,), jnp.float32),
            gamma=1.0 + 0.1 * jax.random.normal(next(ks), (C,), jnp.float32),
            beta=0.1 * jax.random.normal(next(ks), (C,), jnp.float32),
            mean=0.1 * jax.random.normal(next(ks), (C,), jnp.float32),
            var=jnp.abs(jax.random.normal(next(ks), (C,), jnp.float32)) + 0.5,
            eps=jnp.float32(1e-5),
        ))
    cls = dict(w=0.3 * jax.random.normal(next(ks), (1, C, 3, 3), jnp.float32),
               b=0.1 * jax.random.normal(next(ks), (1,), jnp.float32))
    params = dict(hidden=hidden, cls=cls)

    fwd = jax.jit(functools.partial(change_detection_head_forward,
                                    upsampling=upsampling, with_tcl=True))
    logits, up = fwd(x, params)
    jax.block_until_ready((logits, up))

    # with_tcl=False contract: (0, upsampled)
    zero, up2 = change_detection_head_forward(x, params, upsampling=upsampling,
                                              with_tcl=False)
    jax.block_until_ready(up2)

    assert logits.shape == (N, 1, H, W)
    assert up.shape == (N, 1, H * upsampling, W * upsampling)
    assert up2.shape == up.shape and int(zero) == 0

    ref_logits, ref_up = _reference_forward(x, params, upsampling)

    def _check(name, a, b, tol=2e-3):
        err = float(jnp.max(jnp.abs(a - b)))
        if not err < tol:
            raise AssertionError(f"{name} mismatch: max abs err = {err}")

    _check("logits", logits, ref_logits)
    _check("upsampled", up, ref_up)
    _check("upsampled (with_tcl=False)", up2, ref_up)

    print("KERNEL_OK")
</pallas_src>

<mosaic_0001>
module attributes {stable_mosaic.version = 11 : i64} {
  func.func private @main(%arg0: i32) attributes {dimension_semantics = [#tpu.dimension_semantics<core_parallel>], iteration_bounds = array<i64: 2>, tpu.core_type = #tpu.core_type<sc_scalar_subcore>, window_params = []} {
    return
  }
}

module attributes {stable_mosaic.version = 11 : i64} {
  func.func private @main(%arg0: i32) attributes {dimension_semantics = [#tpu.dimension_semantics<core_parallel>], iteration_bounds = array<i64: 2>, tpu.core_type = #tpu.core_type<sc_scalar_subcore>, window_params = []} {
    return
  }
}

module attributes {stable_mosaic.version = 11 : i64} {
  func.func @_fused_head_kernel(%arg0: i32, %arg1: memref<1x16x16x4xf32, #tpu.memory_space<vmem>>, %arg2: memref<2x3x12x4xf32, #tpu.memory_space<vmem>>, %arg3: memref<2x4xf32, #tpu.memory_space<vmem>>, %arg4: memref<3x12xf32, #tpu.memory_space<vmem>>, %arg5: memref<1xf32, #tpu.memory_space<smem>>, %arg6: memref<64x16xf32, #tpu.memory_space<vmem>>, %arg7: memref<16x64xf32, #tpu.memory_space<vmem>>, %arg8: memref<1x16x16xf32, #tpu.memory_space<vmem>>, %arg9: memref<1x64x64xf32, #tpu.memory_space<vmem>>, %arg10: memref<16x18x4xf32, #tpu.memory_space<vmem>>, %arg11: memref<18x16x12xf32, #tpu.memory_space<vmem>>) attributes {dimension_semantics = [#tpu.dimension_semantics<parallel>], iteration_bounds = array<i64: 2>, scalar_prefetch = 0 : i64, scratch_operands = 2 : i64, tpu.core_type = #tpu.core_type<tc>, window_params = [{transform_indices = @transform_0, window_bounds = array<i64: 1, 16, 16, 4>}, {pipeline_mode = #tpu.pipeline_mode<synchronous>, transform_indices = @transform_1, window_bounds = array<i64: 2, 3, 12, 4>}, {pipeline_mode = #tpu.pipeline_mode<synchronous>, transform_indices = @transform_2, window_bounds = array<i64: 2, 4>}, {pipeline_mode = #tpu.pipeline_mode<synchronous>, transform_indices = @transform_3, window_bounds = array<i64: 3, 12>}, {transform_indices = @transform_4, window_bounds = array<i64: 1>}, {pipeline_mode = #tpu.pipeline_mode<synchronous>, transform_indices = @transform_5, window_bounds = array<i64: 64, 16>}, {pipeline_mode = #tpu.pipeline_mode<synchronous>, transform_indices = @transform_6, window_bounds = array<i64: 16, 64>}, {transform_indices = @transform_7, window_bounds = array<i64: 1, 16, 16>}, {transform_indices = @transform_8, window_bounds = array<i64: 1, 64, 64>}]} {
    %cst = arith.constant 0.000000e+00 : f32
    %0 = vector.broadcast %cst : f32 to vector<16x1x4xf32>
    %c0 = arith.constant 0 : index
    %c0_0 = arith.constant 0 : index
    %c0_1 = arith.constant 0 : index
    %1 = vector.load %arg10[%c0, %c0_0, %c0_1] : memref<16x18x4xf32, #tpu.memory_space<vmem>>, vector<16x1x4xf32>
    tpu.vector_store %arg10[%c0, %c0_0, %c0_1], %0 {strides = array<i32>} : memref<16x18x4xf32, #tpu.memory_space<vmem>>, vector<16x1x4xf32>,
    %cst_2 = arith.constant 0.000000e+00 : f32
    %2 = vector.broadcast %cst_2 : f32 to vector<16x1x4xf32>
    %c0_3 = arith.constant 0 : index
    %c17 = arith.constant 17 : index
    %c0_4 = arith.constant 0 : index
    %3 = vector.load %arg10[%c0_3, %c17, %c0_4] : memref<16x18x4xf32, #tpu.memory_space<vmem>>, vector<16x1x4xf32>
    tpu.vector_store %arg10[%c0_3, %c17, %c0_4], %2 {strides = array<i32>} : memref<16x18x4xf32, #tpu.memory_space<vmem>>, vector<16x1x4xf32>,
    %cst_5 = arith.constant 0.000000e+00 : f32
    %4 = vector.broadcast %cst_5 : f32 to vector<1x16x12xf32>
    %c0_6 = arith.constant 0 : index
    %c0_7 = arith.constant 0 : index
    %c0_8 = arith.constant 0 : index
    %5 = vector.load %arg11[%c0_6, %c0_7, %c0_8] : memref<18x16x12xf32, #tpu.memory_space<vmem>>, vector<1x16x12xf32>
    tpu.vector_store %arg11[%c0_6, %c0_7, %c0_8], %4 {strides = array<i32>} : memref<18x16x12xf32, #tpu.memory_space<vmem>>, vector<1x16x12xf32>,
    %cst_9 = arith.constant 0.000000e+00 : f32
    %6 = vector.broadcast %cst_9 : f32 to vector<1x16x12xf32>
    %c17_10 = arith.constant 17 : index
    %c0_11 = arith.constant 0 : index
    %c0_12 = arith.constant 0 : index
    %7 = vector.load %arg11[%c17_10, %c0_11, %c0_12] : memref<18x16x12xf32, #tpu.memory_space<vmem>>, vector<1x16x12xf32>
    tpu.vector_store %arg11[%c17_10, %c0_11, %c0_12], %6 {strides = array<i32>} : memref<18x16x12xf32, #tpu.memory_space<vmem>>, vector<1x16x12xf32>,
    %c0_13 = arith.constant 0 : index
    %c0_14 = arith.constant 0 : index
    %c0_15 = arith.constant 0 : index
    %c0_16 = arith.constant 0 : index
    %8 = vector.load %arg1[%c0_13, %c0_14, %c0_15, %c0_16] : memref<1x16x16x4xf32, #tpu.memory_space<vmem>>, vector<1x16x16x4xf32>
    %9 = vector.shape_cast %8 : vector<1x16x16x4xf32> to vector<16x16x4xf32>
    %c0_17 = arith.constant 0 : index
    %c1 = arith.constant 1 : index
    %c0_18 = arith.constant 0 : index
    %10 = vector.load %arg10[%c0_17, %c1, %c0_18] : memref<16x18x4xf32, #tpu.memory_space<vmem>>, vector<16x16x4xf32>
    tpu.vector_store %arg10[%c0_17, %c1, %c0_18], %9 {strides = array<i32>} : memref<16x18x4xf32, #tpu.memory_space<vmem>>, vector<16x16x4xf32>,
    %c0_19 = arith.constant 0 : index
    %c0_20 = arith.constant 0 : index
    %c0_21 = arith.constant 0 : index
    %11 = vector.load %arg10[%c0_19, %c0_20, %c0_21] : memref<16x18x4xf32, #tpu.memory_space<vmem>>, vector<16x16x4xf32>
    %c0_22 = arith.constant 0 : index
    %c2 = arith.constant 2 : index
    %c0_23 = arith.constant 0 : index
    %12 = vector.load %arg10[%c0_22, %c2, %c0_23] : memref<16x18x4xf32, #tpu.memory_space<vmem>>, vector<16x16x4xf32>
    %13 = tpu.concatenate %11, %9, %12 in 2 : vector<16x16x4xf32>, vector<16x16x4xf32>, vector<16x16x4xf32> -> vector<16x16x12xf32>
    %c1_24 = arith.constant 1 : index
    %c0_25 = arith.constant 0 : index
    %c0_26 = arith.constant 0 : index
    %14 = vector.load %arg11[%c1_24, %c0_25, %c0_26] : memref<18x16x12xf32, #tpu.memory_space<vmem>>, vector<16x16x12xf32>
    tpu.vector_store %arg11[%c1_24, %c0_25, %c0_26], %13 {strides = array<i32>} : memref<18x16x12xf32, #tpu.memory_space<vmem>>, vector<16x16x12xf32>,
    %cst_27 = arith.constant 0.000000e+00 : f32
    %15 = vector.broadcast %cst_27 : f32 to vector<256x4xf32>
    %c0_28 = arith.constant 0 : index
    %c0_29 = arith.constant 0 : index
    %c0_30 = arith.constant 0 : index
    %16 = vector.load %arg11[%c0_28, %c0_29, %c0_30] : memref<18x16x12xf32, #tpu.memory_space<vmem>>, vector<16x16x12xf32>
    %17 = vector.shape_cast %16 : vector<16x16x12xf32> to vector<256x12xf32>
    %c0_31 = arith.constant 0 : index
    %c0_32 = arith.constant 0 : index
    %c0_33 = arith.constant 0 : index
    %c0_34 = arith.constant 0 : index
    %18 = vector.load %arg2[%c0_31, %c0_32, %c0_33, %c0_34] : memref<2x3x12x4xf32, #tpu.memory_space<vmem>>, vector<1x1x12x4xf32>
    %19 = vector.shape_cast %18 : vector<1x1x12x4xf32> to vector<12x4xf32>
    %cst_35 = arith.constant dense<0.000000e+00> : vector<256x4xf32>
    %20 = tpu.matmul %17, %19, %cst_35 {dimension_numbers = #tpu.dot_dimension_numbers<[1], [0], [0], [1], [0, 0, 1, 1], [], []>} : vector<256x12xf32>, vector<12x4xf32>, vector<256x4xf32> -> vector<256x4xf32>
    %21 = arith.addf %15, %20 : vector<256x4xf32>
    %c1_36 = arith.constant 1 : index
    %c0_37 = arith.constant 0 : index
    %c0_38 = arith.constant 0 : index
    %22 = vector.load %arg11[%c1_36, %c0_37, %c0_38] : memref<18x16x12xf32, #tpu.memory_space<vmem>>, vector<16x16x12xf32>
    %23 = vector.shape_cast %22 : vector<16x16x12xf32> to vector<256x12xf32>
    %c0_39 = arith.constant 0 : index
    %c1_40 = arith.constant 1 : index
    %c0_41 = arith.constant 0 : index
    %c0_42 = arith.constant 0 : index
    %24 = vector.load %arg2[%c0_39, %c1_40, %c0_41, %c0_42] : memref<2x3x12x4xf32, #tpu.memory_space<vmem>>, vector<1x1x12x4xf32>
    %25 = vector.shape_cast %24 : vector<1x1x12x4xf32> to vector<12x4xf32>
    %cst_43 = arith.constant dense<0.000000e+00> : vector<256x4xf32>
    %26 = tpu.matmul %23, %25, %cst_43 {dimension_numbers = #tpu.dot_dimension_numbers<[1], [0], [0], [1], [0, 0, 1, 1], [], []>} : vector<256x12xf32>, vector<12x4xf32>, vector<256x4xf32> -> vector<256x4xf32>
    %27 = arith.addf %21, %26 : vector<256x4xf32>
    %c2_44 = arith.constant 2 : index
    %c0_45 = arith.constant 0 : index
    %c0_46 = arith.constant 0 : index
    %28 = vector.load %arg11[%c2_44, %c0_45, %c0_46] : memref<18x16x12xf32, #tpu.memory_space<vmem>>, vector<16x16x12xf32>
    %29 = vector.shape_cast %28 : vector<16x16x12xf32> to vector<256x12xf32>
    %c0_47 = arith.constant 0 : index
    %c2_48 = arith.constant 2 : index
    %c0_49 = arith.constant 0 : index
    %c0_50 = arith.constant 0 : index
    %30 = vector.load %arg2[%c0_47, %c2_48, %c0_49, %c0_50] : memref<2x3x12x4xf32, #tpu.memory_space<vmem>>, vector<1x1x12x4xf32>
    %31 = vector.shape_cast %30 : vector<1x1x12x4xf32> to vector<12x4xf32>
    %cst_51 = arith.constant dense<0.000000e+00> : vector<256x4xf32>
    %32 = tpu.matmul %29, %31, %cst_51 {dimension_numbers = #tpu.dot_dimension_numbers<[1], [0], [0], [1], [0, 0, 1, 1], [], []>} : vector<256x12xf32>, vector<12x4xf32>, vector<256x4xf32> -> vector<256x4xf32>
    %33 = arith.addf %27, %32 : vector<256x4xf32>
    %c0_52 = arith.constant 0 : index
    %c0_53 = arith.constant 0 : index
    %34 = vector.load %arg3[%c0_52, %c0_53] : memref<2x4xf32, #tpu.memory_space<vmem>>, vector<1x4xf32>
    %35 = vector.shape_cast %34 : vector<1x4xf32> to vector<4xf32>
    %36 = vector.shape_cast %35 : vector<4xf32> to vector<1x4xf32>
    %37 = vector.broadcast %36 : vector<1x4xf32> to vector<256x4xf32>
    %38 = arith.addf %33, %37 : vector<256x4xf32>
    %cst_54 = arith.constant 0.000000e+00 : f32
    %39 = vector.broadcast %cst_54 : f32 to vector<256x4xf32>
    %40 = arith.maximumf %38, %39 : vector<256x4xf32>
    %41 = vector.shape_cast %40 : vector<256x4xf32> to vector<16x16x4xf32>
    %c0_55 = arith.constant 0 : index
    %c1_56 = arith.constant 1 : index
    %c0_57 = arith.constant 0 : index
    %42 = vector.load %arg10[%c0_55, %c1_56, %c0_57] : memref<16x18x4xf32, #tpu.memory_space<vmem>>, vector<16x16x4xf32>
    tpu.vector_store %arg10[%c0_55, %c1_56, %c0_57], %41 {strides = array<i32>} : memref<16x18x4xf32, #tpu.memory_space<vmem>>, vector<16x16x4xf32>,
    %c0_58 = arith.constant 0 : index
    %c0_59 = arith.constant 0 : index
    %c0_60 = arith.constant 0 : index
    %43 = vector.load %arg10[%c0_58, %c0_59, %c0_60] : memref<16x18x4xf32, #tpu.memory_space<vmem>>, vector<16x16x4xf32>
    %c0_61 = arith.constant 0 : index
    %c2_62 = arith.constant 2 : index
    %c0_63 = arith.constant 0 : index
    %44 = vector.load %arg10[%c0_61, %c2_62, %c0_63] : memref<16x18x4xf32, #tpu.memory_space<vmem>>, vector<16x16x4xf32>
    %45 = tpu.concatenate %43, %41, %44 in 2 : vector<16x16x4xf32>, vector<16x16x4xf32>, vector<16x16x4xf32> -> vector<16x16x12xf32>
    %c1_64 = arith.constant 1 : index
    %c0_65 = arith.constant 0 : index
    %c0_66 = arith.constant 0 : index
    %46 = vector.load %arg11[%c1_64, %c0_65, %c0_66] : memref<18x16x12xf32, #tpu.memory_space<vmem>>, vector<16x16x12xf32>
    tpu.vector_store %arg11[%c1_64, %c0_65, %c0_66], %45 {strides = array<i32>} : memref<18x16x12xf32, #tpu.memory_space<vmem>>, vector<16x16x12xf32>,
    %cst_67 = arith.constant 0.000000e+00 : f32
    %47 = vector.broadcast %cst_67 : f32 to vector<256x4xf32>
    %c0_68 = arith.constant 0 : index
    %c0_69 = arith.constant 0 : index
    %c0_70 = arith.constant 0 : index
    %48 = vector.load %arg11[%c0_68, %c0_69, %c0_70] : memref<18x16x12xf32, #tpu.memory_space<vmem>>, vector<16x16x12xf32>
    %49 = vector.shape_cast %48 : vector<16x16x12xf32> to vector<256x12xf32>
    %c1_71 = arith.constant 1 : index
    %c0_72 = arith.constant 0 : index
    %c0_73 = arith.constant 0 : index
    %c0_74 = arith.constant 0 : index
    %50 = vector.load %arg2[%c1_71, %c0_72, %c0_73, %c0_74] : memref<2x3x12x4xf32, #tpu.memory_space<vmem>>, vector<1x1x12x4xf32>
    %51 = vector.shape_cast %50 : vector<1x1x12x4xf32> to vector<12x4xf32>
    %cst_75 = arith.constant dense<0.000000e+00> : vector<256x4xf32>
    %52 = tpu.matmul %49, %51, %cst_75 {dimension_numbers = #tpu.dot_dimension_numbers<[1], [0], [0], [1], [0, 0, 1, 1], [], []>} : vector<256x12xf32>, vector<12x4xf32>, vector<256x4xf32> -> vector<256x4xf32>
    %53 = arith.addf %47, %52 : vector<256x4xf32>
    %c1_76 = arith.constant 1 : index
    %c0_77 = arith.constant 0 : index
    %c0_78 = arith.constant 0 : index
    %54 = vector.load %arg11[%c1_76, %c0_77, %c0_78] : memref<18x16x12xf32, #tpu.memory_space<vmem>>, vector<16x16x12xf32>
    %55 = vector.shape_cast %54 : vector<16x16x12xf32> to vector<256x12xf32>
    %c1_79 = arith.constant 1 : index
    %c1_80 = arith.constant 1 : index
    %c0_81 = arith.constant 0 : index
    %c0_82 = arith.constant 0 : index
    %56 = vector.load %arg2[%c1_79, %c1_80, %c0_81, %c0_82] : memref<2x3x12x4xf32, #tpu.memory_space<vmem>>, vector<1x1x12x4xf32>
    %57 = vector.shape_cast %56 : vector<1x1x12x4xf32> to vector<12x4xf32>
    %cst_83 = arith.constant dense<0.000000e+00> : vector<256x4xf32>
    %58 = tpu.matmul %55, %57, %cst_83 {dimension_numbers = #tpu.dot_dimension_numbers<[1], [0], [0], [1], [0, 0, 1, 1], [], []>} : vector<256x12xf32>, vector<12x4xf32>, vector<256x4xf32> -> vector<256x4xf32>
    %59 = arith.addf %53, %58 : vector<256x4xf32>
    %c2_84 = arith.constant 2 : index
    %c0_85 = arith.constant 0 : index
    %c0_86 = arith.constant 0 : index
    %60 = vector.load %arg11[%c2_84, %c0_85, %c0_86] : memref<18x16x12xf32, #tpu.memory_space<vmem>>, vector<16x16x12xf32>
    %61 = vector.shape_cast %60 : vector<16x16x12xf32> to vector<256x12xf32>
    %c1_87 = arith.constant 1 : index
    %c2_88 = arith.constant 2 : index
    %c0_89 = arith.constant 0 : index
    %c0_90 = arith.constant 0 : index
    %62 = vector.load %arg2[%c1_87, %c2_88, %c0_89, %c0_90] : memref<2x3x12x4xf32, #tpu.memory_space<vmem>>, vector<1x1x12x4xf32>
    %63 = vector.shape_cast %62 : vector<1x1x12x4xf32> to vector<12x4xf32>
    %cst_91 = arith.constant dense<0.000000e+00> : vector<256x4xf32>
    %64 = tpu.matmul %61, %63, %cst_91 {dimension_numbers = #tpu.dot_dimension_numbers<[1], [0], [0], [1], [0, 0, 1, 1], [], []>} : vector<256x12xf32>, vector<12x4xf32>, vector<256x4xf32> -> vector<256x4xf32>
    %65 = arith.addf %59, %64 : vector<256x4xf32>
    %c1_92 = arith.constant 1 : index
    %c0_93 = arith.constant 0 : index
    %66 = vector.load %arg3[%c1_92, %c0_93] : memref<2x4xf32, #tpu.memory_space<vmem>>, vector<1x4xf32>
    %67 = vector.shape_cast %66 : vector<1x4xf32> to vector<4xf32>
    %68 = vector.shape_cast %67 : vector<4xf32> to vector<1x4xf32>
    %69 = vector.broadcast %68 : vector<1x4xf32> to vector<256x4xf32>
    %70 = arith.addf %65, %69 : vector<256x4xf32>
    %cst_94 = arith.constant 0.000000e+00 : f32
    %71 = vector.broadcast %cst_94 : f32 to vector<256x4xf32>
    %72 = arith.maximumf %70, %71 : vector<256x4xf32>
    %73 = vector.shape_cast %72 : vector<256x4xf32> to vector<16x16x4xf32>
    %c0_95 = arith.constant 0 : index
    %c1_96 = arith.constant 1 : index
    %c0_97 = arith.constant 0 : index
    %74 = vector.load %arg10[%c0_95, %c1_96, %c0_97] : memref<16x18x4xf32, #tpu.memory_space<vmem>>, vector<16x16x4xf32>
    tpu.vector_store %arg10[%c0_95, %c1_96, %c0_97], %73 {strides = array<i32>} : memref<16x18x4xf32, #tpu.memory_space<vmem>>, vector<16x16x4xf32>,
    %c0_98 = arith.constant 0 : index
    %c0_99 = arith.constant 0 : index
    %c0_100 = arith.constant 0 : index
    %75 = vector.load %arg10[%c0_98, %c0_99, %c0_100] : memref<16x18x4xf32, #tpu.memory_space<vmem>>, vector<16x16x4xf32>
    %c0_101 = arith.constant 0 : index
    %c2_102 = arith.constant 2 : index
    %c0_103 = arith.constant 0 : index
    %76 = vector.load %arg10[%c0_101, %c2_102, %c0_103] : memref<16x18x4xf32, #tpu.memory_space<vmem>>, vector<16x16x4xf32>
    %77 = tpu.concatenate %75, %73, %76 in 2 : vector<16x16x4xf32>, vector<16x16x4xf32>, vector<16x16x4xf32> -> vector<16x16x12xf32>
    %c1_104 = arith.constant 1 : index
    %c0_105 = arith.constant 0 : index
    %c0_106 = arith.constant 0 : index
    %78 = vector.load %arg11[%c1_104, %c0_105, %c0_106] : memref<18x16x12xf32, #tpu.memory_space<vmem>>, vector<16x16x12xf32>
    tpu.vector_store %arg11[%c1_104, %c0_105, %c0_106], %77 {strides = array<i32>} : memref<18x16x12xf32, #tpu.memory_space<vmem>>, vector<16x16x12xf32>,
    %cst_107 = arith.constant 0.000000e+00 : f32
    %79 = vector.broadcast %cst_107 : f32 to vector<16x16xf32>
    %c0_108 = arith.constant 0 : index
    %c0_109 = arith.constant 0 : index
    %c0_110 = arith.constant 0 : index
    %80 = vector.load %arg11[%c0_108, %c0_109, %c0_110] : memref<18x16x12xf32, #tpu.memory_space<vmem>>, vector<16x16x12xf32>
    %c0_111 = arith.constant 0 : index
    %c0_112 = arith.constant 0 : index
    %81 = vector.load %arg4[%c0_111, %c0_112] : memref<3x12xf32, #tpu.memory_space<vmem>>, vector<1x12xf32>
    %82 = vector.shape_cast %81 : vector<1x12xf32> to vector<12xf32>
    %83 = vector.shape_cast %82 : vector<12xf32> to vector<1x1x12xf32>
    %84 = vector.broadcast %83 : vector<1x1x12xf32> to vector<16x16x12xf32>
    %85 = arith.mulf %80, %84 : vector<16x16x12xf32>
    %cst_113 = arith.constant dense<0.000000e+00> : vector<16x16xf32>
    %86 = vector.multi_reduction <add>, %85, %cst_113 [2] : vector<16x16x12xf32> to vector<16x16xf32>
    %87 = arith.addf %79, %86 : vector<16x16xf32>
    %c1_114 = arith.constant 1 : index
    %c0_115 = arith.constant 0 : index
    %c0_116 = arith.constant 0 : index
    %88 = vector.load %arg11[%c1_114, %c0_115, %c0_116] : memref<18x16x12xf32, #tpu.memory_space<vmem>>, vector<16x16x12xf32>
    %c1_117 = arith.constant 1 : index
    %c0_118 = arith.constant 0 : index
    %89 = vector.load %arg4[%c1_117, %c0_118] : memref<3x12xf32, #tpu.memory_space<vmem>>, vector<1x12xf32>
    %90 = vector.shape_cast %89 : vector<1x12xf32> to vector<12xf32>
    %91 = vector.shape_cast %90 : vector<12xf32> to vector<1x1x12xf32>
    %92 = vector.broadcast %91 : vector<1x1x12xf32> to vector<16x16x12xf32>
    %93 = arith.mulf %88, %92 : vector<16x16x12xf32>
    %cst_119 = arith.constant dense<0.000000e+00> : vector<16x16xf32>
    %94 = vector.multi_reduction <add>, %93, %cst_119 [2] : vector<16x16x12xf32> to vector<16x16xf32>
    %95 = arith.addf %87, %94 : vector<16x16xf32>
    %c2_120 = arith.constant 2 : index
    %c0_121 = arith.constant 0 : index
    %c0_122 = arith.constant 0 : index
    %96 = vector.load %arg11[%c2_120, %c0_121, %c0_122] : memref<18x16x12xf32, #tpu.memory_space<vmem>>, vector<16x16x12xf32>
    %c2_123 = arith.constant 2 : index
    %c0_124 = arith.constant 0 : index
    %97 = vector.load %arg4[%c2_123, %c0_124] : memref<3x12xf32, #tpu.memory_space<vmem>>, vector<1x12xf32>
    %98 = vector.shape_cast %97 : vector<1x12xf32> to vector<12xf32>
    %99 = vector.shape_cast %98 : vector<12xf32> to vector<1x1x12xf32>
    %100 = vector.broadcast %99 : vector<1x1x12xf32> to vector<16x16x12xf32>
    %101 = arith.mulf %96, %100 : vector<16x16x12xf32>
    %cst_125 = arith.constant dense<0.000000e+00> : vector<16x16xf32>
    %102 = vector.multi_reduction <add>, %101, %cst_125 [2] : vector<16x16x12xf32> to vector<16x16xf32>
    %103 = arith.addf %95, %102 : vector<16x16xf32>
    %c0_126 = arith.constant 0 : index
    %104 = memref.load %arg5[%c0_126] : memref<1xf32, #tpu.memory_space<smem>>
    %105 = vector.broadcast %104 : f32 to vector<16x16xf32>
    %106 = arith.addf %103, %105 : vector<16x16xf32>
    %107 = vector.shape_cast %106 : vector<16x16xf32> to vector<1x16x16xf32>
    %c0_127 = arith.constant 0 : index
    %c0_128 = arith.constant 0 : index
    %c0_129 = arith.constant 0 : index
    %108 = vector.load %arg8[%c0_127, %c0_128, %c0_129] : memref<1x16x16xf32, #tpu.memory_space<vmem>>, vector<1x16x16xf32>
    tpu.vector_store %arg8[%c0_127, %c0_128, %c0_129], %107 {strides = array<i32>} : memref<1x16x16xf32, #tpu.memory_space<vmem>>, vector<1x16x16xf32>,
    %c0_130 = arith.constant 0 : index
    %c0_131 = arith.constant 0 : index
    %109 = vector.load %arg6[%c0_130, %c0_131] : memref<64x16xf32, #tpu.memory_space<vmem>>, vector<64x16xf32>
    %cst_132 = arith.constant dense<0.000000e+00> : vector<64x16xf32>
    %110 = tpu.matmul %109, %106, %cst_132 {dimension_numbers = #tpu.dot_dimension_numbers<[1], [0], [0], [1], [0, 0, 1, 1], [], []>} : vector<64x16xf32>, vector<16x16xf32>, vector<64x16xf32> -> vector<64x16xf32>
    %c0_133 = arith.constant 0 : index
    %c0_134 = arith.constant 0 : index
    %111 = vector.load %arg7[%c0_133, %c0_134] : memref<16x64xf32, #tpu.memory_space<vmem>>, vector<16x64xf32>
    %cst_135 = arith.constant dense<0.000000e+00> : vector<64x64xf32>
    %112 = tpu.matmul %110, %111, %cst_135 {dimension_numbers = #tpu.dot_dimension_numbers<[1], [0], [0], [1], [0, 0, 1, 1], [], []>} : vector<64x16xf32>, vector<16x64xf32>, vector<64x64xf32> -> vector<64x64xf32>
    %113 = vector.shape_cast %112 : vector<64x64xf32> to vector<1x64x64xf32>
    %c0_136 = arith.constant 0 : index
    %c0_137 = arith.constant 0 : index
    %c0_138 = arith.constant 0 : index
    %114 = vector.load %arg9[%c0_136, %c0_137, %c0_138] : memref<1x64x64xf32, #tpu.memory_space<vmem>>, vector<1x64x64xf32>
    tpu.vector_store %arg9[%c0_136, %c0_137, %c0_138], %113 {strides = array<i32>} : memref<1x64x64xf32, #tpu.memory_space<vmem>>, vector<1x64x64xf32>,
    return
  }
  func.func @transform_0(%arg0: i32) -> (i32, i32, i32, i32) {
    %c0_i32 = arith.constant 0 : i32
    %c0_i32_0 = arith.constant 0 : i32
    %c0_i32_1 = arith.constant 0 : i32
    %c0_i32_2 = arith.constant 0 : i32
    return %arg0, %c0_i32, %c0_i32_0, %c0_i32_1 : i32, i32, i32, i32
  }
  func.func @transform_1(%arg0: i32) -> (i32, i32, i32, i32) {
    %c0_i32 = arith.constant 0 : i32
    %c0_i32_0 = arith.constant 0 : i32
    %c0_i32_1 = arith.constant 0 : i32
    %c0_i32_2 = arith.constant 0 : i32
    %c0_i32_3 = arith.constant 0 : i32
    return %c0_i32, %c0_i32_0, %c0_i32_1, %c0_i32_2 : i32, i32, i32, i32
  }
  func.func @transform_2(%arg0: i32) -> (i32, i32) {
    %c0_i32 = arith.constant 0 : i32
    %c0_i32_0 = arith.constant 0 : i32
    %c0_i32_1 = arith.constant 0 : i32
    return %c0_i32, %c0_i32_0 : i32, i32
  }
  func.func @transform_3(%arg0: i32) -> (i32, i32) {
    %c0_i32 = arith.constant 0 : i32
    %c0_i32_0 = arith.constant 0 : i32
    %c0_i32_1 = arith.constant 0 : i32
    return %c0_i32, %c0_i32_0 : i32, i32
  }
  func.func @transform_4(%arg0: i32) -> i32 {
    %c0_i32 = arith.constant 0 : i32
    %c0_i32_0 = arith.constant 0 : i32
    return %c0_i32 : i32
  }
  func.func @transform_5(%arg0: i32) -> (i32, i32) {
    %c0_i32 = arith.constant 0 : i32
    %c0_i32_0 = arith.constant 0 : i32
    %c0_i32_1 = arith.constant 0 : i32
    return %c0_i32, %c0_i32_0 : i32, i32
  }
  func.func @transform_6(%arg0: i32) -> (i32, i32) {
    %c0_i32 = arith.constant 0 : i32
    %c0_i32_0 = arith.constant 0 : i32
    %c0_i32_1 = arith.constant 0 : i32
    return %c0_i32, %c0_i32_0 : i32, i32
  }
  func.func @transform_7(%arg0: i32) -> (i32, i32, i32) {
    %c0_i32 = arith.constant 0 : i32
    %c0_i32_0 = arith.constant 0 : i32
    %c0_i32_1 = arith.constant 0 : i32
    return %arg0, %c0_i32, %c0_i32_0 : i32, i32, i32
  }
  func.func @transform_8(%arg0: i32) -> (i32, i32, i32) {
    %c0_i32 = arith.constant 0 : i32
    %c0_i32_0 = arith.constant 0 : i32
    %c0_i32_1 = arith.constant 0 : i32
    return %arg0, %c0_i32, %c0_i32_0 : i32, i32, i32
  }
}

</mosaic_0001>

<bundles_post_ra>
// kernel: change_detection_head_forward.1
= control target key start
LH: loop header
LB: loop body
LE: loop exit
PB: predicated region body
PF: predicated region fallthrough
CT: control target
= control target key end

     0   :  { %s8703_s0 = inlined_call_operand.vmem [shape: f32[2,16,16,4], index: 0, kind: input, shape index: {}]   ;;  %s8704_s1 = inlined_call_operand.vmem [shape: f32[2,3,12,4], index: 1, kind: input, shape index: {}]   ;;  %s8705_s2 = inlined_call_operand.vmem [shape: f32[2,4], index: 2, kind: input, shape index: {}]   ;;  %s8706_s3 = inlined_call_operand.vmem [shape: f32[3,12], index: 3, kind: input, shape index: {}]   ;;  %s8707_s4 = inlined_call_operand.<no memory space> [shape: f32[1], index: 4, kind: input, shape index: {}]   ;;  %s8708_s5 = inlined_call_operand.vmem [shape: f32[64,16], index: 5, kind: input, shape index: {}]   ;;  %s8709_s6 = inlined_call_operand.vmem [shape: f32[16,64], index: 6, kind: input, shape index: {}]   ;;  %s8710_s7 = inlined_call_operand.hbm [shape: f32[2,16,16], index: 7, kind: output, shape index: {0}]   ;;  %s8711_s8 = inlined_call_operand.hbm [shape: f32[2,64,64], index: 8, kind: output, shape index: {1}]  }
   0x1   :  { %14 = sst [smem:[#allocation4]] %s8707_s4 }
   0x2   :  { %15 = vsyncpa [#allocation6], 0 }
   0x3   :  { %17 = vsyncpa [#allocation6 + $0x1], 0 }
   0x4   :  { %18 = vsyncpa [#allocation8], 0 }
   0x5   :  { %20 = vsyncpa [#allocation8 + $0x1], 0  ;;  %s6342_s29 = smov 0   ;;  %s6344_s30 = smov 0  }
   0x6   :  { %s6346_s9 = smov 0   ;;  %s6348_s10 = smov 0  }
   0x7 LB: > { %s6363_s4 = sadd.s32 4294967295, %s6286_s10   ;;  %s5328_s11 = sadd.s32 4294967294, %s6286_s10   ;;  %s6286_s10 = sphi %s6348_s10, %s8717_s10   ;;  %s6282_s9 = sphi %s6346_s9, %s8716_s9   ;;  %s6278_s30 = sphi %s6344_s30, %s8715_s30   ;;  %s6274_s29 = sphi %s6342_s29, %s8714_s29  }
   0x8   : > { %s6367_s12 = sadd.s32 1, %s6286_s10   ;;  %s185_s13 = sadd.s32 1, %s6282_s9 }
   0x9   : > { %s182_s14 = ssub.s32 %s6286_s10, %s6367_s12  ;;  %p195_p0 = scmp.ne.s32.totalorder %s6282_s9, %s6278_s30 }
   0xa   : > { %p183_p1 = scmp.eq.s32.totalorder %s182_s14, 0  ;;  %p196_p2 = scmp.eq.s32.totalorder %s6363_s4, 1 }
   0xb   : > { %p201_p3 = scmp.ne.s32.totalorder %s6278_s30, %s6274_s29  ;;  %p202_p4 = scmp.eq.s32.totalorder %s5328_s11, 1 }
   0xc   : > { %s6378_s15 = scalar_select %p183_p1, %s6282_s9, %s185_s13  }
   0xd   : > { %p6380_p5 = por %p196_p2, %p195_p0  ;;  %p6384_p6 = por %p202_p4, %p201_p3 }
   0xe   : > { %p5331_p7 = scmp.ge.s32.totalorder %s6286_s10, 1  ;;  %p272_p8 = scmp.lt.s32.totalorder %s6286_s10, 3 }
  0x10   : > { %p273_p9 = pnand %p5331_p7, %p272_p8 }
  0x11   : > { %p311_p10 = scmp.lt.s32.totalorder (!%p273_p9), %s6363_s4, 1  ;;  %s6289_s25 = smov (!%p273_p9), 4  }
  0x12   : > { %276 = sbr.rel (%p273_p9) target bundleno = 1857 (0x741), region = 48  ;;  %s6290_s26 = smov (!%p273_p9), 8  }
  0x13   : > { %s4682_s24 = sld [smem:[#allocation4]] (!%p273_p9)  ;;  %s5574_s27 = sshll.u32 (!%p273_p9), %s6363_s4, 8 }
  0x14   : > { %s8617_s13 = scalar_lea.hbm (!%p273_p9), %s8710_s7, %s5574_s27 }
  0x17   : > { %vm316_vm0 = vcmask 24576   ;;  %vm349_vm1 = vcmask 97280   ;;  %v6288_v0 = vmov 0.0   ;;  %s312_s18 = scalar_select %p311_p10, %s6363_s4, 1  ;;  %vm387_vm2 = vcmask 31744   ;;  %v870_v39 = vld [vmem:[%s8704_s1] sm:$0xff] }
  0x18   : > { %333 = vst.msk [vmem:[#allocation2 + $0x11] sm:$0x1] %vm316_vm0, %v6288_v0  ;;  %317 = vst.msk [vmem:[#allocation2] sm:$0x1] %vm316_vm0, %v6288_v0  ;;  %v871_v1 = vld [vmem:[%s8704_s1 + $0x8] sm:$0xf] }
  0x19   : > { %318 = vst.msk [vmem:[#allocation2 + $0x18] sm:$0x1] %vm316_vm0, %v6288_v0  ;;  %319 = vst.msk [vmem:[#allocation2 + $0x30] sm:$0x1] %vm316_vm0, %v6288_v0  ;;  %s5573_s19 = sshll.u32 %s312_s18, 8  ;;  %vm1003_vm3 = vcmask 1043456  }
  0x1a   : > { %320 = vst.msk [vmem:[#allocation2 + $0x48] sm:$0x1] %vm316_vm0, %v6288_v0  ;;  %321 = vst.msk [vmem:[#allocation2 + $0x60] sm:$0x1] %vm316_vm0, %v6288_v0  ;;  %s6433_s22 = scalar_lea.vmem %s8703_s0, %s5573_s19  ;;  %5852 = vmatprep.subr.msk.mxu1 %vm1003_vm3, %v871_v1  ;;  %v5337_v42 = vld [vmem:[%s8704_s1 + $0x18] sm:$0xf] }
  0x1b   : > { %322 = vst.msk [vmem:[#allocation2 + $0x78] sm:$0x1] %vm316_vm0, %v6288_v0  ;;  %323 = vst.msk [vmem:[#allocation2 + $0x90] sm:$0x1] %vm316_vm0, %v6288_v0  ;;  %v355_v2 = vld [vmem:[%s6433_s22] sm:$0xff]  ;;  %v358_v3 = vld [vmem:[%s6433_s22 + $0x18] sm:$0xff]  ;;  %5853 = vmatpush3.msk.msra.mxu1 %vm1003_vm3, %v871_v1  ;;  %5800 = vmatprep.subr.msk.mxu0 %vm1003_vm3, %v5337_v42 }
  0x1c   : > { %324 = vst.msk [vmem:[#allocation2 + $0xa8] sm:$0x1] %vm316_vm0, %v6288_v0  ;;  %325 = vst.msk [vmem:[#allocation2 + $0xc0] sm:$0x1] %vm316_vm0, %v6288_v0  ;;  %v356_v4 = vld [vmem:[%s6433_s22 + $0x8] sm:$0xff]  ;;  %516 = vrot.lane.b32.xlu0 %v355_v2, %s6289_s25  ;;  %522 = vrot.lane.b32.xlu1 %v358_v3, %s6289_s25  ;;  %v357_v5 = vld [vmem:[%s6433_s22 + $0x10] sm:$0xff] }
  0x1d   : > { %326 = vst.msk [vmem:[#allocation2 + $0xd8] sm:$0x1] %vm316_vm0, %v6288_v0  ;;  %327 = vst.msk [vmem:[#allocation2 + $0xf0] sm:$0x1] %vm316_vm0, %v6288_v0  ;;  %v359_v6 = vld [vmem:[%s6433_s22 + $0x20] sm:$0xff]  ;;  %v6452_v7 = vld [vmem:[%s6433_s22 + $0x28] sm:$0xff]  ;;  %5854 = vmatprep.subr.mxu1 %v870_v39  ;;  %5801 = vmatpush3.msk.msra.mxu0 %vm1003_vm3, %v5337_v42 }
  0x1e   : > { %328 = vst.msk [vmem:[#allocation2 + $0x108] sm:$0x1] %vm316_vm0, %v6288_v0  ;;  %329 = vst.msk [vmem:[#allocation2 + $0x120] sm:$0x1] %vm316_vm0, %v6288_v0  ;;  %v6455_v8 = vld [vmem:[%s6433_s22 + $0x30] sm:$0xff]  ;;  %v6458_v9 = vld [vmem:[%s6433_s22 + $0x38] sm:$0xff]  ;;  %5855 = vmatpush3.msra.mxu1 %v870_v39 }
  0x1f   : > { %330 = vst.msk [vmem:[#allocation2 + $0x138] sm:$0x1] %vm316_vm0, %v6288_v0  ;;  %331 = vst.msk [vmem:[#allocation2 + $0x150] sm:$0x1] %vm316_vm0, %v6288_v0  ;;  %v6468_v10 = vld [vmem:[%s6433_s22 + $0x40] sm:$0xff]  ;;  %v6471_v11 = vld [vmem:[%s6433_s22 + $0x48] sm:$0xff] }
  0x20   : > { %332 = vst.msk [vmem:[#allocation2 + $0x168] sm:$0x1] %vm316_vm0, %v6288_v0  ;;  %334 = vst.msk [vmem:[#allocation2 + $0x29] sm:$0x1] %vm316_vm0, %v6288_v0  ;;  %v6474_v12 = vld [vmem:[%s6433_s22 + $0x50] sm:$0xff]  ;;  %v6483_v13 = vld [vmem:[%s6433_s22 + $0x58] sm:$0xff]  ;;  %518 = vrot.lane.b32.xlu0 %v356_v4, %s6289_s25 }
  0x21   : > { %335 = vst.msk [vmem:[#allocation2 + $0x41] sm:$0x1] %vm316_vm0, %v6288_v0  ;;  %336 = vst.msk [vmem:[#allocation2 + $0x59] sm:$0x1] %vm316_vm0, %v6288_v0  ;;  %v6486_v14 = vld [vmem:[%s6433_s22 + $0x60] sm:$0xff]  ;;  %v6489_v15 = vld [vmem:[%s6433_s22 + $0x68] sm:$0xff] }
  0x22   : > { %337 = vst.msk [vmem:[#allocation2 + $0x71] sm:$0x1] %vm316_vm0, %v6288_v0  ;;  %338 = vst.msk [vmem:[#allocation2 + $0x89] sm:$0x1] %vm316_vm0, %v6288_v0  ;;  %v6499_v16 = vld [vmem:[%s6433_s22 + $0x70] sm:$0xff]  ;;  %v6502_v17 = vld [vmem:[%s6433_s22 + $0x78] sm:$0xff] }
  0x23   : > { %339 = vst.msk [vmem:[#allocation2 + $0xa1] sm:$0x1] %vm316_vm0, %v6288_v0  ;;  %340 = vst.msk [vmem:[#allocation2 + $0xb9] sm:$0x1] %vm316_vm0, %v6288_v0  ;;  %v6505_v18 = vld [vmem:[%s6433_s22 + $0x80] sm:$0xff]  ;;  %v6514_v19 = vld [vmem:[%s6433_s22 + $0x88] sm:$0xff] }
  0x24   : > { %341 = vst.msk [vmem:[#allocation2 + $0xd1] sm:$0x1] %vm316_vm0, %v6288_v0  ;;  %342 = vst.msk [vmem:[#allocation2 + $0xe9] sm:$0x1] %vm316_vm0, %v6288_v0  ;;  %v6517_v20 = vld [vmem:[%s6433_s22 + $0x90] sm:$0xff]  ;;  %v6520_v21 = vld [vmem:[%s6433_s22 + $0x98] sm:$0xff]  ;;  %520 = vrot.lane.b32.xlu0 %v357_v5, %s6289_s25 }
  0x25   : > { %343 = vst.msk [vmem:[#allocation2 + $0x101] sm:$0x1] %vm316_vm0, %v6288_v0  ;;  %344 = vst.msk [vmem:[#allocation2 + $0x119] sm:$0x1] %vm316_vm0, %v6288_v0  ;;  %v6529_v22 = vld [vmem:[%s6433_s22 + $0xa0] sm:$0xff]  ;;  %v6532_v23 = vld [vmem:[%s6433_s22 + $0xa8] sm:$0xff] }
  0x26   : > { %345 = vst.msk [vmem:[#allocation2 + $0x131] sm:$0x1] %vm316_vm0, %v6288_v0  ;;  %346 = vst.msk [vmem:[#allocation2 + $0x149] sm:$0x1] %vm316_vm0, %v6288_v0  ;;  %v6535_v24 = vld [vmem:[%s6433_s22 + $0xb0] sm:$0xff]  ;;  %v6546_v26 = vld [vmem:[%s6433_s22 + $0xb8] sm:$0xff] }
  0x27   : > { %347 = vst.msk [vmem:[#allocation2 + $0x161] sm:$0x1] %vm316_vm0, %v6288_v0  ;;  %348 = vst.msk [vmem:[#allocation2 + $0x179] sm:$0x1] %vm316_vm0, %v6288_v0  ;;  %v6549_v27 = vld [vmem:[%s6433_s22 + $0xc0] sm:$0xff]  ;;  %v6558_v31 = vld [vmem:[%s6433_s22 + $0xc8] sm:$0xff] }
  0x28   : > { %350 = vst.msk [vmem:[#allocation3] sm:$0xff] %vm349_vm1, %v6288_v0  ;;  %351 = vst.msk [vmem:[#allocation3 + $0x8] sm:$0xff] %vm349_vm1, %v6288_v0  ;;  %v6561_v32 = vld [vmem:[%s6433_s22 + $0xd0] sm:$0xff]  ;;  %v6564_v33 = vld [vmem:[%s6433_s22 + $0xd8] sm:$0xff]  ;;  %vm772_vm4 = vcmask 64512   ;;  %vm4759_vm5 = vcmask 130112  }
  0x29   : > { %353 = vst.msk [vmem:[#allocation3 + $0x110] sm:$0xff] %vm349_vm1, %v6288_v0  ;;  %354 = vst.msk [vmem:[#allocation3 + $0x118] sm:$0xff] %vm349_vm1, %v6288_v0  ;;  %v6575_v34 = vld [vmem:[%s6433_s22 + $0xe0] sm:$0xff]  ;;  %v6580_v36 = vld [vmem:[%s6433_s22 + $0xe8] sm:$0xff]  ;;  %vm4896_vm6 = vcmask 1041409   ;;  %vm4898_vm7 = vcmask 1042434  }
  0x2a   : > { %388 = vst.msk [vmem:[#allocation2 + $0x1] sm:$0xff] %vm387_vm2, %v355_v2  ;;  %391 = vst.msk [vmem:[#allocation2 + $0x21] sm:$0xff] %vm387_vm2, %v358_v3  ;;  %v6585_v37 = vld [vmem:[%s6433_s22 + $0xf0] sm:$0xff]  ;;  %v6590_v38 = vld [vmem:[%s6433_s22 + $0xf8] sm:$0xff]  ;;  %vm4900_vm8 = vcmask 1043459   ;;  %vm4919_vm9 = vcmask 130048  }
  0x2b   : > { %389 = vst.msk [vmem:[#allocation2 + $0x9] sm:$0xff] %vm387_vm2, %v356_v4  ;;  %390 = vst.msk [vmem:[#allocation2 + $0x19] sm:$0xff] %vm387_vm2, %v357_v5  ;;  %v5336_v44 = vld [vmem:[%s8704_s1 + $0x10] sm:$0xff]  ;;  %vm4902_vm10 = vcmask 1044484   ;;  %vm4904_vm11 = vcmask 1045509   ;;  %vm4906_vm12 = vcmask 1046534  }
  0x2c   : > { %392 = vst.msk [vmem:[#allocation2 + $0x31] sm:$0xff] %vm387_vm2, %v359_v6  ;;  %393 = vst.msk [vmem:[#allocation2 + $0x39] sm:$0xff] %vm387_vm2, %v6452_v7  ;;  %5802 = vmatprep.subr.mxu0 %v5336_v44  ;;  %vm4908_vm13 = vcmask 1047559  }
  0x2d   : > { %394 = vst.msk [vmem:[#allocation2 + $0x49] sm:$0xff] %vm387_vm2, %v6455_v8  ;;  %395 = vst.msk [vmem:[#allocation2 + $0x51] sm:$0xff] %vm387_vm2, %v6458_v9  ;;  %5803 = vmatpush3.msra.mxu0 %v5336_v44 }
  0x2e   : > { %396 = vst.msk [vmem:[#allocation2 + $0x61] sm:$0xff] %vm387_vm2, %v6468_v10  ;;  %397 = vst.msk [vmem:[#allocation2 + $0x69] sm:$0xff] %vm387_vm2, %v6471_v11 }
  0x2f   : > { %398 = vst.msk [vmem:[#allocation2 + $0x79] sm:$0xff] %vm387_vm2, %v6474_v12  ;;  %399 = vst.msk [vmem:[#allocation2 + $0x81] sm:$0xff] %vm387_vm2, %v6483_v13  ;;  %v838_v40 = vld [vmem:[#allocation3] sm:$0xff]  ;;  %v839_v41 = vld [vmem:[#allocation3 + $0x8] sm:$0xff] }
  0x30   : > { %400 = vst.msk [vmem:[#allocation2 + $0x91] sm:$0xff] %vm387_vm2, %v6486_v14  ;;  %401 = vst.msk [vmem:[#allocation2 + $0x99] sm:$0xff] %vm387_vm2, %v6489_v15  ;;  %5856 = vmatprep.mubr.msk.f32.mxu1 %vm349_vm1, %v838_v40 }
  0x31   : > { %402 = vst.msk [vmem:[#allocation2 + $0xa9] sm:$0xff] %vm387_vm2, %v6499_v16  ;;  %403 = vst.msk [vmem:[#allocation2 + $0xb1] sm:$0xff] %vm387_vm2, %v6502_v17  ;;  %v455_v30 = vld [vmem:[#allocation2 + $0x22] sm:$0xff]  ;;  %5857 = vmatmul.mubr.msk.f32.vlgmr.msra.gmra.mxu1 %vm349_vm1, %v839_v41 }
  0x32   : > { %404 = vst.msk [vmem:[#allocation2 + $0xc1] sm:$0xff] %vm387_vm2, %v6505_v18  ;;  %405 = vst.msk [vmem:[#allocation2 + $0xc9] sm:$0xff] %vm387_vm2, %v6514_v19  ;;  %v452_v25 = vld [vmem:[#allocation2 + $0x2] sm:$0xff]  ;;  %v454_v28 = vld [vmem:[#allocation2 + $0x1a] sm:$0xff] }
  0x33   : > { %406 = vst.msk [vmem:[#allocation2 + $0xd9] sm:$0xff] %vm387_vm2, %v6517_v20  ;;  %407 = vst.msk [vmem:[#allocation2 + $0xe1] sm:$0xff] %vm387_vm2, %v6520_v21  ;;  %644 = vrot.lane.b32.xlu1 %v452_v25, %s6290_s26  ;;  %v453_v29 = vld [vmem:[#allocation2 + $0xa] sm:$0xff]  ;;  %648 = vrot.lane.b32.xlu0 %v454_v28, %s6290_s26  ;;  %v456_v35 = vld [vmem:[#allocation2 + $0x32] sm:$0xff] }
  0x34   : > { %408 = vst.msk [vmem:[#allocation2 + $0xf1] sm:$0xff] %vm387_vm2, %v6529_v22  ;;  %409 = vst.msk [vmem:[#allocation2 + $0xf9] sm:$0xff] %vm387_vm2, %v6532_v23  ;;  %v457_v43 = vld [vmem:[#allocation2 + $0x3a] sm:$0xff]  ;;  %v458_v45 = vld [vmem:[#allocation2 + $0x4a] sm:$0xff] }
  0x35   : > { %410 = vst.msk [vmem:[#allocation2 + $0x109] sm:$0xff] %vm387_vm2, %v6535_v24  ;;  %411 = vst.msk [vmem:[#allocation2 + $0x111] sm:$0xff] %vm387_vm2, %v6546_v26  ;;  %v459_v46 = vld [vmem:[#allocation2 + $0x52] sm:$0xff]  ;;  %v460_v47 = vld [vmem:[#allocation2 + $0x62] sm:$0xff] }
  0x36   : > { %412 = vst.msk [vmem:[#allocation2 + $0x121] sm:$0xff] %vm387_vm2, %v6549_v27  ;;  %413 = vst.msk [vmem:[#allocation2 + $0x129] sm:$0xff] %vm387_vm2, %v6558_v31  ;;  %v461_v48 = vld [vmem:[#allocation2 + $0x6a] sm:$0xff]  ;;  %v462_v49 = vld [vmem:[#allocation2 + $0x7a] sm:$0xff] }
  0x37   : > { %646 = vrot.lane.b32.xlu1 %v453_v29, %s6290_s26  ;;  %524 = vrot.lane.b32.xlu0 %v359_v6, %s6289_s25  ;;  %414 = vst.msk [vmem:[#allocation2 + $0x139] sm:$0xff] %vm387_vm2, %v6561_v32  ;;  %415 = vst.msk [vmem:[#allocation2 + $0x141] sm:$0xff] %vm387_vm2, %v6564_v33  ;;  %v463_v50 = vld [vmem:[#allocation2 + $0x82] sm:$0xff]  ;;  %v464_v51 = vld [vmem:[#allocation2 + $0x92] sm:$0xff] }
  0x38   : > { %416 = vst.msk [vmem:[#allocation2 + $0x151] sm:$0xff] %vm387_vm2, %v6575_v34  ;;  %417 = vst.msk [vmem:[#allocation2 + $0x159] sm:$0xff] %vm387_vm2, %v6580_v36  ;;  %v465_v52 = vld [vmem:[#allocation2 + $0x9a] sm:$0xff]  ;;  %v466_v53 = vld [vmem:[#allocation2 + $0xaa] sm:$0xff] }
  0x39   : > { %418 = vst.msk [vmem:[#allocation2 + $0x169] sm:$0xff] %vm387_vm2, %v6585_v37  ;;  %419 = vst.msk [vmem:[#allocation2 + $0x171] sm:$0xff] %vm387_vm2, %v6590_v38  ;;  %v467_v54 = vld [vmem:[#allocation2 + $0xb2] sm:$0xff]  ;;  %v468_v55 = vld [vmem:[#allocation2 + $0xc2] sm:$0xff] }
  0x3a   : > { %v469_v56 = vld [vmem:[#allocation2 + $0xca] sm:$0xff]  ;;  %v470_v57 = vld [vmem:[#allocation2 + $0xda] sm:$0xff]  ;;  %v471_v58 = vld [vmem:[#allocation2 + $0xe2] sm:$0xff] }
  0x3b   : > { %650 = vrot.lane.b32.xlu1 %v455_v30, %s6290_s26  ;;  %652 = vrot.lane.b32.xlu0 %v456_v35, %s6290_s26  ;;  %v472_v59 = vld [vmem:[#allocation2 + $0xf2] sm:$0xff]  ;;  %v473_v60 = vld [vmem:[#allocation2 + $0xfa] sm:$0xff]  ;;  %v426_v39 = vld [vmem:[#allocation2 + $0x48] sm:$0xff] }
  0x3c   : > { %v474_v61 = vld [vmem:[#allocation2 + $0x10a] sm:$0xff]  ;;  %v475_v62 = vld [vmem:[#allocation2 + $0x112] sm:$0xff] }
  0x3d   : > { %v476_v63 = vld [vmem:[#allocation2 + $0x122] sm:$0xff]  ;;  %v477_v0 = vld [vmem:[#allocation2 + $0x12a] sm:$0xff]  ;;  %v425_v35 = vld [vmem:[#allocation2 + $0x38] sm:$0xff] }
  0x3e   : > { %v478_v1 = vld [vmem:[#allocation2 + $0x13a] sm:$0xff]  ;;  %v479_v2 = vld [vmem:[#allocation2 + $0x142] sm:$0xff]  ;;  %v424_v25 = vld [vmem:[#allocation2 + $0x30] sm:$0xff] }
  0x3f   : > { %526 = vrot.lane.b32.xlu1 %v6452_v7, %s6289_s25  ;;  %528 = vrot.lane.b32.xlu0 %v6455_v8, %s6289_s25  ;;  %v480_v3 = vld [vmem:[#allocation2 + $0x152] sm:$0xff]  ;;  %v481_v6 = vld [vmem:[#allocation2 + $0x15a] sm:$0xff] }
  0x40   : > { %v420_v8 = vld [vmem:[#allocation2] sm:$0xff] }
  0x43   : > { %654 = vrot.lane.b32.xlu1 %v457_v43, %s6290_s26  ;;  %656 = vrot.lane.b32.xlu0 %v458_v45, %s6290_s26 }
  0x47   : > { %530 = vrot.lane.b32.xlu1 %v6458_v9, %s6289_s25  ;;  %532 = vrot.lane.b32.xlu0 %v6468_v10, %s6289_s25  ;;  %v5405_v9 = vld [vmem:[%s8704_s1 + $0x28] sm:$0xf] }
  0x48   : > { %v422_v10 = vld [vmem:[#allocation2 + $0x18] sm:$0xff]  ;;  %5904 = vmatprep.subr.msk.mxu0 %vm1003_vm3, %v5405_v9 }
  0x4b   : > { %658 = vrot.lane.b32.xlu1 %v459_v46, %s6290_s26  ;;  %660 = vrot.lane.b32.xlu0 %v460_v47, %s6290_s26 }
  0x4f   : > { %534 = vrot.lane.b32.xlu1 %v6471_v11, %s6289_s25  ;;  %536 = vrot.lane.b32.xlu0 %v6474_v12, %s6289_s25  ;;  %v482_v11 = vld [vmem:[#allocation2 + $0x16a] sm:$0xff] }
  0x53   : > { %662 = vrot.lane.b32.xlu1 %v461_v48, %s6290_s26  ;;  %664 = vrot.lane.b32.xlu0 %v462_v49, %s6290_s26  ;;  %v427_v49 = vld [vmem:[#allocation2 + $0x50] sm:$0xff] }
  0x57   : > { %538 = vrot.lane.b32.xlu1 %v6483_v13, %s6289_s25  ;;  %540 = vrot.lane.b32.xlu0 %v6486_v14, %s6289_s25 }
  0x5b   : > { %666 = vrot.lane.b32.xlu1 %v463_v50, %s6290_s26  ;;  %668 = vrot.lane.b32.xlu0 %v464_v51, %s6290_s26  ;;  %v428_v51 = vld [vmem:[#allocation2 + $0x60] sm:$0xff] }
  0x5f   : > { %542 = vrot.lane.b32.xlu1 %v6489_v15, %s6289_s25  ;;  %544 = vrot.lane.b32.xlu0 %v6499_v16, %s6289_s25  ;;  %v421_v15 = vld [vmem:[#allocation2 + $0x8] sm:$0xff] }
  0x63   : > { %670 = vrot.lane.b32.xlu1 %v465_v52, %s6290_s26  ;;  %672 = vrot.lane.b32.xlu0 %v466_v53, %s6290_s26 }
  0x67   : > { %546 = vrot.lane.b32.xlu1 %v6502_v17, %s6289_s25  ;;  %548 = vrot.lane.b32.xlu0 %v6505_v18, %s6289_s25  ;;  %v483_v18 = vld [vmem:[#allocation2 + $0x172] sm:$0xff] }
  0x6b   : > { %674 = vrot.lane.b32.xlu1 %v467_v54, %s6290_s26  ;;  %676 = vrot.lane.b32.xlu0 %v468_v55, %s6290_s26 }
  0x6f   : > { %550 = vrot.lane.b32.xlu1 %v6514_v19, %s6289_s25  ;;  %552 = vrot.lane.b32.xlu0 %v6517_v20, %s6289_s25 }
  0x73   : > { %678 = vrot.lane.b32.xlu1 %v469_v56, %s6290_s26  ;;  %680 = vrot.lane.b32.xlu0 %v470_v57, %s6290_s26 }
  0x77   : > { %554 = vrot.lane.b32.xlu1 %v6520_v21, %s6289_s25  ;;  %556 = vrot.lane.b32.xlu0 %v6529_v22, %s6289_s25  ;;  %v423_v22 = vld [vmem:[#allocation2 + $0x20] sm:$0xff] }
  0x7b   : > { %682 = vrot.lane.b32.xlu1 %v471_v58, %s6290_s26  ;;  %684 = vrot.lane.b32.xlu0 %v472_v59, %s6290_s26 }
  0x7f   : > { %558 = vrot.lane.b32.xlu1 %v6532_v23, %s6289_s25  ;;  %560 = vrot.lane.b32.xlu0 %v6535_v24, %s6289_s25 }
  0x83   : > { %686 = vrot.lane.b32.xlu1 %v473_v60, %s6290_s26  ;;  %688 = vrot.lane.b32.xlu0 %v474_v61, %s6290_s26  ;;  %v429_v61 = vld [vmem:[#allocation2 + $0x68] sm:$0xff] }
  0x87   : > { %562 = vrot.lane.b32.xlu1 %v6546_v26, %s6289_s25  ;;  %564 = vrot.lane.b32.xlu0 %v6549_v27, %s6289_s25 }
  0x8b   : > { %690 = vrot.lane.b32.xlu1 %v475_v62, %s6290_s26  ;;  %692 = vrot.lane.b32.xlu0 %v476_v63, %s6290_s26  ;;  %v430_v63 = vld [vmem:[#allocation2 + $0x78] sm:$0xff] }
  0x8e   : > { %v517_v4 = vpop.permute.xlu0 %516  ;;  %v523_v5 = vpop.permute.xlu1 %522 }
  0x8f   : > { %566 = vrot.lane.b32.xlu1 %v6558_v31, %s6289_s25  ;;  %568 = vrot.lane.b32.xlu0 %v6561_v32, %s6289_s25  ;;  %v740_v12 = vsel %vm387_vm2, %v420_v8, %v517_v4  ;;  %v743_v26 = vsel %vm387_vm2, %v423_v22, %v523_v5 }
  0x92   : > { %v519_v7 = vpop.permute.xlu0 %518 }
  0x93   : > { %694 = vrot.lane.b32.xlu1 %v477_v0, %s6290_s26  ;;  %696 = vrot.lane.b32.xlu0 %v478_v1, %s6290_s26  ;;  %v741_v19 = vsel %vm387_vm2, %v421_v15, %v519_v7 }
  0x96   : > { %v521_v13 = vpop.permute.xlu0 %520 }
  0x97   : > { %570 = vrot.lane.b32.xlu1 %v6564_v33, %s6289_s25  ;;  %572 = vrot.lane.b32.xlu0 %v6575_v34, %s6289_s25  ;;  %v742_v17 = vsel %vm387_vm2, %v422_v10, %v521_v13 }
  0x9b   : > { %698 = vrot.lane.b32.xlu1 %v479_v2, %s6290_s26  ;;  %700 = vrot.lane.b32.xlu0 %v480_v3, %s6290_s26 }
  0x9f   : > { %574 = vrot.lane.b32.xlu1 %v6580_v36, %s6289_s25  ;;  %576 = vrot.lane.b32.xlu0 %v6585_v37, %s6289_s25 }
  0xa3   : > { %702 = vrot.lane.b32.xlu1 %v481_v6, %s6290_s26  ;;  %704 = vrot.lane.b32.xlu0 %v482_v11, %s6290_s26  ;;  %v432_v11 = vld [vmem:[#allocation2 + $0x90] sm:$0xff] }
  0xa5   : > { %v645_v14 = vpop.permute.xlu1 %644  ;;  %v649_v20 = vpop.permute.xlu0 %648 }
  0xa6   : > { %v773_v16 = vsel %vm772_vm4, %v740_v12, %v645_v14  ;;  %v775_v23 = vsel %vm772_vm4, %v742_v17, %v649_v20 }
  0xa7   : > { %806 = vst.msk [vmem:[#allocation3 + $0x10] sm:$0xff] %vm349_vm1, %v773_v16  ;;  %578 = vrot.lane.b32.xlu1 %v6590_v38, %s6289_s25  ;;  %808 = vst.msk [vmem:[#allocation3 + $0x20] sm:$0xff] %vm349_vm1, %v775_v23  ;;  %v5404_v38 = vld [vmem:[%s8704_s1 + $0x20] sm:$0xff]  ;;  %v434_v23 = vld [vmem:[#allocation2 + $0xa8] sm:$0xff] }
  0xa9   : > { %v647_v21 = vpop.permute.xlu1 %646  ;;  %v525_v27 = vpop.permute.xlu0 %524 }
  0xaa   : > { %v774_v24 = vsel %vm772_vm4, %v741_v19, %v647_v21  ;;  %v744_v31 = vsel %vm387_vm2, %v424_v25, %v525_v27  ;;  %v433_v21 = vld [vmem:[#allocation2 + $0x98] sm:$0xff] }
  0xab   : > { %807 = vst.msk [vmem:[#allocation3 + $0x18] sm:$0xff] %vm349_vm1, %v774_v24  ;;  %706 = vrot.lane.b32.xlu1 %v483_v18, %s6290_s26 }
  0xad   : > { %v651_v28 = vpop.permute.xlu1 %650  ;;  %v653_v32 = vpop.permute.xlu0 %652 }
  0xae   : > { %v776_v29 = vsel %vm772_vm4, %v743_v26, %v651_v28  ;;  %v872_v30 = vld [vmem:[#allocation3 + $0x10] sm:$0xff]  ;;  %v777_v34 = vsel %vm772_vm4, %v744_v31, %v653_v32  ;;  %v6709_v37 = vld [vmem:[#allocation3 + $0x20] sm:$0xff] }
  0xaf   : > { %809 = vst.msk [vmem:[#allocation3 + $0x28] sm:$0xff] %vm349_vm1, %v776_v29  ;;  %5804 = vmatprep.mubr.msk.f32.mxu0 %vm349_vm1, %v872_v30  ;;  %5859 = vmatprep.mubr.msk.f32.mxu1 %vm349_vm1, %v872_v30  ;;  %810 = vst.msk [vmem:[#allocation3 + $0x30] sm:$0xff] %vm349_vm1, %v777_v34 }
  0xb1   : > { %v527_v33 = vpop.permute.xlu1 %526  ;;  %v529_v41 = vpop.permute.xlu0 %528 }
  0xb2   : > { %v873_v36 = vld [vmem:[#allocation3 + $0x18] sm:$0xff]  ;;  %v745_v40 = vsel %vm387_vm2, %v425_v35, %v527_v33  ;;  %v746_v45 = vsel %vm387_vm2, %v426_v39, %v529_v41  ;;  %v435_v33 = vld [vmem:[#allocation2 + $0xb0] sm:$0xff]  ;;  %v436_v35 = vld [vmem:[#allocation2 + $0xc0] sm:$0xff] }
  0xb3   : > { %5805 = vmatmul.mubr.msk.f32.vlgmr.msra.gmra.mxu0 %vm349_vm1, %v873_v36  ;;  %5860 = vmatmul.mubr.msk.f32.gmra.mxu1 %vm349_vm1, %v873_v36 }
  0xb4   : > { %5807 = vmatprep.mubr.msk.f32.mxu0 %vm349_vm1, %v6709_v37  ;;  %5862 = vmatprep.mubr.msk.f32.mxu1 %vm349_vm1, %v6709_v37 }
  0xb5   : > { %v655_v42 = vpop.permute.xlu1 %654  ;;  %5905 = vmatpush3.msk.msra.mxu0 %vm1003_vm3, %v5405_v9  ;;  %v657_v46 = vpop.permute.xlu0 %656  ;;  %v431_v9 = vld [vmem:[#allocation2 + $0x80] sm:$0xff] }
  0xb6   : > { %v778_v43 = vsel %vm772_vm4, %v745_v40, %v655_v42  ;;  %v6724_v44 = vld [vmem:[#allocation3 + $0x28] sm:$0xff]  ;;  %5906 = vmatprep.subr.mxu0 %v5404_v38  ;;  %v779_v48 = vsel %vm772_vm4, %v746_v45, %v657_v46  ;;  %v6733_v50 = vld [vmem:[#allocation3 + $0x30] sm:$0xff] }
  0xb7   : > { %811 = vst.msk [vmem:[#allocation3 + $0x38] sm:$0xff] %vm349_vm1, %v778_v43  ;;  %5808 = vmatmul.mubr.msk.f32.gmra.mxu0 %vm349_vm1, %v6724_v44  ;;  %5863 = vmatmul.mubr.msk.f32.gmra.mxu1 %vm349_vm1, %v6724_v44  ;;  %812 = vst.msk [vmem:[#allocation3 + $0x40] sm:$0xff] %vm349_vm1, %v779_v48 }
  0xb8   : > { %5907 = vmatpush3.msra.mxu0 %v5404_v38  ;;  %5810 = vmatprep.mubr.msk.f32.mxu0 %vm349_vm1, %v6733_v50 }
  0xb9   : > { %v531_v47 = vpop.permute.xlu1 %530  ;;  %5865 = vmatprep.mubr.msk.f32.mxu1 %vm349_vm1, %v6733_v50  ;;  %v533_v53 = vpop.permute.xlu0 %532 }
  0xba   : > { %v747_v52 = vsel %vm387_vm2, %v427_v49, %v531_v47  ;;  %v748_v57 = vsel %vm387_vm2, %v428_v51, %v533_v53  ;;  %v437_v47 = vld [vmem:[#allocation2 + $0xc8] sm:$0xff]  ;;  %v438_v49 = vld [vmem:[#allocation2 + $0xd8] sm:$0xff] }
  0xbd   : > { %v659_v54 = vpop.permute.xlu1 %658  ;;  %v661_v58 = vpop.permute.xlu0 %660 }
  0xbe   : > { %v780_v55 = vsel %vm772_vm4, %v747_v52, %v659_v54  ;;  %v6742_v56 = vld [vmem:[#allocation3 + $0x38] sm:$0xff]  ;;  %v781_v60 = vsel %vm772_vm4, %v748_v57, %v661_v58  ;;  %v6751_v62 = vld [vmem:[#allocation3 + $0x40] sm:$0xff] }
  0xbf   : > { %813 = vst.msk [vmem:[#allocation3 + $0x48] sm:$0xff] %vm349_vm1, %v780_v55  ;;  %5811 = vmatmul.mubr.msk.f32.gmra.mxu0 %vm349_vm1, %v6742_v56  ;;  %5866 = vmatmul.mubr.msk.f32.gmra.mxu1 %vm349_vm1, %v6742_v56  ;;  %814 = vst.msk [vmem:[#allocation3 + $0x50] sm:$0xff] %vm349_vm1, %v781_v60 }
  0xc0   : > { %5813 = vmatprep.mubr.msk.f32.mxu0 %vm349_vm1, %v6751_v62  ;;  %5868 = vmatprep.mubr.msk.f32.mxu1 %vm349_vm1, %v6751_v62 }
  0xc1   : > { %v535_v59 = vpop.permute.xlu1 %534  ;;  %v537_v1 = vpop.permute.xlu0 %536 }
  0xc2   : > { %v749_v0 = vsel %vm387_vm2, %v429_v61, %v535_v59  ;;  %v750_v5 = vsel %vm387_vm2, %v430_v63, %v537_v1  ;;  %v439_v61 = vld [vmem:[#allocation2 + $0xe0] sm:$0xff] }
  0xc5   : > { %v663_v2 = vpop.permute.xlu1 %662  ;;  %v665_v6 = vpop.permute.xlu0 %664 }
  0xc6   : > { %v782_v3 = vsel %vm772_vm4, %v749_v0, %v663_v2  ;;  %v6760_v4 = vld [vmem:[#allocation3 + $0x48] sm:$0xff]  ;;  %v783_v8 = vsel %vm772_vm4, %v750_v5, %v665_v6  ;;  %v6769_v10 = vld [vmem:[#allocation3 + $0x50] sm:$0xff] }
  0xc7   : > { %815 = vst.msk [vmem:[#allocation3 + $0x58] sm:$0xff] %vm349_vm1, %v782_v3  ;;  %5814 = vmatmul.mubr.msk.f32.gmra.mxu0 %vm349_vm1, %v6760_v4  ;;  %5869 = vmatmul.mubr.msk.f32.gmra.mxu1 %vm349_vm1, %v6760_v4  ;;  %816 = vst.msk [vmem:[#allocation3 + $0x60] sm:$0xff] %vm349_vm1, %v783_v8  ;;  %v440_v0 = vld [vmem:[#allocation2 + $0xf0] sm:$0xff] }
  0xc8   : > { %5816 = vmatprep.mubr.msk.f32.mxu0 %vm349_vm1, %v6769_v10  ;;  %5871 = vmatprep.mubr.msk.f32.mxu1 %vm349_vm1, %v6769_v10 }
  0xc9   : > { %v539_v7 = vpop.permute.xlu1 %538  ;;  %v541_v13 = vpop.permute.xlu0 %540 }
  0xca   : > { %v751_v12 = vsel %vm387_vm2, %v431_v9, %v539_v7  ;;  %v752_v17 = vsel %vm387_vm2, %v432_v11, %v541_v13 }
  0xcd   : > { %v667_v14 = vpop.permute.xlu1 %666  ;;  %v669_v18 = vpop.permute.xlu0 %668 }
  0xce   : > { %v784_v15 = vsel %vm772_vm4, %v751_v12, %v667_v14  ;;  %v6778_v16 = vld [vmem:[#allocation3 + $0x58] sm:$0xff]  ;;  %v785_v20 = vsel %vm772_vm4, %v752_v17, %v669_v18  ;;  %v6787_v22 = vld [vmem:[#allocation3 + $0x60] sm:$0xff]  ;;  %v442_v14 = vld [vmem:[#allocation2 + $0x108] sm:$0xff] }
  0xcf   : > { %817 = vst.msk [vmem:[#allocation3 + $0x68] sm:$0xff] %vm349_vm1, %v784_v15  ;;  %5817 = vmatmul.mubr.msk.f32.gmra.mxu0 %vm349_vm1, %v6778_v16  ;;  %5872 = vmatmul.mubr.msk.f32.gmra.mxu1 %vm349_vm1, %v6778_v16  ;;  %818 = vst.msk [vmem:[#allocation3 + $0x70] sm:$0xff] %vm349_vm1, %v785_v20  ;;  %v441_v12 = vld [vmem:[#allocation2 + $0xf8] sm:$0xff] }
  0xd0   : > { %5819 = vmatprep.mubr.msk.f32.mxu0 %vm349_vm1, %v6787_v22  ;;  %5874 = vmatprep.mubr.msk.f32.mxu1 %vm349_vm1, %v6787_v22 }
  0xd1   : > { %v543_v19 = vpop.permute.xlu1 %542  ;;  %v545_v25 = vpop.permute.xlu0 %544 }
  0xd2   : > { %v753_v24 = vsel %vm387_vm2, %v433_v21, %v543_v19  ;;  %v754_v29 = vsel %vm387_vm2, %v434_v23, %v545_v25 }
  0xd5   : > { %v671_v26 = vpop.permute.xlu1 %670  ;;  %v673_v30 = vpop.permute.xlu0 %672 }
  0xd6   : > { %v786_v27 = vsel %vm772_vm4, %v753_v24, %v671_v26  ;;  %v6796_v28 = vld [vmem:[#allocation3 + $0x68] sm:$0xff]  ;;  %v787_v32 = vsel %vm772_vm4, %v754_v29, %v673_v30  ;;  %v6805_v34 = vld [vmem:[#allocation3 + $0x70] sm:$0xff]  ;;  %v444_v29 = vld [vmem:[#allocation2 + $0x120] sm:$0xff] }
  0xd7   : > { %819 = vst.msk [vmem:[#allocation3 + $0x78] sm:$0xff] %vm349_vm1, %v786_v27  ;;  %5820 = vmatmul.mubr.msk.f32.gmra.mxu0 %vm349_vm1, %v6796_v28  ;;  %5875 = vmatmul.mubr.msk.f32.gmra.mxu1 %vm349_vm1, %v6796_v28  ;;  %820 = vst.msk [vmem:[#allocation3 + $0x80] sm:$0xff] %vm349_vm1, %v787_v32  ;;  %v443_v26 = vld [vmem:[#allocation2 + $0x110] sm:$0xff] }
  0xd8   : > { %5822 = vmatprep.mubr.msk.f32.mxu0 %vm349_vm1, %v6805_v34  ;;  %5877 = vmatprep.mubr.msk.f32.mxu1 %vm349_vm1, %v6805_v34 }
  0xd9   : > { %v547_v31 = vpop.permute.xlu1 %546  ;;  %v549_v38 = vpop.permute.xlu0 %548 }
  0xda   : > { %v755_v36 = vsel %vm387_vm2, %v435_v33, %v547_v31  ;;  %v756_v42 = vsel %vm387_vm2, %v436_v35, %v549_v38 }
  0xdd   : > { %v675_v39 = vpop.permute.xlu1 %674  ;;  %v677_v43 = vpop.permute.xlu0 %676 }
  0xde   : > { %v788_v40 = vsel %vm772_vm4, %v755_v36, %v675_v39  ;;  %v6814_v41 = vld [vmem:[#allocation3 + $0x78] sm:$0xff]  ;;  %v789_v46 = vsel %vm772_vm4, %v756_v42, %v677_v43  ;;  %v6823_v48 = vld [vmem:[#allocation3 + $0x80] sm:$0xff]  ;;  %v445_v42 = vld [vmem:[#allocation2 + $0x128] sm:$0xff] }
  0xdf   : > { %821 = vst.msk [vmem:[#allocation3 + $0x88] sm:$0xff] %vm349_vm1, %v788_v40  ;;  %5823 = vmatmul.mubr.msk.f32.gmra.mxu0 %vm349_vm1, %v6814_v41  ;;  %5878 = vmatmul.mubr.msk.f32.gmra.mxu1 %vm349_vm1, %v6814_v41  ;;  %822 = vst.msk [vmem:[#allocation3 + $0x90] sm:$0xff] %vm349_vm1, %v789_v46 }
  0xe0   : > { %5825 = vmatprep.mubr.msk.f32.mxu0 %vm349_vm1, %v6823_v48  ;;  %5880 = vmatprep.mubr.msk.f32.mxu1 %vm349_vm1, %v6823_v48 }
  0xe1   : > { %v551_v45 = vpop.permute.xlu1 %550  ;;  %v553_v52 = vpop.permute.xlu0 %552 }
  0xe2   : > { %v757_v51 = vsel %vm387_vm2, %v437_v47, %v551_v45  ;;  %v758_v57 = vsel %vm387_vm2, %v438_v49, %v553_v52  ;;  %v446_v45 = vld [vmem:[#allocation2 + $0x138] sm:$0xff] }
  0xe5   : > { %v679_v53 = vpop.permute.xlu1 %678  ;;  %v681_v58 = vpop.permute.xlu0 %680 }
  0xe6   : > { %v790_v54 = vsel %vm772_vm4, %v757_v51, %v679_v53  ;;  %v6832_v55 = vld [vmem:[#allocation3 + $0x88] sm:$0xff]  ;;  %v791_v60 = vsel %vm772_vm4, %v758_v57, %v681_v58  ;;  %v6841_v63 = vld [vmem:[#allocation3 + $0x90] sm:$0xff] }
  0xe7   : > { %823 = vst.msk [vmem:[#allocation3 + $0x98] sm:$0xff] %vm349_vm1, %v790_v54  ;;  %5826 = vmatmul.mubr.msk.f32.gmra.mxu0 %vm349_vm1, %v6832_v55  ;;  %5881 = vmatmul.mubr.msk.f32.gmra.mxu1 %vm349_vm1, %v6832_v55  ;;  %824 = vst.msk [vmem:[#allocation3 + $0xa0] sm:$0xff] %vm349_vm1, %v791_v60 }
  0xe8   : > { %5828 = vmatprep.mubr.msk.f32.mxu0 %vm349_vm1, %v6841_v63  ;;  %5883 = vmatprep.mubr.msk.f32.mxu1 %vm349_vm1, %v6841_v63 }
  0xe9   : > { %v555_v59 = vpop.permute.xlu1 %554  ;;  %v557_v2 = vpop.permute.xlu0 %556 }
  0xea   : > { %v759_v1 = vsel %vm387_vm2, %v439_v61, %v555_v59  ;;  %v760_v7 = vsel %vm387_vm2, %v440_v0, %v557_v2  ;;  %v447_v59 = vld [vmem:[#allocation2 + $0x140] sm:$0xff]  ;;  %v448_v61 = vld [vmem:[#allocation2 + $0x150] sm:$0xff] }
  0xed   : > { %v683_v3 = vpop.permute.xlu1 %682  ;;  %v685_v8 = vpop.permute.xlu0 %684 }
  0xee   : > { %v792_v5 = vsel %vm772_vm4, %v759_v1, %v683_v3  ;;  %v6850_v6 = vld [vmem:[#allocation3 + $0x98] sm:$0xff]  ;;  %v793_v11 = vsel %vm772_vm4, %v760_v7, %v685_v8  ;;  %v6859_v13 = vld [vmem:[#allocation3 + $0xa0] sm:$0xff] }
  0xef   : > { %825 = vst.msk [vmem:[#allocation3 + $0xa8] sm:$0xff] %vm349_vm1, %v792_v5  ;;  %5829 = vmatmul.mubr.msk.f32.gmra.mxu0 %vm349_vm1, %v6850_v6  ;;  %5884 = vmatmul.mubr.msk.f32.gmra.mxu1 %vm349_vm1, %v6850_v6  ;;  %826 = vst.msk [vmem:[#allocation3 + $0xb0] sm:$0xff] %vm349_vm1, %v793_v11 }
  0xf0   : > { %5831 = vmatprep.mubr.msk.f32.mxu0 %vm349_vm1, %v6859_v13  ;;  %5886 = vmatprep.mubr.msk.f32.mxu1 %vm349_vm1, %v6859_v13 }
  0xf1   : > { %v559_v9 = vpop.permute.xlu1 %558  ;;  %v561_v17 = vpop.permute.xlu0 %560 }
  0xf2   : > { %v761_v15 = vsel %vm387_vm2, %v441_v12, %v559_v9  ;;  %v762_v21 = vsel %vm387_vm2, %v442_v14, %v561_v17  ;;  %v449_v12 = vld [vmem:[#allocation2 + $0x158] sm:$0xff] }
  0xf5   : > { %v687_v18 = vpop.permute.xlu1 %686  ;;  %v689_v23 = vpop.permute.xlu0 %688 }
  0xf6   : > { %v794_v19 = vsel %vm772_vm4, %v761_v15, %v687_v18  ;;  %v6868_v20 = vld [vmem:[#allocation3 + $0xa8] sm:$0xff]  ;;  %v795_v25 = vsel %vm772_vm4, %v762_v21, %v689_v23  ;;  %v6877_v27 = vld [vmem:[#allocation3 + $0xb0] sm:$0xff] }
  0xf7   : > { %827 = vst.msk [vmem:[#allocation3 + $0xb8] sm:$0xff] %vm349_vm1, %v794_v19  ;;  %5832 = vmatmul.mubr.msk.f32.gmra.mxu0 %vm349_vm1, %v6868_v20  ;;  %5887 = vmatmul.mubr.msk.f32.gmra.mxu1 %vm349_vm1, %v6868_v20  ;;  %828 = vst.msk [vmem:[#allocation3 + $0xc0] sm:$0xff] %vm349_vm1, %v795_v25  ;;  %v450_v15 = vld [vmem:[#allocation2 + $0x168] sm:$0xff] }
  0xf8   : > { %5834 = vmatprep.mubr.msk.f32.mxu0 %vm349_vm1, %v6877_v27  ;;  %5889 = vmatprep.mubr.msk.f32.mxu1 %vm349_vm1, %v6877_v27 }
  0xf9   : > { %v563_v24 = vpop.permute.xlu1 %562  ;;  %v565_v31 = vpop.permute.xlu0 %564 }
  0xfa   : > { %v763_v30 = vsel %vm387_vm2, %v443_v26, %v563_v24  ;;  %v764_v36 = vsel %vm387_vm2, %v444_v29, %v565_v31 }
  0xfd   : > { %v691_v32 = vpop.permute.xlu1 %690  ;;  %v693_v38 = vpop.permute.xlu0 %692 }
  0xfe   : > { %v796_v33 = vsel %vm772_vm4, %v763_v30, %v691_v32  ;;  %v6886_v35 = vld [vmem:[#allocation3 + $0xb8] sm:$0xff]  ;;  %v797_v40 = vsel %vm772_vm4, %v764_v36, %v693_v38  ;;  %v6895_v43 = vld [vmem:[#allocation3 + $0xc0] sm:$0xff]  ;;  %v451_v30 = vld [vmem:[#allocation2 + $0x170] sm:$0xff] }
  0xff   : > { %829 = vst.msk [vmem:[#allocation3 + $0xc8] sm:$0xff] %vm349_vm1, %v796_v33  ;;  %5835 = vmatmul.mubr.msk.f32.gmra.mxu0 %vm349_vm1, %v6886_v35  ;;  %5890 = vmatmul.mubr.msk.f32.gmra.mxu1 %vm349_vm1, %v6886_v35  ;;  %830 = vst.msk [vmem:[#allocation3 + $0xd0] sm:$0xff] %vm349_vm1, %v797_v40 }
 0x100   : > { %5837 = vmatprep.mubr.msk.f32.mxu0 %vm349_vm1, %v6895_v43  ;;  %5892 = vmatprep.mubr.msk.f32.mxu1 %vm349_vm1, %v6895_v43 }
 0x101   : > { %v567_v39 = vpop.permute.xlu1 %566  ;;  %v569_v47 = vpop.permute.xlu0 %568 }
 0x102   : > { %v765_v46 = vsel %vm387_vm2, %v445_v42, %v567_v39  ;;  %v766_v53 = vsel %vm387_vm2, %v446_v45, %v569_v47 }
 0x105   : > { %v695_v49 = vpop.permute.xlu1 %694  ;;  %v697_v54 = vpop.permute.xlu0 %696 }
 0x106   : > { %v798_v51 = vsel %vm772_vm4, %v765_v46, %v695_v49  ;;  %v6904_v52 = vld [vmem:[#allocation3 + $0xc8] sm:$0xff]  ;;  %v799_v58 = vsel %vm772_vm4, %v766_v53, %v697_v54  ;;  %v6913_v60 = vld [vmem:[#allocation3 + $0xd0] sm:$0xff] }
 0x107   : > { %831 = vst.msk [vmem:[#allocation3 + $0xd8] sm:$0xff] %vm349_vm1, %v798_v51  ;;  %5838 = vmatmul.mubr.msk.f32.gmra.mxu0 %vm349_vm1, %v6904_v52  ;;  %5893 = vmatmul.mubr.msk.f32.gmra.mxu1 %vm349_vm1, %v6904_v52  ;;  %832 = vst.msk [vmem:[#allocation3 + $0xe0] sm:$0xff] %vm349_vm1, %v799_v58 }
 0x108   : > { %5840 = vmatprep.mubr.msk.f32.mxu0 %vm349_vm1, %v6913_v60  ;;  %5895 = vmatprep.mubr.msk.f32.mxu1 %vm349_vm1, %v6913_v60 }
 0x109   : > { %v571_v57 = vpop.permute.xlu1 %570  ;;  %v573_v1 = vpop.permute.xlu0 %572 }
 0x10a   : > { %v767_v0 = vsel %vm387_vm2, %v447_v59, %v571_v57  ;;  %v768_v7 = vsel %vm387_vm2, %v448_v61, %v573_v1 }
 0x10d   : > { %v699_v2 = vpop.permute.xlu1 %698  ;;  %v701_v8 = vpop.permute.xlu0 %700 }
 0x10e   : > { %v800_v3 = vsel %vm772_vm4, %v767_v0, %v699_v2  ;;  %v6922_v5 = vld [vmem:[#allocation3 + $0xd8] sm:$0xff]  ;;  %v801_v11 = vsel %vm772_vm4, %v768_v7, %v701_v8  ;;  %v898_v14 = vld [vmem:[#allocation3 + $0xe0] sm:$0xff] }
 0x10f   : > { %833 = vst.msk [vmem:[#allocation3 + $0xe8] sm:$0xff] %vm349_vm1, %v800_v3  ;;  %5841 = vmatmul.mubr.msk.f32.gmra.mxu0 %vm349_vm1, %v6922_v5  ;;  %5896 = vmatmul.mubr.msk.f32.gmra.mxu1 %vm349_vm1, %v6922_v5  ;;  %834 = vst.msk [vmem:[#allocation3 + $0xf0] sm:$0xff] %vm349_vm1, %v801_v11 }
 0x110   : > { %5843 = vmatprep.mubr.msk.f32.mxu0 %vm349_vm1, %v898_v14  ;;  %5898 = vmatprep.mubr.msk.f32.mxu1 %vm349_vm1, %v898_v14 }
 0x111   : > { %v575_v9 = vpop.permute.xlu1 %574  ;;  %v577_v18 = vpop.permute.xlu0 %576 }
 0x112   : > { %v769_v17 = vsel %vm387_vm2, %v449_v12, %v575_v9  ;;  %v770_v24 = vsel %vm387_vm2, %v450_v15, %v577_v18  ;;  %v7074_v18 = vld [vmem:[%s8705_s2] ss:$0 sm:$0xff] }
 0x115   : > { %v703_v19 = vpop.permute.xlu1 %702  ;;  %v705_v25 = vpop.permute.xlu0 %704 }
 0x116   : > { %v802_v21 = vsel %vm772_vm4, %v769_v17, %v703_v19  ;;  %v899_v23 = vld [vmem:[#allocation3 + $0xe8] sm:$0xff]  ;;  %v803_v29 = vsel %vm772_vm4, %v770_v24, %v705_v25  ;;  %v900_v31 = vld [vmem:[#allocation3 + $0xf0] sm:$0xff] }
 0x117   : > { %835 = vst.msk [vmem:[#allocation3 + $0xf8] sm:$0xff] %vm349_vm1, %v802_v21  ;;  %5844 = vmatmul.mubr.msk.f32.gmra.mxu0 %vm349_vm1, %v899_v23  ;;  %5899 = vmatmul.mubr.msk.f32.gmra.mxu1 %vm349_vm1, %v899_v23  ;;  %836 = vst.msk [vmem:[#allocation3 + $0x100] sm:$0xff] %vm349_vm1, %v803_v29 }
 0x118   : > { %5846 = vmatprep.mubr.msk.f32.mxu0 %vm349_vm1, %v900_v31  ;;  %5901 = vmatprep.mubr.msk.f32.mxu1 %vm349_vm1, %v900_v31 }
 0x119   : > { %v579_v26 = vpop.permute.xlu1 %578 }
 0x11a   : > { %v771_v32 = vsel %vm387_vm2, %v451_v30, %v579_v26 }
 0x11d   : > { %v707_v33 = vpop.permute.xlu1 %706 }
 0x11e   : > { %v804_v36 = vsel %vm772_vm4, %v771_v32, %v707_v33  ;;  %v901_v38 = vld [vmem:[#allocation3 + $0xf8] sm:$0xff]  ;;  %v902_v39 = vld [vmem:[#allocation3 + $0x100] sm:$0xff] }
 0x11f   : > { %837 = vst.msk [vmem:[#allocation3 + $0x108] sm:$0xff] %vm349_vm1, %v804_v36  ;;  %5847 = vmatmul.mubr.msk.f32.gmra.mxu0 %vm349_vm1, %v901_v38  ;;  %5902 = vmatmul.mubr.msk.f32.gmra.mxu1 %vm349_vm1, %v901_v38 }
 0x120   : > { %5849 = vmatprep.mubr.msk.f32.mxu0 %vm349_vm1, %v902_v39 }
 0x126   : > { %v903_v40 = vld [vmem:[#allocation3 + $0x108] sm:$0xff] }
 0x127   : > { %5850 = vmatmul.mubr.msk.f32.gmra.mxu0 %vm349_vm1, %v903_v40 }
 0x128   : > { %5908 = vmatprep.mubr.msk.f32.mxu0 %vm349_vm1, %v6709_v37  ;;  %v1587_v37 = vld [vmem:[#allocation3 + $0x110] sm:$0xff] }
 0x12b   : > { %5909 = vmatmul.mubr.msk.f32.vlgmr.msra.gmra.mxu0 %vm349_vm1, %v6724_v44  ;;  %v1588_v44 = vld [vmem:[#allocation3 + $0x118] sm:$0xff] }
 0x12c   : > { %5911 = vmatprep.mubr.msk.f32.mxu0 %vm349_vm1, %v6733_v50 }
 0x12f   : > { %5912 = vmatmul.mubr.msk.f32.gmra.mxu0 %vm349_vm1, %v6742_v56 }
 0x130   : > { %5914 = vmatprep.mubr.msk.f32.mxu0 %vm349_vm1, %v6751_v62 }
 0x133   : > { %5915 = vmatmul.mubr.msk.f32.gmra.mxu0 %vm349_vm1, %v6760_v4 }
 0x134   : > { %5917 = vmatprep.mubr.msk.f32.mxu0 %vm349_vm1, %v6769_v10 }
 0x137   : > { %5918 = vmatmul.mubr.msk.f32.gmra.mxu0 %vm349_vm1, %v6778_v16 }
 0x138   : > { %5920 = vmatprep.mubr.msk.f32.mxu0 %vm349_vm1, %v6787_v22 }
 0x13b   : > { %5921 = vmatmul.mubr.msk.f32.gmra.mxu0 %vm349_vm1, %v6796_v28 }
 0x13c   : > { %5923 = vmatprep.mubr.msk.f32.mxu0 %vm349_vm1, %v6805_v34 }
 0x13f   : > { %5924 = vmatmul.mubr.msk.f32.gmra.mxu0 %vm349_vm1, %v6814_v41 }
 0x140   : > { %5926 = vmatprep.mubr.msk.f32.mxu0 %vm349_vm1, %v6823_v48 }
 0x143   : > { %5927 = vmatmul.mubr.msk.f32.gmra.mxu0 %vm349_vm1, %v6832_v55 }
 0x144   : > { %5929 = vmatprep.mubr.msk.f32.mxu0 %vm349_vm1, %v6841_v63 }
 0x147   : > { %5930 = vmatmul.mubr.msk.f32.gmra.mxu0 %vm349_vm1, %v6850_v6 }
 0x148   : > { %5932 = vmatprep.mubr.msk.f32.mxu0 %vm349_vm1, %v6859_v13 }
 0x14b   : > { %5933 = vmatmul.mubr.msk.f32.gmra.mxu0 %vm349_vm1, %v6868_v20 }
 0x14c   : > { %5935 = vmatprep.mubr.msk.f32.mxu0 %vm349_vm1, %v6877_v27 }
 0x14f   : > { %5936 = vmatmul.mubr.msk.f32.gmra.mxu0 %vm349_vm1, %v6886_v35 }
 0x150   : > { %5938 = vmatprep.mubr.msk.f32.mxu0 %vm349_vm1, %v6895_v43  ;;  %v5858_v43 = vpop.f32.mrf.mxu1 }
 0x152   : > { %v1397_v46 = vpop.f32.mrf.mxu1 }
 0x153   : > { %5939 = vmatmul.mubr.msk.f32.gmra.mxu0 %vm349_vm1, %v6904_v52 }
 0x154   : > { %5941 = vmatprep.mubr.msk.f32.mxu0 %vm349_vm1, %v6913_v60 }
 0x157   : > { %5942 = vmatmul.mubr.msk.f32.gmra.mxu0 %vm349_vm1, %v6922_v5 }
 0x158   : > { %5944 = vmatprep.mubr.msk.f32.mxu0 %vm349_vm1, %v898_v14 }
 0x15b   : > { %5945 = vmatmul.mubr.msk.f32.gmra.mxu0 %vm349_vm1, %v899_v23 }
 0x15c   : > { %5947 = vmatprep.mubr.msk.f32.mxu0 %vm349_vm1, %v900_v31 }
 0x15f   : > { %5948 = vmatmul.mubr.msk.f32.gmra.mxu0 %vm349_vm1, %v901_v38  ;;  %v5441_v38 = vld [vmem:[%s8704_s1 + $0x38] sm:$0xf] }
 0x160   : > { %5950 = vmatprep.mubr.msk.f32.mxu0 %vm349_vm1, %v902_v39  ;;  %6008 = vmatprep.subr.msk.mxu0 %vm1003_vm3, %v5441_v38 }
 0x161   : > { %6009 = vmatpush3.msk.msra.mxu0 %vm1003_vm3, %v5441_v38 }
 0x163   : > { %5951 = vmatmul.mubr.msk.f32.gmra.mxu0 %vm349_vm1, %v903_v40 }
 0x164   : > { %5953 = vmatprep.mubr.msk.f32.mxu0 %vm349_vm1, %v1587_v37 }
 0x167   : > { %5954 = vmatmul.mubr.msk.f32.gmra.mxu0 %vm349_vm1, %v1588_v44 }
 0x173   : > { %v5806_v50 = vpop.f32.mrf.mxu0  ;;  %v5861_v49 = vpop.f32.mrf.mxu1 }
 0x174   : > { %v1403_v14 = vadd.f32 %v5858_v43, %v5806_v50 }
 0x175   : > { %v1073_v56 = vpop.f32.mrf.mxu0  ;;  %v1407_v53 = vpop.f32.mrf.mxu1 }
 0x176   : > { %v1398_v19 = vadd.f32 %v1397_v46, %v1073_v56  ;;  %v2465_v46 = vld [vmem:[#allocation3] sm:$0xff] }
 0x177   : > { %v5809_v62 = vpop.f32.mrf.mxu0  ;;  %v5864_v57 = vpop.f32.mrf.mxu1  ;;  %6012 = vmatprep.mubr.msk.f32.mxu0 %vm349_vm1, %v2465_v46 }
 0x178   : > { %v1413_v25 = vadd.f32 %v5861_v49, %v5809_v62  ;;  %v5440_v62 = vld [vmem:[%s8704_s1 + $0x30] sm:$0xff] }
 0x179   : > { %v1083_v4 = vpop.f32.mrf.mxu0  ;;  %v1417_v59 = vpop.f32.mrf.mxu1  ;;  %6010 = vmatprep.subr.mxu0 %v5440_v62 }
 0x17a   : > { %v1408_v31 = vadd.f32 %v1407_v53, %v1083_v4  ;;  %6011 = vmatpush3.msra.mxu0 %v5440_v62 }
 0x17f   : > { %v5812_v10 = vpop.f32.mrf.mxu0  ;;  %v5867_v61 = vpop.f32.mrf.mxu1 }
 0x180   : > { %v1423_v37 = vadd.f32 %v5864_v57, %v5812_v10 }
 0x181   : > { %v7007_v16 = vpop.f32.mrf.mxu0  ;;  %v7051_v1 = vpop.f32.mrf.mxu1 }
 0x182   : > { %v1418_v10 = vadd.f32 %v1417_v59, %v7007_v16 }
 0x187   : > { %v7009_v22 = vpop.f32.mrf.mxu0  ;;  %v7055_v3 = vpop.f32.mrf.mxu1 }
 0x188   : > { %v1433_v16 = vadd.f32 %v5867_v61, %v7009_v22 }
 0x189   : > { %v7011_v28 = vpop.f32.mrf.mxu0  ;;  %v7059_v7 = vpop.f32.mrf.mxu1 }
 0x18a   : > { %v1428_v22 = vadd.f32 %v7051_v1, %v7011_v28 }
 0x18f   : > { %v7013_v34 = vpop.f32.mrf.mxu0  ;;  %v7063_v9 = vpop.f32.mrf.mxu1 }
 0x190   : > { %v1443_v38 = vadd.f32 %v7055_v3, %v7013_v34 }
 0x191   : > { %v7015_v41 = vpop.f32.mrf.mxu0  ;;  %v7069_v15 = vpop.f32.mrf.mxu1 }
 0x197   : > { %v7017_v48 = vpop.f32.mrf.mxu0  ;;  %v7076_v23 = vpop.f32.mrf.mxu1 }
 0x198   : > { %v1453_v46 = vadd.f32 %v7063_v9, %v7017_v48 }
 0x199   : > { %v7019_v55 = vpop.f32.mrf.mxu0  ;;  %v7083_v39 = vpop.f32.mrf.mxu1 }
 0x19f   : > { %v7021_v63 = vpop.f32.mrf.mxu0  ;;  %v7093_v4 = vpop.f32.mrf.mxu1 }
 0x1a1   : > { %v7023_v6 = vpop.f32.mrf.mxu0 }
 0x1a7   : > { %v7025_v13 = vpop.f32.mrf.mxu0 }
 0x1a9   : > { %v7027_v20 = vpop.f32.mrf.mxu0 }
 0x1af   : > { %v7029_v27 = vpop.f32.mrf.mxu0 }
 0x1b1   : > { %v7031_v35 = vpop.f32.mrf.mxu0 }
 0x1b7   : > { %v7033_v42 = vpop.f32.mrf.mxu0 }
 0x1b9   : > { %v7035_v45 = vpop.f32.mrf.mxu0 }
 0x1bf   : > { %v7037_v47 = vpop.f32.mrf.mxu0 }
 0x1c1   : > { %v7039_v51 = vpop.f32.mrf.mxu0 }
 0x1c7   : > { %v7041_v52 = vpop.f32.mrf.mxu0 }
 0x1c9   : > { %v7043_v54 = vpop.f32.mrf.mxu0 }
 0x1cf   : > { %v7045_v58 = vpop.f32.mrf.mxu0 }
 0x1d1   : > { %v7047_v60 = vpop.f32.mrf.mxu0 }
 0x1d7   : > { %v7049_v0 = vpop.f32.mrf.mxu0 }
 0x1d9   : > { %v7053_v2 = vpop.f32.mrf.mxu0 }
 0x1df   : > { %v7057_v5 = vpop.f32.mrf.mxu0 }
 0x1e1   : > { %v7061_v8 = vpop.f32.mrf.mxu0 }
 0x1e7   : > { %v7065_v11 = vpop.f32.mrf.mxu0 }
 0x1e9   : > { %v7067_v12 = vpop.f32.mrf.mxu0 }
 0x1eb   : > { %v5910_v17 = vpop.f32.mrf.mxu0 }
 0x1ec   : > { %v1917_v21 = vadd.f32 %v5910_v17, %v1403_v14  ;;  %v5443_v14 = vld [vmem:[%s8704_s1 + $0x48] sm:$0xf]  ;;  %v2466_v17 = vld [vmem:[#allocation3 + $0x8] sm:$0xff] }
 0x1ed   : > { %v1757_v24 = vpop.f32.mrf.mxu0  ;;  %5956 = vmatprep.subr.msk.mxu1 %vm1003_vm3, %v5443_v14  ;;  %6013 = vmatmul.mubr.msk.f32.vlgmr.msra.gmra.mxu0 %vm349_vm1, %v2466_v17 }
 0x1ee   : > { %v1954_v26 = vadd.f32 %v7074_v18, %v1917_v21  ;;  %v1916_v29 = vadd.f32 %v1757_v24, %v1398_v19  ;;  %5957 = vmatpush3.msk.msra.mxu1 %vm1003_vm3, %v5443_v14 }
 0x1ef   : > { %v5913_v30 = vpop.f32.mrf.mxu0 }
 0x1f0   : > { %v1986_v32 = vmax.f32 %v1954_v26, 0.0  ;;  %v1953_v33 = vadd.f32 %v7074_v18, %v1916_v29  ;;  %v1919_v36 = vadd.f32 %v5913_v30, %v1413_v25  ;;  %v5442_v25 = vld [vmem:[%s8704_s1 + $0x40] sm:$0xff]  ;;  %v7112_v26 = vpop.f32.mrf.mxu1 }
 0x1f1   : > { %v1767_v40 = vpop.f32.mrf.mxu0  ;;  %5958 = vmatprep.subr.mxu1 %v5442_v25 }
 0x1f2   : > { %2018 = vst.msk [vmem:[#allocation2 + $0x9] sm:$0xff] %vm387_vm2, %v1986_v32  ;;  %v1985_v44 = vmax.f32 %v1953_v33, 0.0  ;;  %v1956_v50 = vadd.f32 %v7074_v18, %v1919_v36  ;;  %v1918_v56 = vadd.f32 %v1767_v40, %v1408_v31  ;;  %2147 = vrot.lane.b32.xlu1 %v1986_v32, %s6289_s25  ;;  %v7120_v32 = vpop.f32.mrf.mxu1  ;;  %5959 = vmatpush3.msra.mxu1 %v5442_v25 }
 0x1f3   : > { %v5916_v43 = vpop.f32.mrf.mxu0 }
 0x1f4   : > { %2017 = vst.msk [vmem:[#allocation2 + $0x1] sm:$0xff] %vm387_vm2, %v1985_v44  ;;  %v1988_v49 = vmax.f32 %v1956_v50, 0.0  ;;  %v1955_v53 = vadd.f32 %v7074_v18, %v1918_v56  ;;  %v1921_v57 = vadd.f32 %v5916_v43, %v1423_v37  ;;  %2145 = vrot.lane.b32.xlu0 %v1985_v44, %s6289_s25  ;;  %v1438_v50 = vadd.f32 %v7059_v7, %v7015_v41  ;;  %v1477_v34 = vpop.f32.mrf.mxu1 }
 0x1f5   : > { %v1777_v19 = vpop.f32.mrf.mxu0 }
 0x1f6   : > { %2020 = vst.msk [vmem:[#allocation2 + $0x21] sm:$0xff] %vm387_vm2, %v1988_v49  ;;  %v1987_v59 = vmax.f32 %v1955_v53, 0.0  ;;  %v1958_v21 = vadd.f32 %v7074_v18, %v1921_v57  ;;  %v1920_v24 = vadd.f32 %v1777_v19, %v1418_v10  ;;  %2151 = vrot.lane.b32.xlu1 %v1988_v49, %s6289_s25  ;;  %v5885_v7 = vpop.f32.mrf.mxu1  ;;  %v1448_v57 = vadd.f32 %v7069_v15, %v7019_v55 }
 0x1f7   : > { %v5919_v29 = vpop.f32.mrf.mxu0 }
 0x1f8   : > { %2019 = vst.msk [vmem:[#allocation2 + $0x19] sm:$0xff] %vm387_vm2, %v1987_v59  ;;  %v1990_v61 = vmax.f32 %v1958_v21, 0.0  ;;  %v1957_v30 = vadd.f32 %v7074_v18, %v1920_v24  ;;  %v1923_v31 = vadd.f32 %v5919_v29, %v1433_v16  ;;  %2149 = vrot.lane.b32.xlu0 %v1987_v59, %s6289_s25  ;;  %v1463_v16 = vadd.f32 %v7076_v23, %v7021_v63  ;;  %v1487_v21 = vpop.f32.mrf.mxu1 }
 0x1f9   : > { %v1787_v33 = vpop.f32.mrf.mxu0  ;;  %v2082_v36 = vld [vmem:[#allocation2 + $0xa] sm:$0xff]  ;;  %v1458_v29 = vadd.f32 %v7083_v39, %v7023_v6 }
 0x1fa   : > { %2022 = vst.msk [vmem:[#allocation2 + $0x39] sm:$0xff] %vm387_vm2, %v1990_v61  ;;  %v1989_v28 = vmax.f32 %v1957_v30, 0.0  ;;  %v1960_v1 = vadd.f32 %v7074_v18, %v1923_v31  ;;  %v1922_v40 = vadd.f32 %v1787_v33, %v1428_v22  ;;  %2275 = vrot.lane.b32.xlu1 %v2082_v36, %s6290_s26  ;;  %v1473_v31 = vadd.f32 %v7093_v4, %v7025_v13 }
 0x1fb   : > { %v5922_v37 = vpop.f32.mrf.mxu0  ;;  %v2081_v44 = vld [vmem:[#allocation2 + $0x2] sm:$0xff] }
 0x1fc   : > { %2021 = vst.msk [vmem:[#allocation2 + $0x31] sm:$0xff] %vm387_vm2, %v1989_v28  ;;  %v1992_v56 = vmax.f32 %v1960_v1, 0.0  ;;  %v1959_v62 = vadd.f32 %v7074_v18, %v1922_v40  ;;  %v1925_v43 = vadd.f32 %v5922_v37, %v1443_v38  ;;  %2273 = vrot.lane.b32.xlu0 %v2081_v44, %s6290_s26  ;;  %v1468_v38 = vadd.f32 %v7112_v26, %v7027_v20 }
 0x1fd   : > { %v1797_v3 = vpop.f32.mrf.mxu0  ;;  %v2084_v19 = vld [vmem:[#allocation2 + $0x22] sm:$0xff]  ;;  %v1483_v44 = vadd.f32 %v7120_v32, %v7029_v27 }
 0x1fe   : > { %2024 = vst.msk [vmem:[#allocation2 + $0x51] sm:$0xff] %vm387_vm2, %v1992_v56  ;;  %v1991_v10 = vmax.f32 %v1959_v62, 0.0  ;;  %v7136_v49 = vadd.f32 %v7074_v18, %v1925_v43  ;;  %v1924_v41 = vadd.f32 %v1797_v3, %v1438_v50  ;;  %2155 = vrot.lane.b32.xlu1 %v1990_v61, %s6289_s25  ;;  %v5888_v61 = vpop.f32.mrf.mxu1  ;;  %v1478_v3 = vadd.f32 %v1477_v34, %v7031_v35 }
 0x1ff   : > { %v5925_v53 = vpop.f32.mrf.mxu0  ;;  %v2083_v25 = vld [vmem:[#allocation2 + $0x1a] sm:$0xff] }
 0x200   : > { %2023 = vst.msk [vmem:[#allocation2 + $0x49] sm:$0xff] %vm387_vm2, %v1991_v10  ;;  %v1994_v14 = vmax.f32 %v7136_v49, 0.0  ;;  %v7144_v48 = vadd.f32 %v7074_v18, %v1924_v41  ;;  %v1927_v9 = vadd.f32 %v5925_v53, %v1453_v46  ;;  %2153 = vrot.lane.b32.xlu0 %v1989_v28, %s6289_s25  ;;  %v1497_v1 = vpop.f32.mrf.mxu1  ;;  %v1493_v49 = vadd.f32 %v5885_v7, %v7033_v42 }
 0x201   : > { %v1807_v17 = vpop.f32.mrf.mxu0  ;;  %v2086_v37 = vld [vmem:[#allocation2 + $0x3a] sm:$0xff] }
 0x202   : > { %2026 = vst.msk [vmem:[#allocation2 + $0x69] sm:$0xff] %vm387_vm2, %v1994_v14  ;;  %v1993_v59 = vmax.f32 %v7144_v48, 0.0  ;;  %v7152_v55 = vadd.f32 %v7074_v18, %v1927_v9  ;;  %v1926_v15 = vadd.f32 %v1807_v17, %v1448_v57  ;;  %2279 = vrot.lane.b32.xlu1 %v2084_v19, %s6290_s26  ;;  %v1488_v48 = vadd.f32 %v1487_v21, %v7035_v45 }
 0x203   : > { %v5928_v24 = vpop.f32.mrf.mxu0  ;;  %v2085_v43 = vld [vmem:[#allocation2 + $0x32] sm:$0xff] }
 0x204   : > { %2025 = vst.msk [vmem:[#allocation2 + $0x61] sm:$0xff] %vm387_vm2, %v1993_v59  ;;  %v1996_v63 = vmax.f32 %v7152_v55, 0.0  ;;  %v7160_v23 = vadd.f32 %v7074_v18, %v1926_v15  ;;  %v1929_v22 = vadd.f32 %v5928_v24, %v1463_v16  ;;  %2277 = vrot.lane.b32.xlu0 %v2083_v25, %s6290_s26 }
 0x205   : > { %v1817_v30 = vpop.f32.mrf.mxu0  ;;  %v2088_v16 = vld [vmem:[#allocation2 + $0x52] sm:$0xff] }
 0x206   : > { %2028 = vst.msk [vmem:[#allocation2 + $0x81] sm:$0xff] %vm387_vm2, %v1996_v63  ;;  %v1995_v6 = vmax.f32 %v7160_v23, 0.0  ;;  %v7170_v39 = vadd.f32 %v7074_v18, %v1929_v22  ;;  %v1928_v33 = vadd.f32 %v1817_v30, %v1458_v29  ;;  %2159 = vrot.lane.b32.xlu1 %v1992_v56, %s6289_s25  ;;  %v5891_v56 = vpop.f32.mrf.mxu1 }
 0x207   : > { %v5931_v36 = vpop.f32.mrf.mxu0  ;;  %v2087_v25 = vld [vmem:[#allocation2 + $0x4a] sm:$0xff] }
 0x208   : > { %2027 = vst.msk [vmem:[#allocation2 + $0x79] sm:$0xff] %vm387_vm2, %v1995_v6  ;;  %v1998_v13 = vmax.f32 %v7170_v39, 0.0  ;;  %v7180_v4 = vadd.f32 %v7074_v18, %v1928_v33  ;;  %v1931_v28 = vadd.f32 %v5931_v36, %v1473_v31  ;;  %2157 = vrot.lane.b32.xlu0 %v1991_v10, %s6289_s25  ;;  %v1507_v53 = vpop.f32.mrf.mxu1  ;;  %v1513_v31 = vadd.f32 %v5891_v56, %v7041_v52 }
 0x209   : > { %v1827_v40 = vpop.f32.mrf.mxu0 }
 0x20a   : > { %2030 = vst.msk [vmem:[#allocation2 + $0x99] sm:$0xff] %vm387_vm2, %v1998_v13  ;;  %v1997_v20 = vmax.f32 %v7180_v4, 0.0  ;;  %v7190_v26 = vadd.f32 %v7074_v18, %v1931_v28  ;;  %v1930_v50 = vadd.f32 %v1827_v40, %v1468_v38  ;;  %2283 = vrot.lane.b32.xlu1 %v2086_v37, %s6290_s26  ;;  %v5894_v17 = vpop.f32.mrf.mxu1 }
 0x20b   : > { %v5934_v62 = vpop.f32.mrf.mxu0  ;;  %v2089_v23 = vld [vmem:[#allocation2 + $0x62] sm:$0xff] }
 0x20c   : > { %2029 = vst.msk [vmem:[#allocation2 + $0x91] sm:$0xff] %vm387_vm2, %v1997_v20  ;;  %v2000_v27 = vmax.f32 %v7190_v26, 0.0  ;;  %v7199_v32 = vadd.f32 %v7074_v18, %v1930_v50  ;;  %v1933_v46 = vadd.f32 %v5934_v62, %v1483_v44  ;;  %2281 = vrot.lane.b32.xlu0 %v2085_v43, %s6290_s26  ;;  %v1523_v44 = vadd.f32 %v5894_v17, %v7045_v58 }
 0x20d   : > { %v1837_v10 = vpop.f32.mrf.mxu0 }
 0x20e   : > { %2032 = vst.msk [vmem:[#allocation2 + $0xb1] sm:$0xff] %vm387_vm2, %v2000_v27  ;;  %v1999_v35 = vmax.f32 %v7199_v32, 0.0  ;;  %v7208_v34 = vadd.f32 %v7074_v18, %v1933_v46  ;;  %v1932_v41 = vadd.f32 %v1837_v10, %v1478_v3  ;;  %2163 = vrot.lane.b32.xlu1 %v1994_v14, %s6289_s25  ;;  %v1503_v14 = vadd.f32 %v5888_v61, %v7037_v47  ;;  %v1517_v61 = vpop.f32.mrf.mxu1 }
 0x20f   : > { %v5937_v57 = vpop.f32.mrf.mxu0 }
 0x210   : > { %2031 = vst.msk [vmem:[#allocation2 + $0xa9] sm:$0xff] %vm387_vm2, %v1999_v35  ;;  %v2002_v42 = vmax.f32 %v7208_v34, 0.0  ;;  %v7217_v7 = vadd.f32 %v7074_v18, %v1932_v41  ;;  %v1935_v9 = vadd.f32 %v5937_v57, %v1493_v49  ;;  %2161 = vrot.lane.b32.xlu0 %v1993_v59, %s6289_s25  ;;  %v1498_v59 = vadd.f32 %v1497_v1, %v7039_v51  ;;  %v5897_v38 = vpop.f32.mrf.mxu1 }
 0x211   : > { %v1847_v19 = vpop.f32.mrf.mxu0  ;;  %v1508_v1 = vadd.f32 %v1507_v53, %v7043_v54  ;;  %v1533_v41 = vadd.f32 %v5897_v38, %v7049_v0 }
 0x212   : > { %2034 = vst.msk [vmem:[#allocation2 + $0xc9] sm:$0xff] %vm387_vm2, %v2002_v42  ;;  %v2001_v45 = vmax.f32 %v7217_v7, 0.0  ;;  %v7226_v15 = vadd.f32 %v7074_v18, %v1935_v9  ;;  %v1934_v21 = vadd.f32 %v1847_v19, %v1488_v48  ;;  %2287 = vrot.lane.b32.xlu1 %v2088_v16, %s6290_s26  ;;  %v1527_v62 = vpop.f32.mrf.mxu1 }
 0x213   : > { %v5940_v24 = vpop.f32.mrf.mxu0  ;;  %v1528_v9 = vadd.f32 %v1527_v62, %v7053_v2 }
 0x214   : > { %2033 = vst.msk [vmem:[#allocation2 + $0xc1] sm:$0xff] %vm387_vm2, %v2001_v45  ;;  %v2004_v47 = vmax.f32 %v7226_v15, 0.0  ;;  %v7235_v29 = vadd.f32 %v7074_v18, %v1934_v21  ;;  %v1937_v22 = vadd.f32 %v5940_v24, %v1503_v14  ;;  %2285 = vrot.lane.b32.xlu0 %v2087_v25, %s6290_s26  ;;  %v5900_v10 = vpop.f32.mrf.mxu1 }
 0x215   : > { %v1857_v30 = vpop.f32.mrf.mxu0  ;;  %v1543_v14 = vadd.f32 %v5900_v10, %v7057_v5  ;;  %v2050_v10 = vld [vmem:[#allocation2 + $0x8] sm:$0xff] }
 0x216   : > { %2036 = vst.msk [vmem:[#allocation2 + $0xe1] sm:$0xff] %vm387_vm2, %v2004_v47  ;;  %v2003_v51 = vmax.f32 %v7235_v29, 0.0  ;;  %v7244_v33 = vadd.f32 %v7074_v18, %v1937_v22  ;;  %v1936_v36 = vadd.f32 %v1857_v30, %v1498_v59  ;;  %2167 = vrot.lane.b32.xlu1 %v1996_v63, %s6289_s25  ;;  %v2090_v63 = vld [vmem:[#allocation2 + $0x6a] sm:$0xff]  ;;  %v1537_v16 = vpop.f32.mrf.mxu1 }
 0x217   : > { %v5943_v28 = vpop.f32.mrf.mxu0  ;;  %v1538_v59 = vadd.f32 %v1537_v16, %v7061_v8 }
 0x218   : > { %2035 = vst.msk [vmem:[#allocation2 + $0xd9] sm:$0xff] %vm387_vm2, %v2003_v51  ;;  %v2006_v52 = vmax.f32 %v7244_v33, 0.0  ;;  %v7255_v40 = vadd.f32 %v7074_v18, %v1936_v36  ;;  %v1939_v37 = vadd.f32 %v5943_v28, %v1513_v31  ;;  %2165 = vrot.lane.b32.xlu0 %v1995_v6, %s6289_s25  ;;  %v1518_v6 = vadd.f32 %v1517_v61, %v7047_v60  ;;  %v5903_v25 = vpop.f32.mrf.mxu1 }
 0x219   : > { %v1867_v55 = vpop.f32.mrf.mxu0  ;;  %v1553_v31 = vadd.f32 %v5903_v25, %v7065_v11 }
 0x21a   : > { %2038 = vst.msk [vmem:[#allocation2 + $0xf9] sm:$0xff] %vm387_vm2, %v2006_v52  ;;  %v2005_v54 = vmax.f32 %v7255_v40, 0.0  ;;  %v7266_v50 = vadd.f32 %v7074_v18, %v1939_v37  ;;  %v1938_v56 = vadd.f32 %v1867_v55, %v1508_v1  ;;  %2291 = vrot.lane.b32.xlu1 %v2090_v63, %s6290_s26  ;;  %v1547_v28 = vpop.f32.mrf.mxu1 }
 0x21b   : > { %v5946_v43 = vpop.f32.mrf.mxu0  ;;  %v1548_v37 = vadd.f32 %v1547_v28, %v7067_v12  ;;  %v2093_v12 = vld [vmem:[#allocation2 + $0x92] sm:$0xff]  ;;  %v2097_v34 = vld [vmem:[#allocation2 + $0xc2] sm:$0xff] }
 0x21c   : > { %2037 = vst.msk [vmem:[#allocation2 + $0xf1] sm:$0xff] %vm387_vm2, %v2005_v54  ;;  %v2008_v58 = vmax.f32 %v7266_v50, 0.0  ;;  %v7275_v3 = vadd.f32 %v7074_v18, %v1938_v56  ;;  %v1941_v46 = vadd.f32 %v5946_v43, %v1523_v44  ;;  %2289 = vrot.lane.b32.xlu0 %v2089_v23, %s6290_s26  ;;  %v2094_v56 = vld [vmem:[#allocation2 + $0x9a] sm:$0xff]  ;;  %v2053_v28 = vld [vmem:[#allocation2 + $0x30] sm:$0xff] }
 0x21d   : > { %v1877_v49 = vpop.f32.mrf.mxu0 }
 0x21e   : > { %2040 = vst.msk [vmem:[#allocation2 + $0x111] sm:$0xff] %vm387_vm2, %v2008_v58  ;;  %v2007_v60 = vmax.f32 %v7275_v3, 0.0  ;;  %v7284_v53 = vadd.f32 %v7074_v18, %v1941_v46  ;;  %v1940_v57 = vadd.f32 %v1877_v49, %v1518_v6  ;;  %2171 = vrot.lane.b32.xlu1 %v1998_v13, %s6289_s25  ;;  %v2092_v13 = vld [vmem:[#allocation2 + $0x82] sm:$0xff]  ;;  %v2095_v6 = vld [vmem:[#allocation2 + $0xaa] sm:$0xff] }
 0x21f   : > { %v5949_v48 = vpop.f32.mrf.mxu0  ;;  %v2099_v7 = vld [vmem:[#allocation2 + $0xda] sm:$0xff] }
 0x220   : > { %2039 = vst.msk [vmem:[#allocation2 + $0x109] sm:$0xff] %vm387_vm2, %v2007_v60  ;;  %v2010_v0 = vmax.f32 %v7284_v53, 0.0  ;;  %v7295_v17 = vadd.f32 %v7074_v18, %v1940_v57  ;;  %v1943_v19 = vadd.f32 %v5949_v48, %v1533_v41  ;;  %2169 = vrot.lane.b32.xlu0 %v1997_v20, %s6289_s25  ;;  %v2091_v20 = vld [vmem:[#allocation2 + $0x7a] sm:$0xff]  ;;  %v5511_v53 = vld [vmem:[%s8704_s1 + $0x58] sm:$0xf] }
 0x221   : > { %v1887_v39 = vpop.f32.mrf.mxu0  ;;  %v2049_v57 = vld [vmem:[#allocation2] sm:$0xff]  ;;  %6060 = vmatprep.subr.msk.mxu1 %vm1003_vm3, %v5511_v53 }
 0x222   : > { %2042 = vst.msk [vmem:[#allocation2 + $0x129] sm:$0xff] %vm387_vm2, %v2010_v0  ;;  %v2009_v2 = vmax.f32 %v7295_v17, 0.0  ;;  %v7306_v21 = vadd.f32 %v7074_v18, %v1943_v19  ;;  %v1942_v24 = vadd.f32 %v1887_v39, %v1528_v9  ;;  %2295 = vrot.lane.b32.xlu1 %v2092_v13, %s6290_s26 }
 0x223   : > { %v5952_v4 = vpop.f32.mrf.mxu0  ;;  %v2101_v15 = vld [vmem:[#allocation2 + $0xf2] sm:$0xff] }
 0x224   : > { %2041 = vst.msk [vmem:[#allocation2 + $0x121] sm:$0xff] %vm387_vm2, %v2009_v2  ;;  %v2012_v5 = vmax.f32 %v7306_v21, 0.0  ;;  %v7315_v22 = vadd.f32 %v7074_v18, %v1942_v24  ;;  %v1945_v61 = vadd.f32 %v5952_v4, %v1543_v14  ;;  %2293 = vrot.lane.b32.xlu0 %v2091_v20, %s6290_s26  ;;  %v2052_v14 = vld [vmem:[#allocation2 + $0x20] sm:$0xff]  ;;  %v2051_v24 = vld [vmem:[#allocation2 + $0x18] sm:$0xff] }
 0x225   : > { %v1897_v30 = vpop.f32.mrf.mxu0 }
 0x226   : > { %2044 = vst.msk [vmem:[#allocation2 + $0x141] sm:$0xff] %vm387_vm2, %v2012_v5  ;;  %v2011_v8 = vmax.f32 %v7315_v22, 0.0  ;;  %v1982_v36 = vadd.f32 %v7074_v18, %v1945_v61  ;;  %v1944_v38 = vadd.f32 %v1897_v30, %v1538_v59  ;;  %2175 = vrot.lane.b32.xlu1 %v2000_v27, %s6289_s25  ;;  %v5510_v30 = vld [vmem:[%s8704_s1 + $0x50] sm:$0xff] }
 0x227   : > { %v5955_v1 = vpop.f32.mrf.mxu0  ;;  %v2103_v29 = vld [vmem:[#allocation2 + $0x10a] sm:$0xff] }
 0x228   : > { %2043 = vst.msk [vmem:[#allocation2 + $0x139] sm:$0xff] %vm387_vm2, %v2011_v8  ;;  %v2014_v11 = vmax.f32 %v1982_v36, 0.0  ;;  %v1981_v55 = vadd.f32 %v7074_v18, %v1944_v38  ;;  %v1947_v63 = vadd.f32 %v5955_v1, %v1553_v31  ;;  %2173 = vrot.lane.b32.xlu0 %v1999_v35, %s6289_s25  ;;  %v2096_v35 = vld [vmem:[#allocation2 + $0xb2] sm:$0xff] }
 0x229   : > { %v1907_v44 = vpop.f32.mrf.mxu0 }
 0x22a   : > { %2046 = vst.msk [vmem:[#allocation2 + $0x159] sm:$0xff] %vm387_vm2, %v2014_v11  ;;  %v2013_v26 = vmax.f32 %v1981_v55, 0.0  ;;  %v1984_v27 = vadd.f32 %v7074_v18, %v1947_v63  ;;  %v1946_v62 = vadd.f32 %v1907_v44, %v1548_v37  ;;  %2299 = vrot.lane.b32.xlu1 %v2094_v56, %s6290_s26 }
 0x22b   : > { %v2105_v33 = vld [vmem:[#allocation2 + $0x122] sm:$0xff] }
 0x22c   : > { %2045 = vst.msk [vmem:[#allocation2 + $0x151] sm:$0xff] %vm387_vm2, %v2013_v26  ;;  %v2016_v43 = vmax.f32 %v1984_v27, 0.0  ;;  %v1983_v23 = vadd.f32 %v7074_v18, %v1946_v62  ;;  %2297 = vrot.lane.b32.xlu0 %v2093_v12, %s6290_s26  ;;  %v2098_v18 = vld [vmem:[#allocation2 + $0xca] sm:$0xff] }
 0x22d   : > { %v2056_v27 = vld [vmem:[#allocation2 + $0x50] sm:$0xff] }
 0x22e   : > { %2048 = vst.msk [vmem:[#allocation2 + $0x171] sm:$0xff] %vm387_vm2, %v2016_v43  ;;  %v2015_v32 = vmax.f32 %v1983_v23, 0.0  ;;  %2179 = vrot.lane.b32.xlu1 %v2002_v42, %s6289_s25  ;;  %v2100_v42 = vld [vmem:[#allocation2 + $0xe2] sm:$0xff] }
 0x22f   : > { %v2107_v40 = vld [vmem:[#allocation2 + $0x13a] sm:$0xff] }
 0x230   : > { %2047 = vst.msk [vmem:[#allocation2 + $0x169] sm:$0xff] %vm387_vm2, %v2015_v32  ;;  %2177 = vrot.lane.b32.xlu0 %v2001_v45, %s6289_s25  ;;  %v2102_v45 = vld [vmem:[#allocation2 + $0xfa] sm:$0xff] }
 0x231   : > { %v2110_v3 = vld [vmem:[#allocation2 + $0x15a] sm:$0xff] }
 0x232   : > { %2303 = vrot.lane.b32.xlu1 %v2096_v35, %s6290_s26 }
 0x233   : > { %v2109_v49 = vld [vmem:[#allocation2 + $0x152] sm:$0xff] }
 0x234   : > { %2301 = vrot.lane.b32.xlu0 %v2095_v6, %s6290_s26 }
 0x235   : > { %v2112_v9 = vld [vmem:[#allocation2 + $0x172] sm:$0xff] }
 0x236   : > { %2183 = vrot.lane.b32.xlu1 %v2004_v47, %s6289_s25  ;;  %v2104_v47 = vld [vmem:[#allocation2 + $0x112] sm:$0xff] }
 0x237   : > { %v2111_v16 = vld [vmem:[#allocation2 + $0x16a] sm:$0xff] }
 0x238   : > { %2181 = vrot.lane.b32.xlu0 %v2003_v51, %s6289_s25  ;;  %v2106_v51 = vld [vmem:[#allocation2 + $0x12a] sm:$0xff] }
 0x23a   : > { %2307 = vrot.lane.b32.xlu1 %v2098_v18, %s6290_s26 }
 0x23c   : > { %2305 = vrot.lane.b32.xlu0 %v2097_v34, %s6290_s26 }
 0x23e   : > { %2187 = vrot.lane.b32.xlu1 %v2006_v52, %s6289_s25  ;;  %v2108_v52 = vld [vmem:[#allocation2 + $0x142] sm:$0xff] }
 0x240   : > { %2185 = vrot.lane.b32.xlu0 %v2005_v54, %s6289_s25 }
 0x242   : > { %2311 = vrot.lane.b32.xlu1 %v2100_v42, %s6290_s26 }
 0x244   : > { %2309 = vrot.lane.b32.xlu0 %v2099_v7, %s6290_s26 }
 0x246   : > { %2191 = vrot.lane.b32.xlu1 %v2008_v58, %s6289_s25 }
 0x248   : > { %2189 = vrot.lane.b32.xlu0 %v2007_v60, %s6289_s25 }
 0x24a   : > { %2315 = vrot.lane.b32.xlu1 %v2102_v45, %s6290_s26  ;;  %v2058_v45 = vld [vmem:[#allocation2 + $0x68] sm:$0xff] }
 0x24c   : > { %2313 = vrot.lane.b32.xlu0 %v2101_v15, %s6290_s26 }
 0x24e   : > { %2195 = vrot.lane.b32.xlu1 %v2010_v0, %s6289_s25 }
 0x250   : > { %2193 = vrot.lane.b32.xlu0 %v2009_v2, %s6289_s25 }
 0x252   : > { %2319 = vrot.lane.b32.xlu1 %v2104_v47, %s6290_s26 }
 0x254   : > { %2317 = vrot.lane.b32.xlu0 %v2103_v29, %s6290_s26  ;;  %v2057_v29 = vld [vmem:[#allocation2 + $0x60] sm:$0xff] }
 0x256   : > { %2199 = vrot.lane.b32.xlu1 %v2012_v5, %s6289_s25 }
 0x258   : > { %2197 = vrot.lane.b32.xlu0 %v2011_v8, %s6289_s25  ;;  %v2054_v8 = vld [vmem:[#allocation2 + $0x38] sm:$0xff] }
 0x25a   : > { %2323 = vrot.lane.b32.xlu1 %v2106_v51, %s6290_s26 }
 0x25c   : > { %2321 = vrot.lane.b32.xlu0 %v2105_v33, %s6290_s26 }
 0x25e   : > { %2203 = vrot.lane.b32.xlu1 %v2014_v11, %s6289_s25 }
 0x260   : > { %2201 = vrot.lane.b32.xlu0 %v2013_v26, %s6289_s25 }
 0x262   : > { %2327 = vrot.lane.b32.xlu1 %v2108_v52, %s6290_s26 }
 0x264   : > { %v2148_v54 = vpop.permute.xlu1 %2147  ;;  %2325 = vrot.lane.b32.xlu0 %v2107_v40, %s6290_s26 }
 0x265   : > { %v2370_v41 = vsel %vm387_vm2, %v2050_v10, %v2148_v54 }
 0x266   : > { %v2146_v50 = vpop.permute.xlu0 %2145  ;;  %2207 = vrot.lane.b32.xlu1 %v2016_v43, %s6289_s25  ;;  %v2055_v43 = vld [vmem:[#allocation2 + $0x48] sm:$0xff] }
 0x267   : > { %v2369_v0 = vsel %vm387_vm2, %v2049_v57, %v2146_v50 }
 0x268   : > { %v2152_v58 = vpop.permute.xlu1 %2151  ;;  %2205 = vrot.lane.b32.xlu0 %v2015_v32, %s6289_s25 }
 0x269   : > { %v2372_v2 = vsel %vm387_vm2, %v2052_v14, %v2152_v58  ;;  %v2061_v14 = vld [vmem:[#allocation2 + $0x90] sm:$0xff] }
 0x26a   : > { %2331 = vrot.lane.b32.xlu1 %v2110_v3, %s6290_s26  ;;  %v2150_v46 = vpop.permute.xlu0 %2149 }
 0x26b   : > { %v2371_v4 = vsel %vm387_vm2, %v2051_v24, %v2150_v46  ;;  %v2060_v46 = vld [vmem:[#allocation2 + $0x80] sm:$0xff] }
 0x26c   : > { %v2276_v60 = vpop.permute.xlu1 %2275  ;;  %2329 = vrot.lane.b32.xlu0 %v2109_v49, %s6290_s26 }
 0x26d   : > { %v2402_v48 = vsel %vm772_vm4, %v2370_v41, %v2276_v60  ;;  %v2059_v41 = vld [vmem:[#allocation2 + $0x78] sm:$0xff] }
 0x26e   : > { %2434 = vst.msk [vmem:[#allocation3 + $0x18] sm:$0xff] %vm349_vm1, %v2402_v48  ;;  %2335 = vrot.lane.b32.xlu1 %v2112_v9, %s6290_s26  ;;  %v2274_v17 = vpop.permute.xlu0 %2273 }
 0x26f   : > { %v2401_v19 = vsel %vm772_vm4, %v2369_v0, %v2274_v17 }
 0x270   : > { %2433 = vst.msk [vmem:[#allocation3 + $0x10] sm:$0xff] %vm349_vm1, %v2401_v19  ;;  %v2156_v39 = vpop.permute.xlu1 %2155  ;;  %2333 = vrot.lane.b32.xlu0 %v2111_v16, %s6290_s26  ;;  %v2062_v16 = vld [vmem:[#allocation2 + $0x98] sm:$0xff] }
 0x271   : > { %v2374_v36 = vsel %vm387_vm2, %v2054_v8, %v2156_v39 }
 0x272   : > { %v2154_v13 = vpop.permute.xlu0 %2153 }
 0x273   : > { %v2373_v37 = vsel %vm387_vm2, %v2053_v28, %v2154_v13 }
 0x274   : > { %v2280_v21 = vpop.permute.xlu1 %2279 }
 0x275   : > { %v2404_v25 = vsel %vm772_vm4, %v2372_v2, %v2280_v21  ;;  %v2501_v61 = vld [vmem:[#allocation3 + $0x18] sm:$0xff] }
 0x276   : > { %2436 = vst.msk [vmem:[#allocation3 + $0x28] sm:$0xff] %vm349_vm1, %v2404_v25  ;;  %v2278_v20 = vpop.permute.xlu0 %2277 }
 0x277   : > { %v2403_v59 = vsel %vm772_vm4, %v2371_v4, %v2278_v20  ;;  %v2500_v5 = vld [vmem:[#allocation3 + $0x10] sm:$0xff] }
 0x278   : > { %2435 = vst.msk [vmem:[#allocation3 + $0x20] sm:$0xff] %vm349_vm1, %v2403_v59  ;;  %v2160_v22 = vpop.permute.xlu1 %2159  ;;  %5960 = vmatprep.mubr.msk.f32.mxu1 %vm349_vm1, %v2500_v5  ;;  %6015 = vmatprep.mubr.msk.f32.mxu0 %vm349_vm1, %v2500_v5 }
 0x279   : > { %5961 = vmatmul.mubr.msk.f32.vlgmr.msra.gmra.mxu1 %vm349_vm1, %v2501_v61  ;;  %6016 = vmatmul.mubr.msk.f32.gmra.mxu0 %vm349_vm1, %v2501_v61  ;;  %v2376_v62 = vsel %vm387_vm2, %v2056_v27, %v2160_v22  ;;  %v2064_v22 = vld [vmem:[#allocation2 + $0xb0] sm:$0xff] }
 0x27a   : > { %v2158_v31 = vpop.permute.xlu0 %2157  ;;  %6061 = vmatpush3.msk.msra.mxu1 %vm1003_vm3, %v5511_v53 }
 0x27b   : > { %6062 = vmatprep.subr.mxu1 %v5510_v30  ;;  %v2375_v32 = vsel %vm387_vm2, %v2055_v43, %v2158_v31  ;;  %v2063_v31 = vld [vmem:[#allocation2 + $0xa8] sm:$0xff] }
 0x27c   : > { %v2284_v38 = vpop.permute.xlu1 %2283  ;;  %6063 = vmatpush3.msra.mxu1 %v5510_v30 }
 0x27d   : > { %v2406_v1 = vsel %vm772_vm4, %v2374_v36, %v2284_v38  ;;  %v7433_v56 = vld [vmem:[#allocation3 + $0x28] sm:$0xff] }
 0x27e   : > { %2438 = vst.msk [vmem:[#allocation3 + $0x38] sm:$0xff] %vm349_vm1, %v2406_v1  ;;  %v2282_v11 = vpop.permute.xlu0 %2281 }
 0x27f   : > { %v2405_v55 = vsel %vm772_vm4, %v2373_v37, %v2282_v11  ;;  %v7426_v63 = vld [vmem:[#allocation3 + $0x20] sm:$0xff] }
 0x280   : > { %2437 = vst.msk [vmem:[#allocation3 + $0x30] sm:$0xff] %vm349_vm1, %v2405_v55  ;;  %v2164_v44 = vpop.permute.xlu1 %2163  ;;  %5963 = vmatprep.mubr.msk.f32.mxu1 %vm349_vm1, %v7426_v63  ;;  %6018 = vmatprep.mubr.msk.f32.mxu0 %vm349_vm1, %v7426_v63 }
 0x281   : > { %5964 = vmatmul.mubr.msk.f32.gmra.mxu1 %vm349_vm1, %v7433_v56  ;;  %6019 = vmatmul.mubr.msk.f32.gmra.mxu0 %vm349_vm1, %v7433_v56  ;;  %v2378_v15 = vsel %vm387_vm2, %v2058_v45, %v2164_v44  ;;  %v2066_v44 = vld [vmem:[#allocation2 + $0xc8] sm:$0xff]  ;;  %v2068_v45 = vld [vmem:[#allocation2 + $0xe0] sm:$0xff] }
 0x282   : > { %v2162_v26 = vpop.permute.xlu0 %2161 }
 0x283   : > { %v2377_v33 = vsel %vm387_vm2, %v2057_v29, %v2162_v26  ;;  %v2067_v29 = vld [vmem:[#allocation2 + $0xd8] sm:$0xff] }
 0x284   : > { %v2288_v12 = vpop.permute.xlu1 %2287 }
 0x285   : > { %v2408_v23 = vsel %vm772_vm4, %v2376_v62, %v2288_v12  ;;  %v7451_v42 = vld [vmem:[#allocation3 + $0x38] sm:$0xff]  ;;  %v2065_v62 = vld [vmem:[#allocation2 + $0xc0] sm:$0xff] }
 0x286   : > { %2440 = vst.msk [vmem:[#allocation3 + $0x48] sm:$0xff] %vm349_vm1, %v2408_v23  ;;  %v2286_v35 = vpop.permute.xlu0 %2285 }
 0x287   : > { %v2407_v6 = vsel %vm772_vm4, %v2375_v32, %v2286_v35  ;;  %v7444_v18 = vld [vmem:[#allocation3 + $0x30] sm:$0xff] }
 0x288   : > { %2439 = vst.msk [vmem:[#allocation3 + $0x40] sm:$0xff] %vm349_vm1, %v2407_v6  ;;  %v2168_v34 = vpop.permute.xlu1 %2167  ;;  %5966 = vmatprep.mubr.msk.f32.mxu1 %vm349_vm1, %v7444_v18  ;;  %6021 = vmatprep.mubr.msk.f32.mxu0 %vm349_vm1, %v7444_v18 }
 0x289   : > { %5967 = vmatmul.mubr.msk.f32.gmra.mxu1 %vm349_vm1, %v7451_v42  ;;  %6022 = vmatmul.mubr.msk.f32.gmra.mxu0 %vm349_vm1, %v7451_v42  ;;  %v2380_v10 = vsel %vm387_vm2, %v2060_v46, %v2168_v34 }
 0x28a   : > { %v2166_v7 = vpop.permute.xlu0 %2165 }
 0x28b   : > { %v2379_v53 = vsel %vm387_vm2, %v2059_v41, %v2166_v7 }
 0x28c   : > { %v2292_v47 = vpop.permute.xlu1 %2291 }
 0x28d   : > { %v2410_v51 = vsel %vm772_vm4, %v2378_v15, %v2292_v47  ;;  %v7469_v58 = vld [vmem:[#allocation3 + $0x48] sm:$0xff] }
 0x28e   : > { %2442 = vst.msk [vmem:[#allocation3 + $0x58] sm:$0xff] %vm349_vm1, %v2410_v51  ;;  %v2290_v52 = vpop.permute.xlu0 %2289 }
 0x28f   : > { %v2409_v40 = vsel %vm772_vm4, %v2377_v33, %v2290_v52  ;;  %v7462_v54 = vld [vmem:[#allocation3 + $0x40] sm:$0xff] }
 0x290   : > { %2441 = vst.msk [vmem:[#allocation3 + $0x50] sm:$0xff] %vm349_vm1, %v2409_v40  ;;  %v2172_v50 = vpop.permute.xlu1 %2171  ;;  %5969 = vmatprep.mubr.msk.f32.mxu1 %vm349_vm1, %v7462_v54  ;;  %6024 = vmatprep.mubr.msk.f32.mxu0 %vm349_vm1, %v7462_v54 }
 0x291   : > { %5970 = vmatmul.mubr.msk.f32.gmra.mxu1 %vm349_vm1, %v7469_v58  ;;  %6025 = vmatmul.mubr.msk.f32.gmra.mxu0 %vm349_vm1, %v7469_v58  ;;  %v2382_v39 = vsel %vm387_vm2, %v2062_v16, %v2172_v50 }
 0x292   : > { %v2170_v3 = vpop.permute.xlu0 %2169 }
 0x293   : > { %v2381_v21 = vsel %vm387_vm2, %v2061_v14, %v2170_v3 }
 0x294   : > { %v2296_v49 = vpop.permute.xlu1 %2295 }
 0x295   : > { %v2412_v60 = vsel %vm772_vm4, %v2380_v10, %v2296_v49  ;;  %v7487_v17 = vld [vmem:[#allocation3 + $0x58] sm:$0xff] }
 0x296   : > { %2444 = vst.msk [vmem:[#allocation3 + $0x68] sm:$0xff] %vm349_vm1, %v2412_v60  ;;  %v2294_v57 = vpop.permute.xlu0 %2293  ;;  %v2070_v49 = vld [vmem:[#allocation2 + $0xf8] sm:$0xff] }
 0x297   : > { %v2411_v48 = vsel %vm772_vm4, %v2379_v53, %v2294_v57  ;;  %v7480_v9 = vld [vmem:[#allocation3 + $0x50] sm:$0xff] }
 0x298   : > { %2443 = vst.msk [vmem:[#allocation3 + $0x60] sm:$0xff] %vm349_vm1, %v2411_v48  ;;  %v2176_v0 = vpop.permute.xlu1 %2175  ;;  %5972 = vmatprep.mubr.msk.f32.mxu1 %vm349_vm1, %v7480_v9  ;;  %6027 = vmatprep.mubr.msk.f32.mxu0 %vm349_vm1, %v7480_v9  ;;  %v2069_v53 = vld [vmem:[#allocation2 + $0xf0] sm:$0xff] }
 0x299   : > { %5973 = vmatmul.mubr.msk.f32.gmra.mxu1 %vm349_vm1, %v7487_v17  ;;  %6028 = vmatmul.mubr.msk.f32.gmra.mxu0 %vm349_vm1, %v7487_v17  ;;  %v2384_v61 = vsel %vm387_vm2, %v2064_v22, %v2176_v0 }
 0x29a   : > { %v2174_v19 = vpop.permute.xlu0 %2173 }
 0x29b   : > { %v2383_v36 = vsel %vm387_vm2, %v2063_v31, %v2174_v19 }
 0x29c   : > { %v2300_v13 = vpop.permute.xlu1 %2299 }
 0x29d   : > { %v2414_v2 = vsel %vm772_vm4, %v2382_v39, %v2300_v13  ;;  %v7505_v59 = vld [vmem:[#allocation3 + $0x68] sm:$0xff] }
 0x29e   : > { %2446 = vst.msk [vmem:[#allocation3 + $0x78] sm:$0xff] %vm349_vm1, %v2414_v2  ;;  %v2298_v24 = vpop.permute.xlu0 %2297  ;;  %v2072_v2 = vld [vmem:[#allocation2 + $0x110] sm:$0xff] }
 0x29f   : > { %v2413_v25 = vsel %vm772_vm4, %v2381_v21, %v2298_v24  ;;  %v7498_v4 = vld [vmem:[#allocation3 + $0x60] sm:$0xff] }
 0x2a0   : > { %2445 = vst.msk [vmem:[#allocation3 + $0x70] sm:$0xff] %vm349_vm1, %v2413_v25  ;;  %v2180_v20 = vpop.permute.xlu1 %2179  ;;  %5975 = vmatprep.mubr.msk.f32.mxu1 %vm349_vm1, %v7498_v4  ;;  %6030 = vmatprep.mubr.msk.f32.mxu0 %vm349_vm1, %v7498_v4  ;;  %v2071_v25 = vld [vmem:[#allocation2 + $0x108] sm:$0xff] }
 0x2a1   : > { %5976 = vmatmul.mubr.msk.f32.gmra.mxu1 %vm349_vm1, %v7505_v59  ;;  %6031 = vmatmul.mubr.msk.f32.gmra.mxu0 %vm349_vm1, %v7505_v59  ;;  %v2386_v26 = vsel %vm387_vm2, %v2066_v44, %v2180_v20 }
 0x2a2   : > { %v2178_v5 = vpop.permute.xlu0 %2177 }
 0x2a3   : > { %v2385_v43 = vsel %vm387_vm2, %v2065_v62, %v2178_v5 }
 0x2a4   : > { %v2304_v30 = vpop.permute.xlu1 %2303 }
 0x2a5   : > { %v2416_v8 = vsel %vm772_vm4, %v2384_v61, %v2304_v30  ;;  %v7523_v11 = vld [vmem:[#allocation3 + $0x78] sm:$0xff] }
 0x2a6   : > { %2448 = vst.msk [vmem:[#allocation3 + $0x88] sm:$0xff] %vm349_vm1, %v2416_v8  ;;  %v2302_v38 = vpop.permute.xlu0 %2301 }
 0x2a7   : > { %v2415_v28 = vsel %vm772_vm4, %v2383_v36, %v2302_v38  ;;  %v7516_v1 = vld [vmem:[#allocation3 + $0x70] sm:$0xff]  ;;  %v2074_v38 = vld [vmem:[#allocation2 + $0x128] sm:$0xff] }
 0x2a8   : > { %2447 = vst.msk [vmem:[#allocation3 + $0x80] sm:$0xff] %vm349_vm1, %v2415_v28  ;;  %v2184_v37 = vpop.permute.xlu1 %2183  ;;  %5978 = vmatprep.mubr.msk.f32.mxu1 %vm349_vm1, %v7516_v1  ;;  %6033 = vmatprep.mubr.msk.f32.mxu0 %vm349_vm1, %v7516_v1 }
 0x2a9   : > { %5979 = vmatmul.mubr.msk.f32.gmra.mxu1 %vm349_vm1, %v7523_v11  ;;  %6034 = vmatmul.mubr.msk.f32.gmra.mxu0 %vm349_vm1, %v7523_v11  ;;  %v2388_v15 = vsel %vm387_vm2, %v2068_v45, %v2184_v37 }
 0x2aa   : > { %v2182_v55 = vpop.permute.xlu0 %2181 }
 0x2ab   : > { %v2387_v33 = vsel %vm387_vm2, %v2067_v29, %v2182_v55  ;;  %v2073_v55 = vld [vmem:[#allocation2 + $0x120] sm:$0xff] }
 0x2ac   : > { %v2308_v27 = vpop.permute.xlu1 %2307 }
 0x2ad   : > { %v2418_v12 = vsel %vm772_vm4, %v2386_v26, %v2308_v27  ;;  %v7541_v34 = vld [vmem:[#allocation3 + $0x88] sm:$0xff] }
 0x2ae   : > { %2450 = vst.msk [vmem:[#allocation3 + $0x98] sm:$0xff] %vm349_vm1, %v2418_v12  ;;  %v2306_v23 = vpop.permute.xlu0 %2305 }
 0x2af   : > { %v2417_v32 = vsel %vm772_vm4, %v2385_v43, %v2306_v23  ;;  %v7534_v35 = vld [vmem:[#allocation3 + $0x80] sm:$0xff] }
 0x2b0   : > { %2449 = vst.msk [vmem:[#allocation3 + $0x90] sm:$0xff] %vm349_vm1, %v2417_v32  ;;  %v2188_v6 = vpop.permute.xlu1 %2187  ;;  %5981 = vmatprep.mubr.msk.f32.mxu1 %vm349_vm1, %v7534_v35  ;;  %6036 = vmatprep.mubr.msk.f32.mxu0 %vm349_vm1, %v7534_v35 }
 0x2b1   : > { %5982 = vmatmul.mubr.msk.f32.gmra.mxu1 %vm349_vm1, %v7541_v34  ;;  %6037 = vmatmul.mubr.msk.f32.gmra.mxu0 %vm349_vm1, %v7541_v34  ;;  %v2390_v41 = vsel %vm387_vm2, %v2070_v49, %v2188_v6  ;;  %v2076_v6 = vld [vmem:[#allocation2 + $0x140] sm:$0xff]  ;;  %v2078_v49 = vld [vmem:[#allocation2 + $0x158] sm:$0xff] }
 0x2b2   : > { %v2186_v7 = vpop.permute.xlu0 %2185 }
 0x2b3   : > { %v2389_v48 = vsel %vm387_vm2, %v2069_v53, %v2186_v7  ;;  %v2077_v53 = vld [vmem:[#allocation2 + $0x150] sm:$0xff] }
 0x2b4   : > { %v2312_v47 = vpop.permute.xlu1 %2311 }
 0x2b5   : > { %v2420_v51 = vsel %vm772_vm4, %v2388_v15, %v2312_v47  ;;  %v7559_v46 = vld [vmem:[#allocation3 + $0x98] sm:$0xff] }
 0x2b6   : > { %2452 = vst.msk [vmem:[#allocation3 + $0xa8] sm:$0xff] %vm349_vm1, %v2420_v51  ;;  %v2310_v52 = vpop.permute.xlu0 %2309  ;;  %v2075_v15 = vld [vmem:[#allocation2 + $0x138] sm:$0xff] }
 0x2b7   : > { %v2419_v40 = vsel %vm772_vm4, %v2387_v33, %v2310_v52  ;;  %v7552_v50 = vld [vmem:[#allocation3 + $0x90] sm:$0xff] }
 0x2b8   : > { %2451 = vst.msk [vmem:[#allocation3 + $0xa0] sm:$0xff] %vm349_vm1, %v2419_v40  ;;  %v2192_v3 = vpop.permute.xlu1 %2191  ;;  %5984 = vmatprep.mubr.msk.f32.mxu1 %vm349_vm1, %v7552_v50  ;;  %6039 = vmatprep.mubr.msk.f32.mxu0 %vm349_vm1, %v7552_v50 }
 0x2b9   : > { %5985 = vmatmul.mubr.msk.f32.gmra.mxu1 %vm349_vm1, %v7559_v46  ;;  %6040 = vmatmul.mubr.msk.f32.gmra.mxu0 %vm349_vm1, %v7559_v46  ;;  %v2392_v21 = vsel %vm387_vm2, %v2072_v2, %v2192_v3 }
 0x2ba   : > { %v2190_v10 = vpop.permute.xlu0 %2189 }
 0x2bb   : > { %v2391_v5 = vsel %vm387_vm2, %v2071_v25, %v2190_v10  ;;  %v2079_v25 = vld [vmem:[#allocation2 + $0x168] sm:$0xff] }
 0x2bc   : > { %v2316_v60 = vpop.permute.xlu1 %2315 }
 0x2bd   : > { %v2422_v57 = vsel %vm772_vm4, %v2390_v41, %v2316_v60  ;;  %v7577_v13 = vld [vmem:[#allocation3 + $0xa8] sm:$0xff] }
 0x2be   : > { %2454 = vst.msk [vmem:[#allocation3 + $0xb8] sm:$0xff] %vm349_vm1, %v2422_v57  ;;  %v2314_v0 = vpop.permute.xlu0 %2313 }
 0x2bf   : > { %v2421_v19 = vsel %vm772_vm4, %v2389_v48, %v2314_v0  ;;  %v7570_v16 = vld [vmem:[#allocation3 + $0xa0] sm:$0xff] }
 0x2c0   : > { %2453 = vst.msk [vmem:[#allocation3 + $0xb0] sm:$0xff] %vm349_vm1, %v2421_v19  ;;  %v2196_v39 = vpop.permute.xlu1 %2195  ;;  %5987 = vmatprep.mubr.msk.f32.mxu1 %vm349_vm1, %v7570_v16  ;;  %6042 = vmatprep.mubr.msk.f32.mxu0 %vm349_vm1, %v7570_v16  ;;  %v2080_v19 = vld [vmem:[#allocation2 + $0x170] sm:$0xff] }
 0x2c1   : > { %5988 = vmatmul.mubr.msk.f32.gmra.mxu1 %vm349_vm1, %v7577_v13  ;;  %6043 = vmatmul.mubr.msk.f32.gmra.mxu0 %vm349_vm1, %v7577_v13  ;;  %v2394_v28 = vsel %vm387_vm2, %v2074_v38, %v2196_v39 }
 0x2c2   : > { %v2194_v14 = vpop.permute.xlu0 %2193 }
 0x2c3   : > { %v2393_v26 = vsel %vm387_vm2, %v2073_v55, %v2194_v14 }
 0x2c4   : > { %v2320_v24 = vpop.permute.xlu1 %2319 }
 0x2c5   : > { %v2424_v20 = vsel %vm772_vm4, %v2392_v21, %v2320_v24  ;;  %v7595_v8 = vld [vmem:[#allocation3 + $0xb8] sm:$0xff] }
 0x2c6   : > { %2456 = vst.msk [vmem:[#allocation3 + $0xc8] sm:$0xff] %vm349_vm1, %v2424_v20  ;;  %v2318_v22 = vpop.permute.xlu0 %2317 }
 0x2c7   : > { %v2423_v61 = vsel %vm772_vm4, %v2391_v5, %v2318_v22  ;;  %v7588_v30 = vld [vmem:[#allocation3 + $0xb0] sm:$0xff] }
 0x2c8   : > { %2455 = vst.msk [vmem:[#allocation3 + $0xc0] sm:$0xff] %vm349_vm1, %v2423_v61  ;;  %v2200_v31 = vpop.permute.xlu1 %2199  ;;  %5990 = vmatprep.mubr.msk.f32.mxu1 %vm349_vm1, %v7588_v30  ;;  %6045 = vmatprep.mubr.msk.f32.mxu0 %vm349_vm1, %v7588_v30 }
 0x2c9   : > { %5991 = vmatmul.mubr.msk.f32.gmra.mxu1 %vm349_vm1, %v7595_v8  ;;  %6046 = vmatmul.mubr.msk.f32.gmra.mxu0 %vm349_vm1, %v7595_v8  ;;  %v2396_v7 = vsel %vm387_vm2, %v2076_v6, %v2200_v31 }
 0x2ca   : > { %v2198_v36 = vpop.permute.xlu0 %2197 }
 0x2cb   : > { %v2395_v29 = vsel %vm387_vm2, %v2075_v15, %v2198_v36  ;;  %v6014_v15 = vpop.f32.mrf.mxu0 }
 0x2cc   : > { %v2324_v37 = vpop.permute.xlu1 %2323 }
 0x2cd   : > { %v2426_v44 = vsel %vm772_vm4, %v2394_v28, %v2324_v37  ;;  %v7613_v23 = vld [vmem:[#allocation3 + $0xc8] sm:$0xff] }
 0x2ce   : > { %2458 = vst.msk [vmem:[#allocation3 + $0xd8] sm:$0xff] %vm349_vm1, %v2426_v44  ;;  %v2322_v27 = vpop.permute.xlu0 %2321 }
 0x2cf   : > { %v2425_v62 = vsel %vm772_vm4, %v2393_v26, %v2322_v27  ;;  %v7606_v12 = vld [vmem:[#allocation3 + $0xc0] sm:$0xff] }
 0x2d0   : > { %2457 = vst.msk [vmem:[#allocation3 + $0xd0] sm:$0xff] %vm349_vm1, %v2425_v62  ;;  %v2204_v43 = vpop.permute.xlu1 %2203  ;;  %5993 = vmatprep.mubr.msk.f32.mxu1 %vm349_vm1, %v7606_v12  ;;  %6048 = vmatprep.mubr.msk.f32.mxu0 %vm349_vm1, %v7606_v12 }
 0x2d1   : > { %5994 = vmatmul.mubr.msk.f32.gmra.mxu1 %vm349_vm1, %v7613_v23  ;;  %6049 = vmatmul.mubr.msk.f32.gmra.mxu0 %vm349_vm1, %v7613_v23  ;;  %v2398_v41 = vsel %vm387_vm2, %v2078_v49, %v2204_v43 }
 0x2d2   : > { %v2202_v32 = vpop.permute.xlu0 %2201 }
 0x2d3   : > { %v2397_v48 = vsel %vm387_vm2, %v2077_v53, %v2202_v32 }
 0x2d4   : > { %v2328_v45 = vpop.permute.xlu1 %2327 }
 0x2d5   : > { %v2428_v47 = vsel %vm772_vm4, %v2396_v7, %v2328_v45  ;;  %v7631_v3 = vld [vmem:[#allocation3 + $0xd8] sm:$0xff] }
 0x2d6   : > { %2460 = vst.msk [vmem:[#allocation3 + $0xe8] sm:$0xff] %vm349_vm1, %v2428_v47  ;;  %v2326_v51 = vpop.permute.xlu0 %2325 }
 0x2d7   : > { %v2427_v33 = vsel %vm772_vm4, %v2395_v29, %v2326_v51  ;;  %v7624_v52 = vld [vmem:[#allocation3 + $0xd0] sm:$0xff]  ;;  %v3024_v29 = vpop.f32.mrf.mxu0 }
 0x2d8   : > { %2459 = vst.msk [vmem:[#allocation3 + $0xe0] sm:$0xff] %vm349_vm1, %v2427_v33  ;;  %v2208_v40 = vpop.permute.xlu1 %2207  ;;  %5996 = vmatprep.mubr.msk.f32.mxu1 %vm349_vm1, %v7624_v52  ;;  %6051 = vmatprep.mubr.msk.f32.mxu0 %vm349_vm1, %v7624_v52 }
 0x2d9   : > { %5997 = vmatmul.mubr.msk.f32.gmra.mxu1 %vm349_vm1, %v7631_v3  ;;  %6052 = vmatmul.mubr.msk.f32.gmra.mxu0 %vm349_vm1, %v7631_v3  ;;  %v2400_v2 = vsel %vm387_vm2, %v2080_v19, %v2208_v40 }
 0x2da   : > { %v2206_v10 = vpop.permute.xlu0 %2205 }
 0x2db   : > { %v2399_v5 = vsel %vm387_vm2, %v2079_v25, %v2206_v10 }
 0x2dc   : > { %v2332_v60 = vpop.permute.xlu1 %2331 }
 0x2dd   : > { %v2430_v57 = vsel %vm772_vm4, %v2398_v41, %v2332_v60  ;;  %v7650_v24 = vld [vmem:[#allocation3 + $0xe8] sm:$0xff] }
 0x2de   : > { %2462 = vst.msk [vmem:[#allocation3 + $0xf8] sm:$0xff] %vm349_vm1, %v2430_v57  ;;  %v2330_v0 = vpop.permute.xlu0 %2329 }
 0x2df   : > { %v2429_v39 = vsel %vm772_vm4, %v2397_v48, %v2330_v0  ;;  %v7642_v14 = vld [vmem:[#allocation3 + $0xe0] sm:$0xff] }
 0x2e0   : > { %2461 = vst.msk [vmem:[#allocation3 + $0xf0] sm:$0xff] %vm349_vm1, %v2429_v39  ;;  %v2336_v21 = vpop.permute.xlu1 %2335  ;;  %5999 = vmatprep.mubr.msk.f32.mxu1 %vm349_vm1, %v7642_v14  ;;  %6054 = vmatprep.mubr.msk.f32.mxu0 %vm349_vm1, %v7642_v14 }
 0x2e1   : > { %v2432_v20 = vsel %vm772_vm4, %v2400_v2, %v2336_v21  ;;  %6000 = vmatmul.mubr.msk.f32.gmra.mxu1 %vm349_vm1, %v7650_v24  ;;  %6055 = vmatmul.mubr.msk.f32.gmra.mxu0 %vm349_vm1, %v7650_v24 }
 0x2e2   : > { %2464 = vst.msk [vmem:[#allocation3 + $0x108] sm:$0xff] %vm349_vm1, %v2432_v20  ;;  %v2334_v22 = vpop.permute.xlu0 %2333 }
 0x2e3   : > { %v2431_v61 = vsel %vm772_vm4, %v2399_v5, %v2334_v22 }
 0x2e4   : > { %2463 = vst.msk [vmem:[#allocation3 + $0x100] sm:$0xff] %vm349_vm1, %v2431_v61 }
 0x2e5   : > { %v2529_v36 = vld [vmem:[#allocation3 + $0xf8] sm:$0xff] }
 0x2e7   : > { %v2528_v31 = vld [vmem:[#allocation3 + $0xf0] sm:$0xff] }
 0x2e8   : > { %6002 = vmatprep.mubr.msk.f32.mxu1 %vm349_vm1, %v2528_v31  ;;  %6057 = vmatprep.mubr.msk.f32.mxu0 %vm349_vm1, %v2528_v31 }
 0x2e9   : > { %6003 = vmatmul.mubr.msk.f32.gmra.mxu1 %vm349_vm1, %v2529_v36  ;;  %6058 = vmatmul.mubr.msk.f32.gmra.mxu0 %vm349_vm1, %v2529_v36  ;;  %v2531_v28 = vld [vmem:[#allocation3 + $0x108] sm:$0xff] }
 0x2eb   : > { %v2530_v38 = vld [vmem:[#allocation3 + $0x100] sm:$0xff] }
 0x2ec   : > { %6005 = vmatprep.mubr.msk.f32.mxu1 %vm349_vm1, %v2530_v38 }
 0x2ed   : > { %6006 = vmatmul.mubr.msk.f32.gmra.mxu1 %vm349_vm1, %v2531_v28 }
 0x2ee   : > { %6064 = vmatprep.mubr.msk.f32.mxu1 %vm349_vm1, %v7426_v63  ;;  %v7708_v63 = vld [vmem:[%s8706_s3] ss:$0 sm:$0xff] }
 0x2f1   : > { %6065 = vmatmul.mubr.msk.f32.vlgmr.msra.gmra.mxu1 %vm349_vm1, %v7433_v56  ;;  %v6192_v56 = vld [vmem:[#allocation3] sm:$0xff] }
 0x2f2   : > { %6067 = vmatprep.mubr.msk.f32.mxu1 %vm349_vm1, %v7444_v18  ;;  %v4128_v18 = vmul.f32 %v6192_v56, %v7708_v63 }
 0x2f5   : > { %6068 = vmatmul.mubr.msk.f32.gmra.mxu1 %vm349_vm1, %v7451_v42  ;;  %v4160_v42 = vsel %vm349_vm1, %v4128_v18, 0.0 }
 0x2f6   : > { %6070 = vmatprep.mubr.msk.f32.mxu1 %vm349_vm1, %v7462_v54  ;;  %4161 = vadd.xlane.f32.xlu1 %v4160_v42  ;;  %v6193_v54 = vld [vmem:[#allocation3 + $0x8] sm:$0xff] }
 0x2f9   : > { %6071 = vmatmul.mubr.msk.f32.gmra.mxu1 %vm349_vm1, %v7469_v58  ;;  %v4129_v58 = vmul.f32 %v6193_v54, %v7708_v63 }
 0x2fa   : > { %6073 = vmatprep.mubr.msk.f32.mxu1 %vm349_vm1, %v7480_v9  ;;  %v3213_v9 = vld [vmem:[#allocation3 + $0x110] sm:$0xff] }
 0x2fd   : > { %6074 = vmatmul.mubr.msk.f32.gmra.mxu1 %vm349_vm1, %v7487_v17  ;;  %v7722_v17 = vld [vmem:[%s8706_s3 + $0x2] ss:$0 sm:$0xff] }
 0x2fe   : > { %6076 = vmatprep.mubr.msk.f32.mxu1 %vm349_vm1, %v7498_v4  ;;  %v4163_v4 = vsel %vm349_vm1, %v4129_v58, 0.0 }
 0x2ff   : > { %4164 = vadd.xlane.f32.xlu0 %v4163_v4 }
 0x301   : > { %6077 = vmatmul.mubr.msk.f32.gmra.mxu1 %vm349_vm1, %v7505_v59  ;;  %v4552_v59 = vmul.f32 %v7722_v17, %v3213_v9 }
 0x302   : > { %6079 = vmatprep.mubr.msk.f32.mxu1 %vm349_vm1, %v7516_v1  ;;  %v3214_v1 = vld [vmem:[#allocation3 + $0x118] sm:$0xff] }
 0x305   : > { %6080 = vmatmul.mubr.msk.f32.gmra.mxu1 %vm349_vm1, %v7523_v11  ;;  %v4644_v11 = vsel %vm349_vm1, %v4552_v59, 0.0 }
 0x306   : > { %6082 = vmatprep.mubr.msk.f32.mxu1 %vm349_vm1, %v7534_v35  ;;  %v4553_v35 = vmul.f32 %v7722_v17, %v3214_v1  ;;  %4645 = vadd.xlane.f32.xlu1 %v4644_v11 }
 0x309   : > { %6083 = vmatmul.mubr.msk.f32.gmra.mxu1 %vm349_vm1, %v7541_v34  ;;  %v4647_v34 = vsel %vm349_vm1, %v4553_v35, 0.0 }
 0x30a   : > { %6085 = vmatprep.mubr.msk.f32.mxu1 %vm349_vm1, %v7552_v50  ;;  %4648 = vadd.xlane.f32.xlu0 %v4647_v34 }
 0x30d   : > { %6086 = vmatmul.mubr.msk.f32.gmra.mxu1 %vm349_vm1, %v7559_v46 }
 0x30e   : > { %6088 = vmatprep.mubr.msk.f32.mxu1 %vm349_vm1, %v7570_v16 }
 0x311   : > { %6089 = vmatmul.mubr.msk.f32.gmra.mxu1 %vm349_vm1, %v7577_v13 }
 0x312   : > { %6091 = vmatprep.mubr.msk.f32.mxu1 %vm349_vm1, %v7588_v30 }
 0x315   : > { %6092 = vmatmul.mubr.msk.f32.gmra.mxu1 %vm349_vm1, %v7595_v8 }
 0x316   : > { %6094 = vmatprep.mubr.msk.f32.mxu1 %vm349_vm1, %v7606_v12 }
 0x319   : > { %6095 = vmatmul.mubr.msk.f32.gmra.mxu1 %vm349_vm1, %v7613_v23 }
 0x31a   : > { %6097 = vmatprep.mubr.msk.f32.mxu1 %vm349_vm1, %v7624_v52 }
 0x31d   : > { %6098 = vmatmul.mubr.msk.f32.gmra.mxu1 %vm349_vm1, %v7631_v3 }
 0x31e   : > { %6100 = vmatprep.mubr.msk.f32.mxu1 %vm349_vm1, %v7642_v14 }
 0x321   : > { %6101 = vmatmul.mubr.msk.f32.gmra.mxu1 %vm349_vm1, %v7650_v24 }
 0x322   : > { %6103 = vmatprep.mubr.msk.f32.mxu1 %vm349_vm1, %v2528_v31  ;;  %v7804_v31 = vld [vmem:[%s8705_s2 + $0x1] ss:$0 sm:$0xff] }
 0x325   : > { %6104 = vmatmul.mubr.msk.f32.gmra.mxu1 %vm349_vm1, %v2529_v36 }
 0x326   : > { %6106 = vmatprep.mubr.msk.f32.mxu1 %vm349_vm1, %v2530_v38 }
 0x329   : > { %6107 = vmatmul.mubr.msk.f32.gmra.mxu1 %vm349_vm1, %v2531_v28 }
 0x32a   : > { %6109 = vmatprep.mubr.msk.f32.mxu1 %vm349_vm1, %v3213_v9 }
 0x32d   : > { %6110 = vmatmul.mubr.msk.f32.gmra.mxu1 %vm349_vm1, %v3214_v1 }
 0x339   : > { %v5962_v50 = vpop.f32.mrf.mxu1  ;;  %v6017_v33 = vpop.f32.mrf.mxu0 }
 0x33a   : > { %v3030_v5 = vadd.f32 %v6014_v15, %v5962_v50 }
 0x33b   : > { %v2700_v46 = vpop.f32.mrf.mxu1  ;;  %v3034_v3 = vpop.f32.mrf.mxu0 }
 0x33c   : > { %v3025_v36 = vadd.f32 %v3024_v29, %v2700_v46 }
 0x341   : > { %v5965_v16 = vpop.f32.mrf.mxu1  ;;  %v6020_v10 = vpop.f32.mrf.mxu0 }
 0x342   : > { %v3040_v18 = vadd.f32 %v6017_v33, %v5965_v16 }
 0x343   : > { %v2710_v13 = vpop.f32.mrf.mxu1  ;;  %v3044_v60 = vpop.f32.mrf.mxu0 }
 0x344   : > { %v3035_v9 = vadd.f32 %v3034_v3, %v2710_v13 }
 0x349   : > { %v5968_v30 = vpop.f32.mrf.mxu1  ;;  %v6023_v53 = vpop.f32.mrf.mxu0 }
 0x34a   : > { %v3050_v34 = vadd.f32 %v6020_v10, %v5968_v30 }
 0x34b   : > { %v7743_v8 = vpop.f32.mrf.mxu1  ;;  %v3054_v0 = vpop.f32.mrf.mxu0 }
 0x34c   : > { %v3045_v13 = vadd.f32 %v3044_v60, %v7743_v8 }
 0x351   : > { %v7745_v37 = vpop.f32.mrf.mxu1  ;;  %v6026_v19 = vpop.f32.mrf.mxu0 }
 0x352   : > { %v3060_v10 = vadd.f32 %v6023_v53, %v7745_v37 }
 0x353   : > { %v7747_v55 = vpop.f32.mrf.mxu1  ;;  %v3064_v2 = vpop.f32.mrf.mxu0 }
 0x359   : > { %v7749_v44 = vpop.f32.mrf.mxu1  ;;  %v7793_v24 = vpop.f32.mrf.mxu0 }
 0x35b   : > { %v7751_v26 = vpop.f32.mrf.mxu1  ;;  %v7799_v22 = vpop.f32.mrf.mxu0 }
 0x361   : > { %v7753_v27 = vpop.f32.mrf.mxu1  ;;  %v7806_v28 = vpop.f32.mrf.mxu0 }
 0x363   : > { %v7755_v62 = vpop.f32.mrf.mxu1  ;;  %v7810_v11 = vpop.f32.mrf.mxu0 }
 0x369   : > { %v7757_v12 = vpop.f32.mrf.mxu1  ;;  %v7815_v16 = vpop.f32.mrf.mxu0 }
 0x36b   : > { %v7759_v43 = vpop.f32.mrf.mxu1  ;;  %v7825_v8 = vpop.f32.mrf.mxu0 }
 0x371   : > { %v7761_v23 = vpop.f32.mrf.mxu1  ;;  %v7831_v37 = vpop.f32.mrf.mxu0 }
 0x373   : > { %v7763_v32 = vpop.f32.mrf.mxu1 }
 0x379   : > { %v7765_v6 = vpop.f32.mrf.mxu1 }
 0x37b   : > { %v7767_v7 = vpop.f32.mrf.mxu1 }
 0x381   : > { %v7769_v45 = vpop.f32.mrf.mxu1 }
 0x383   : > { %v7771_v47 = vpop.f32.mrf.mxu1 }
 0x389   : > { %v7773_v51 = vpop.f32.mrf.mxu1 }
 0x38b   : > { %v7775_v52 = vpop.f32.mrf.mxu1 }
 0x391   : > { %v7777_v40 = vpop.f32.mrf.mxu1 }
 0x393   : > { %v7779_v49 = vpop.f32.mrf.mxu1 }
 0x399   : > { %v7781_v41 = vpop.f32.mrf.mxu1 }
 0x39b   : > { %v7783_v57 = vpop.f32.mrf.mxu1 }
 0x3a1   : > { %v7785_v48 = vpop.f32.mrf.mxu1 }
 0x3a3   : > { %v7787_v39 = vpop.f32.mrf.mxu1 }
 0x3a9   : > { %v7789_v14 = vpop.f32.mrf.mxu1 }
 0x3ab   : > { %v7791_v21 = vpop.f32.mrf.mxu1 }
 0x3ad   : > { %v7795_v25 = vpop.f32.mrf.mxu1 }
 0x3af   : > { %v7797_v20 = vpop.f32.mrf.mxu1 }
 0x3b1   : > { %v6066_v61 = vpop.f32.mrf.mxu1 }
 0x3b2   : > { %v3543_v38 = vadd.f32 %v6066_v61, %v3030_v5 }
 0x3b3   : > { %v3383_v56 = vpop.f32.mrf.mxu1 }
 0x3b4   : > { %v3580_v42 = vadd.f32 %v7804_v31, %v3543_v38  ;;  %v3542_v54 = vadd.f32 %v3383_v56, %v3025_v36  ;;  %v3055_v56 = vadd.f32 %v3054_v0, %v7747_v55  ;;  %v3065_v0 = vadd.f32 %v3064_v2, %v7751_v26 }
 0x3b5   : > { %v6069_v58 = vpop.f32.mrf.mxu1 }
 0x3b6   : > { %v3612_v4 = vmax.f32 %v3580_v42, 0.0  ;;  %v3579_v59 = vadd.f32 %v7804_v31, %v3542_v54  ;;  %v3545_v1 = vadd.f32 %v6069_v58, %v3040_v18  ;;  %v3070_v58 = vadd.f32 %v6026_v19, %v7749_v44  ;;  %v3104_v44 = vpop.f32.mrf.mxu0 }
 0x3b7   : > { %v3393_v35 = vpop.f32.mrf.mxu1 }
 0x3b8   : > { %3644 = vst.msk [vmem:[#allocation2 + $0x9] sm:$0xff] %vm387_vm2, %v3612_v4  ;;  %v3611_v50 = vmax.f32 %v3579_v59, 0.0  ;;  %v3582_v46 = vadd.f32 %v7804_v31, %v3545_v1  ;;  %v3544_v15 = vadd.f32 %v3393_v35, %v3035_v9  ;;  %3773 = vrot.lane.b32.xlu1 %v3612_v4, %s6289_s25  ;;  %v6041_v2 = vpop.f32.mrf.mxu0 }
 0x3b9   : > { %v6072_v29 = vpop.f32.mrf.mxu1 }
 0x3ba   : > { %3643 = vst.msk [vmem:[#allocation2 + $0x1] sm:$0xff] %vm387_vm2, %v3611_v50  ;;  %v3614_v33 = vmax.f32 %v3582_v46, 0.0  ;;  %v3581_v3 = vadd.f32 %v7804_v31, %v3544_v15  ;;  %v3547_v5 = vadd.f32 %v6072_v29, %v3050_v34  ;;  %3771 = vrot.lane.b32.xlu0 %v3611_v50, %s6289_s25  ;;  %v3080_v46 = vadd.f32 %v7793_v24, %v7753_v27 }
 0x3bb   : > { %v3403_v30 = vpop.f32.mrf.mxu1 }
 0x3bc   : > { %3646 = vst.msk [vmem:[#allocation2 + $0x21] sm:$0xff] %vm387_vm2, %v3614_v33  ;;  %v3613_v61 = vmax.f32 %v3581_v3, 0.0  ;;  %v3584_v36 = vadd.f32 %v7804_v31, %v3547_v5  ;;  %v3546_v38 = vadd.f32 %v3403_v30, %v3045_v13  ;;  %3777 = vrot.lane.b32.xlu1 %v3614_v33, %s6289_s25  ;;  %v3075_v3 = vadd.f32 %v7799_v22, %v7755_v62 }
 0x3bd   : > { %v6075_v60 = vpop.f32.mrf.mxu1 }
 0x3be   : > { %3645 = vst.msk [vmem:[#allocation2 + $0x19] sm:$0xff] %vm387_vm2, %v3613_v61  ;;  %v3616_v18 = vmax.f32 %v3584_v36, 0.0  ;;  %v3583_v42 = vadd.f32 %v7804_v31, %v3546_v38  ;;  %v3549_v54 = vadd.f32 %v6075_v60, %v3060_v10  ;;  %3775 = vrot.lane.b32.xlu0 %v3613_v61, %s6289_s25  ;;  %v3090_v61 = vadd.f32 %v7806_v28, %v7757_v12  ;;  %v3114_v38 = vpop.f32.mrf.mxu0 }
 0x3bf   : > { %v3413_v53 = vpop.f32.mrf.mxu1  ;;  %v3708_v50 = vld [vmem:[#allocation2 + $0xa] sm:$0xff] }
 0x3c0   : > { %3648 = vst.msk [vmem:[#allocation2 + $0x39] sm:$0xff] %vm387_vm2, %v3616_v18  ;;  %v3615_v9 = vmax.f32 %v3583_v42, 0.0  ;;  %v3586_v4 = vadd.f32 %v7804_v31, %v3549_v54  ;;  %v3548_v59 = vadd.f32 %v3413_v53, %v3055_v56  ;;  %3781 = vrot.lane.b32.xlu1 %v3616_v18, %s6289_s25  ;;  %v3085_v18 = vadd.f32 %v7810_v11, %v7759_v43  ;;  %v6044_v54 = vpop.f32.mrf.mxu0 }
 0x3c1   : > { %v6078_v55 = vpop.f32.mrf.mxu1  ;;  %v3707_v33 = vld [vmem:[#allocation2 + $0x2] sm:$0xff] }
 0x3c2   : > { %3647 = vst.msk [vmem:[#allocation2 + $0x31] sm:$0xff] %vm387_vm2, %v3615_v9  ;;  %v3618_v1 = vmax.f32 %v3586_v4, 0.0  ;;  %v3585_v35 = vadd.f32 %v7804_v31, %v3548_v59  ;;  %v3551_v34 = vadd.f32 %v6078_v55, %v3070_v58  ;;  %3779 = vrot.lane.b32.xlu0 %v3615_v9, %s6289_s25  ;;  %v3100_v58 = vadd.f32 %v7815_v16, %v7761_v23 }
 0x3c3   : > { %v3423_v19 = vpop.f32.mrf.mxu1  ;;  %v3710_v10 = vld [vmem:[#allocation2 + $0x22] sm:$0xff]  ;;  %v3095_v59 = vadd.f32 %v7825_v8, %v7763_v32 }
 0x3c4   : > { %3650 = vst.msk [vmem:[#allocation2 + $0x51] sm:$0xff] %vm387_vm2, %v3618_v1  ;;  %v3617_v15 = vmax.f32 %v3585_v35, 0.0  ;;  %v7845_v29 = vadd.f32 %v7804_v31, %v3551_v34  ;;  %v3550_v26 = vadd.f32 %v3423_v19, %v3065_v0  ;;  %3901 = vrot.lane.b32.xlu1 %v3708_v50, %s6290_s26  ;;  %v3124_v0 = vpop.f32.mrf.mxu0 }
 0x3c5   : > { %v6081_v13 = vpop.f32.mrf.mxu1  ;;  %v3709_v56 = vld [vmem:[#allocation2 + $0x1a] sm:$0xff] }
 0x3c6   : > { %3649 = vst.msk [vmem:[#allocation2 + $0x49] sm:$0xff] %vm387_vm2, %v3617_v15  ;;  %v3620_v5 = vmax.f32 %v7845_v29, 0.0  ;;  %v7853_v27 = vadd.f32 %v7804_v31, %v3550_v26  ;;  %v3553_v24 = vadd.f32 %v6081_v13, %v3080_v46  ;;  %3899 = vrot.lane.b32.xlu0 %v3707_v33, %s6290_s26  ;;  %v6047_v50 = vpop.f32.mrf.mxu0  ;;  %v3105_v29 = vadd.f32 %v3104_v44, %v7767_v7 }
 0x3c7   : > { %v3433_v30 = vpop.f32.mrf.mxu1  ;;  %v3712_v34 = vld [vmem:[#allocation2 + $0x3a] sm:$0xff]  ;;  %v3120_v33 = vadd.f32 %v6041_v2, %v7769_v45 }
 0x3c8   : > { %3652 = vst.msk [vmem:[#allocation2 + $0x69] sm:$0xff] %vm387_vm2, %v3620_v5  ;;  %v3619_v36 = vmax.f32 %v7853_v27, 0.0  ;;  %v7861_v62 = vadd.f32 %v7804_v31, %v3553_v24  ;;  %v3552_v22 = vadd.f32 %v3433_v30, %v3075_v3  ;;  %3905 = vrot.lane.b32.xlu1 %v3710_v10, %s6290_s26  ;;  %v3134_v27 = vpop.f32.mrf.mxu0  ;;  %v3115_v30 = vadd.f32 %v3114_v38, %v7771_v47 }
 0x3c9   : > { %v6084_v60 = vpop.f32.mrf.mxu1 }
 0x3ca   : > { %3651 = vst.msk [vmem:[#allocation2 + $0x61] sm:$0xff] %vm387_vm2, %v3619_v36  ;;  %v3622_v12 = vmax.f32 %v7861_v62, 0.0  ;;  %v7869_v28 = vadd.f32 %v7804_v31, %v3552_v22  ;;  %v3555_v42 = vadd.f32 %v6084_v60, %v3090_v61  ;;  %3903 = vrot.lane.b32.xlu0 %v3709_v56, %s6290_s26  ;;  %v6050_v61 = vpop.f32.mrf.mxu0 }
 0x3cb   : > { %v3443_v53 = vpop.f32.mrf.mxu1  ;;  %v3714_v60 = vld [vmem:[#allocation2 + $0x52] sm:$0xff] }
 0x3cc   : > { %3654 = vst.msk [vmem:[#allocation2 + $0x81] sm:$0xff] %vm387_vm2, %v3622_v12  ;;  %v3621_v43 = vmax.f32 %v7869_v28, 0.0  ;;  %v7879_v11 = vadd.f32 %v7804_v31, %v3555_v42  ;;  %v3554_v9 = vadd.f32 %v3443_v53, %v3085_v18  ;;  %3785 = vrot.lane.b32.xlu1 %v3618_v1, %s6289_s25  ;;  %v3110_v1 = vadd.f32 %v7831_v37, %v7765_v6 }
 0x3cd   : > { %v6087_v4 = vpop.f32.mrf.mxu1  ;;  %v3713_v42 = vld [vmem:[#allocation2 + $0x4a] sm:$0xff] }
 0x3ce   : > { %3653 = vst.msk [vmem:[#allocation2 + $0x79] sm:$0xff] %vm387_vm2, %v3621_v43  ;;  %v3624_v23 = vmax.f32 %v7879_v11, 0.0  ;;  %v7889_v16 = vadd.f32 %v7804_v31, %v3554_v9  ;;  %v3557_v55 = vadd.f32 %v6087_v4, %v3100_v58  ;;  %3783 = vrot.lane.b32.xlu0 %v3617_v15, %s6289_s25  ;;  %v3711_v15 = vld [vmem:[#allocation2 + $0x32] sm:$0xff]  ;;  %v3144_v58 = vpop.f32.mrf.mxu0  ;;  %v3140_v4 = vadd.f32 %v6047_v50, %v7777_v40 }
 0x3cf   : > { %v3453_v35 = vpop.f32.mrf.mxu1  ;;  %v3150_v50 = vadd.f32 %v6050_v61, %v7781_v41 }
 0x3d0   : > { %3656 = vst.msk [vmem:[#allocation2 + $0x99] sm:$0xff] %vm387_vm2, %v3624_v23  ;;  %v3623_v32 = vmax.f32 %v7889_v16, 0.0  ;;  %v7899_v8 = vadd.f32 %v7804_v31, %v3557_v55  ;;  %v3556_v19 = vadd.f32 %v3453_v35, %v3095_v59  ;;  %3909 = vrot.lane.b32.xlu1 %v3712_v34, %s6290_s26  ;;  %v3135_v34 = vadd.f32 %v3134_v27, %v7779_v49 }
 0x3d1   : > { %v6090_v46 = vpop.f32.mrf.mxu1  ;;  %v3715_v28 = vld [vmem:[#allocation2 + $0x62] sm:$0xff] }
 0x3d2   : > { %3655 = vst.msk [vmem:[#allocation2 + $0x91] sm:$0xff] %vm387_vm2, %v3623_v32  ;;  %v3626_v6 = vmax.f32 %v7899_v8, 0.0  ;;  %v7908_v37 = vadd.f32 %v7804_v31, %v3556_v19  ;;  %v3559_v26 = vadd.f32 %v6090_v46, %v3110_v1  ;;  %3907 = vrot.lane.b32.xlu0 %v3711_v15, %s6290_s26 }
 0x3d3   : > { %v3463_v13 = vpop.f32.mrf.mxu1 }
 0x3d4   : > { %3658 = vst.msk [vmem:[#allocation2 + $0xb1] sm:$0xff] %vm387_vm2, %v3626_v6  ;;  %v3625_v7 = vmax.f32 %v7908_v37, 0.0  ;;  %v7917_v44 = vadd.f32 %v7804_v31, %v3559_v26  ;;  %v3558_v3 = vadd.f32 %v3463_v13, %v3105_v29  ;;  %3789 = vrot.lane.b32.xlu1 %v3620_v5, %s6289_s25  ;;  %v3130_v5 = vadd.f32 %v6044_v54, %v7773_v51 }
 0x3d5   : > { %v6093_v24 = vpop.f32.mrf.mxu1  ;;  %v3717_v37 = vld [vmem:[#allocation2 + $0x7a] sm:$0xff] }
 0x3d6   : > { %3657 = vst.msk [vmem:[#allocation2 + $0xa9] sm:$0xff] %vm387_vm2, %v3625_v7  ;;  %v3628_v45 = vmax.f32 %v7917_v44, 0.0  ;;  %v7926_v2 = vadd.f32 %v7804_v31, %v3558_v3  ;;  %v3561_v10 = vadd.f32 %v6093_v24, %v3120_v33  ;;  %3787 = vrot.lane.b32.xlu0 %v3619_v36, %s6289_s25  ;;  %v3125_v36 = vadd.f32 %v3124_v0, %v7775_v52  ;;  %v6053_v0 = vpop.f32.mrf.mxu0 }
 0x3d7   : > { %v3473_v22 = vpop.f32.mrf.mxu1  ;;  %v3160_v24 = vadd.f32 %v6053_v0, %v7785_v48 }
 0x3d8   : > { %3660 = vst.msk [vmem:[#allocation2 + $0xc9] sm:$0xff] %vm387_vm2, %v3628_v45  ;;  %v3627_v47 = vmax.f32 %v7926_v2, 0.0  ;;  %v7935_v38 = vadd.f32 %v7804_v31, %v3561_v10  ;;  %v3560_v56 = vadd.f32 %v3473_v22, %v3115_v30  ;;  %3913 = vrot.lane.b32.xlu1 %v3714_v60, %s6290_s26  ;;  %v3154_v29 = vpop.f32.mrf.mxu0 }
 0x3d9   : > { %v6096_v18 = vpop.f32.mrf.mxu1  ;;  %v3155_v22 = vadd.f32 %v3154_v29, %v7787_v39 }
 0x3da   : > { %3659 = vst.msk [vmem:[#allocation2 + $0xc1] sm:$0xff] %vm387_vm2, %v3627_v47  ;;  %v3630_v51 = vmax.f32 %v7935_v38, 0.0  ;;  %v7944_v54 = vadd.f32 %v7804_v31, %v3560_v56  ;;  %v3563_v53 = vadd.f32 %v6096_v18, %v3130_v5  ;;  %3911 = vrot.lane.b32.xlu0 %v3713_v42, %s6290_s26  ;;  %v6056_v3 = vpop.f32.mrf.mxu0 }
 0x3db   : > { %v3483_v9 = vpop.f32.mrf.mxu1 }
 0x3dc   : > { %3662 = vst.msk [vmem:[#allocation2 + $0xe1] sm:$0xff] %vm387_vm2, %v3630_v51  ;;  %v3629_v52 = vmax.f32 %v7944_v54, 0.0  ;;  %v7953_v59 = vadd.f32 %v7804_v31, %v3563_v53  ;;  %v3562_v55 = vadd.f32 %v3483_v9, %v3125_v36  ;;  %3793 = vrot.lane.b32.xlu1 %v3622_v12, %s6289_s25  ;;  %v3716_v12 = vld [vmem:[#allocation2 + $0x6a] sm:$0xff]  ;;  %v3164_v56 = vpop.f32.mrf.mxu0 }
 0x3dd   : > { %v6099_v35 = vpop.f32.mrf.mxu1  ;;  %v3165_v36 = vadd.f32 %v3164_v56, %v7791_v21  ;;  %v3721_v44 = vld [vmem:[#allocation2 + $0xaa] sm:$0xff] }
 0x3de   : > { %3661 = vst.msk [vmem:[#allocation2 + $0xd9] sm:$0xff] %vm387_vm2, %v3629_v52  ;;  %v3632_v40 = vmax.f32 %v7953_v59, 0.0  ;;  %v7964_v1 = vadd.f32 %v7804_v31, %v3562_v55  ;;  %v3565_v19 = vadd.f32 %v6099_v35, %v3140_v4  ;;  %3791 = vrot.lane.b32.xlu0 %v3621_v43, %s6289_s25  ;;  %v3145_v43 = vadd.f32 %v3144_v58, %v7783_v57  ;;  %v6059_v16 = vpop.f32.mrf.mxu0 }
 0x3df   : > { %v3493_v62 = vpop.f32.mrf.mxu1  ;;  %v3180_v9 = vadd.f32 %v6059_v16, %v7795_v25 }
 0x3e0   : > { %3664 = vst.msk [vmem:[#allocation2 + $0xf9] sm:$0xff] %vm387_vm2, %v3632_v40  ;;  %v3631_v49 = vmax.f32 %v7964_v1, 0.0  ;;  %v7975_v46 = vadd.f32 %v7804_v31, %v3565_v19  ;;  %v3564_v15 = vadd.f32 %v3493_v62, %v3135_v34  ;;  %3917 = vrot.lane.b32.xlu1 %v3716_v12, %s6290_s26  ;;  %v3174_v0 = vpop.f32.mrf.mxu0 }
 0x3e1   : > { %v6102_v26 = vpop.f32.mrf.mxu1  ;;  %v3723_v2 = vld [vmem:[#allocation2 + $0xc2] sm:$0xff] }
 0x3e2   : > { %3663 = vst.msk [vmem:[#allocation2 + $0xf1] sm:$0xff] %vm387_vm2, %v3631_v49  ;;  %v3634_v41 = vmax.f32 %v7975_v46, 0.0  ;;  %v7984_v13 = vadd.f32 %v7804_v31, %v3564_v15  ;;  %v3567_v33 = vadd.f32 %v6102_v26, %v3150_v50  ;;  %3915 = vrot.lane.b32.xlu0 %v3715_v28, %s6290_s26  ;;  %v3720_v26 = vld [vmem:[#allocation2 + $0x9a] sm:$0xff] }
 0x3e3   : > { %v3503_v27 = vpop.f32.mrf.mxu1 }
 0x3e4   : > { %3666 = vst.msk [vmem:[#allocation2 + $0x111] sm:$0xff] %vm387_vm2, %v3634_v41  ;;  %v3633_v57 = vmax.f32 %v7984_v13, 0.0  ;;  %v7993_v30 = vadd.f32 %v7804_v31, %v3567_v33  ;;  %v3566_v10 = vadd.f32 %v3503_v27, %v3145_v43  ;;  %3797 = vrot.lane.b32.xlu1 %v3624_v23, %s6289_s25  ;;  %v3170_v23 = vadd.f32 %v6056_v3, %v7789_v14  ;;  %v3719_v43 = vld [vmem:[#allocation2 + $0x92] sm:$0xff] }
 0x3e5   : > { %v6105_v61 = vpop.f32.mrf.mxu1  ;;  %v3725_v38 = vld [vmem:[#allocation2 + $0xda] sm:$0xff] }
 0x3e6   : > { %3665 = vst.msk [vmem:[#allocation2 + $0x109] sm:$0xff] %vm387_vm2, %v3633_v57  ;;  %v3636_v48 = vmax.f32 %v7993_v30, 0.0  ;;  %v8004_v60 = vadd.f32 %v7804_v31, %v3566_v10  ;;  %v3569_v5 = vadd.f32 %v6105_v61, %v3160_v24  ;;  %3795 = vrot.lane.b32.xlu0 %v3623_v32, %s6289_s25 }
 0x3e7   : > { %v3513_v11 = vpop.f32.mrf.mxu1 }
 0x3e8   : > { %3668 = vst.msk [vmem:[#allocation2 + $0x129] sm:$0xff] %vm387_vm2, %v3636_v48  ;;  %v3635_v39 = vmax.f32 %v8004_v60, 0.0  ;;  %v8015_v18 = vadd.f32 %v7804_v31, %v3569_v5  ;;  %v3568_v42 = vadd.f32 %v3513_v11, %v3155_v22  ;;  %3801 = vrot.lane.b32.xlu1 %v3626_v6, %s6289_s25  ;;  %v3718_v6 = vld [vmem:[#allocation2 + $0x82] sm:$0xff] }
 0x3e9   : > { %v6108_v32 = vpop.f32.mrf.mxu1  ;;  %v3727_v54 = vld [vmem:[#allocation2 + $0xf2] sm:$0xff]  ;;  %v3676_v5 = vld [vmem:[#allocation2 + $0x8] sm:$0xff] }
 0x3ea   : > { %3667 = vst.msk [vmem:[#allocation2 + $0x121] sm:$0xff] %vm387_vm2, %v3635_v39  ;;  %v3638_v14 = vmax.f32 %v8015_v18, 0.0  ;;  %v8026_v53 = vadd.f32 %v7804_v31, %v3568_v42  ;;  %v3571_v58 = vadd.f32 %v6108_v32, %v3170_v23  ;;  %3799 = vrot.lane.b32.xlu0 %v3625_v7, %s6289_s25  ;;  %v3175_v7 = vadd.f32 %v3174_v0, %v7797_v20  ;;  %v3678_v32 = vld [vmem:[#allocation2 + $0x20] sm:$0xff]  ;;  %v3680_v0 = vld [vmem:[#allocation2 + $0x38] sm:$0xff] }
 0x3eb   : > { %v3523_v8 = vpop.f32.mrf.mxu1 }
 0x3ec   : > { %3670 = vst.msk [vmem:[#allocation2 + $0x141] sm:$0xff] %vm387_vm2, %v3638_v14  ;;  %v3637_v21 = vmax.f32 %v8026_v53, 0.0  ;;  %v8037_v4 = vadd.f32 %v7804_v31, %v3571_v58  ;;  %v3570_v55 = vadd.f32 %v3523_v8, %v3165_v36  ;;  %3921 = vrot.lane.b32.xlu1 %v3718_v6, %s6290_s26  ;;  %v3677_v58 = vld [vmem:[#allocation2 + $0x18] sm:$0xff] }
 0x3ed   : > { %v6111_v35 = vpop.f32.mrf.mxu1  ;;  %v3729_v59 = vld [vmem:[#allocation2 + $0x10a] sm:$0xff] }
 0x3ee   : > { %3669 = vst.msk [vmem:[#allocation2 + $0x139] sm:$0xff] %vm387_vm2, %v3637_v21  ;;  %v3640_v25 = vmax.f32 %v8037_v4, 0.0  ;;  %v3607_v34 = vadd.f32 %v7804_v31, %v3570_v55  ;;  %v3573_v19 = vadd.f32 %v6111_v35, %v3180_v9  ;;  %3919 = vrot.lane.b32.xlu0 %v3717_v37, %s6290_s26 }
 0x3ef   : > { %v3533_v62 = vpop.f32.mrf.mxu1  ;;  %v3732_v1 = vld [vmem:[#allocation2 + $0x12a] sm:$0xff] }
 0x3f0   : > { %3672 = vst.msk [vmem:[#allocation2 + $0x159] sm:$0xff] %vm387_vm2, %v3640_v25  ;;  %v3639_v12 = vmax.f32 %v3607_v34, 0.0  ;;  %v3610_v50 = vadd.f32 %v7804_v31, %v3573_v19  ;;  %v3572_v15 = vadd.f32 %v3533_v62, %v3175_v7  ;;  %3805 = vrot.lane.b32.xlu1 %v3628_v45, %s6289_s25  ;;  %v3724_v45 = vld [vmem:[#allocation2 + $0xca] sm:$0xff] }
 0x3f1   : > { %v3731_v46 = vld [vmem:[#allocation2 + $0x122] sm:$0xff]  ;;  %v3679_v7 = vld [vmem:[#allocation2 + $0x30] sm:$0xff] }
 0x3f2   : > { %3671 = vst.msk [vmem:[#allocation2 + $0x151] sm:$0xff] %vm387_vm2, %v3639_v12  ;;  %v3642_v20 = vmax.f32 %v3610_v50, 0.0  ;;  %v3609_v29 = vadd.f32 %v7804_v31, %v3572_v15  ;;  %3803 = vrot.lane.b32.xlu0 %v3627_v47, %s6289_s25  ;;  %v3722_v31 = vld [vmem:[#allocation2 + $0xb2] sm:$0xff]  ;;  %v3726_v47 = vld [vmem:[#allocation2 + $0xe2] sm:$0xff] }
 0x3f3   : > { %v3734_v33 = vld [vmem:[#allocation2 + $0x142] sm:$0xff]  ;;  %v3682_v15 = vld [vmem:[#allocation2 + $0x50] sm:$0xff] }
 0x3f4   : > { %3674 = vst.msk [vmem:[#allocation2 + $0x171] sm:$0xff] %vm387_vm2, %v3642_v20  ;;  %v3641_v28 = vmax.f32 %v3609_v29, 0.0  ;;  %3925 = vrot.lane.b32.xlu1 %v3720_v26, %s6290_s26  ;;  %v3681_v26 = vld [vmem:[#allocation2 + $0x48] sm:$0xff] }
 0x3f5   : > { %v3733_v3 = vld [vmem:[#allocation2 + $0x13a] sm:$0xff] }
 0x3f6   : > { %3673 = vst.msk [vmem:[#allocation2 + $0x169] sm:$0xff] %vm387_vm2, %v3641_v28  ;;  %3923 = vrot.lane.b32.xlu0 %v3719_v43, %s6290_s26 }
 0x3f7   : > { %v3736_v30 = vld [vmem:[#allocation2 + $0x15a] sm:$0xff] }
 0x3f8   : > { %3809 = vrot.lane.b32.xlu1 %v3630_v51, %s6289_s25  ;;  %v3728_v51 = vld [vmem:[#allocation2 + $0xfa] sm:$0xff] }
 0x3f9   : > { %v3735_v61 = vld [vmem:[#allocation2 + $0x152] sm:$0xff] }
 0x3fa   : > { %3807 = vrot.lane.b32.xlu0 %v3629_v52, %s6289_s25  ;;  %v3730_v52 = vld [vmem:[#allocation2 + $0x112] sm:$0xff] }
 0x3fc   : > { %3929 = vrot.lane.b32.xlu1 %v3722_v31, %s6290_s26 }
 0x3fd   : > { %v3737_v56 = vld [vmem:[#allocation2 + $0x16a] sm:$0xff] }
 0x3fe   : > { %3927 = vrot.lane.b32.xlu0 %v3721_v44, %s6290_s26 }
 0x400   : > { %3813 = vrot.lane.b32.xlu1 %v3632_v40, %s6289_s25  ;;  %v8097_v40 = vpop.xlane.xlu1 %4161 }
 0x402   : > { %3811 = vrot.lane.b32.xlu0 %v3631_v49, %s6289_s25  ;;  %v8100_v49 = vpop.xlane.xlu0 %4164 }
 0x404   : > { %3933 = vrot.lane.b32.xlu1 %v3724_v45, %s6290_s26 }
 0x406   : > { %3931 = vrot.lane.b32.xlu0 %v3723_v2, %s6290_s26  ;;  %v8107_v13 = vpop.xlane.xlu0 %4648 }
 0x408   : > { %3937 = vrot.lane.b32.xlu1 %v3726_v47, %s6290_s26 }
 0x40a   : > { %3935 = vrot.lane.b32.xlu0 %v3725_v38, %s6290_s26 }
 0x40c   : > { %3817 = vrot.lane.b32.xlu1 %v3634_v41, %s6289_s25  ;;  %v8104_v41 = vpop.xlane.xlu1 %4645 }
 0x40e   : > { %3815 = vrot.lane.b32.xlu0 %v3633_v57, %s6289_s25 }
 0x410   : > { %3941 = vrot.lane.b32.xlu1 %v3728_v51, %s6290_s26 }
 0x412   : > { %3939 = vrot.lane.b32.xlu0 %v3727_v54, %s6290_s26  ;;  %v3684_v54 = vld [vmem:[#allocation2 + $0x68] sm:$0xff] }
 0x414   : > { %3821 = vrot.lane.b32.xlu1 %v3636_v48, %s6289_s25  ;;  %v3738_v48 = vld [vmem:[#allocation2 + $0x172] sm:$0xff] }
 0x416   : > { %3819 = vrot.lane.b32.xlu0 %v3635_v39, %s6289_s25  ;;  %v3675_v39 = vld [vmem:[#allocation2] sm:$0xff] }
 0x418   : > { %3945 = vrot.lane.b32.xlu1 %v3730_v52, %s6290_s26  ;;  %v8145_v52 = vld [vmem:[%s8706_s3 + $0x1] ss:$0 sm:$0xff] }
 0x41a   : > { %3943 = vrot.lane.b32.xlu0 %v3729_v59, %s6290_s26 }
 0x41c   : > { %3825 = vrot.lane.b32.xlu1 %v3638_v14, %s6289_s25 }
 0x41e   : > { %3823 = vrot.lane.b32.xlu0 %v3637_v21, %s6289_s25 }
 0x420   : > { %3949 = vrot.lane.b32.xlu1 %v3732_v1, %s6290_s26 }
 0x422   : > { %3947 = vrot.lane.b32.xlu0 %v3731_v46, %s6290_s26  ;;  %v3683_v46 = vld [vmem:[#allocation2 + $0x60] sm:$0xff] }
 0x424   : > { %3829 = vrot.lane.b32.xlu1 %v3640_v25, %s6289_s25 }
 0x426   : > { %3827 = vrot.lane.b32.xlu0 %v3639_v12, %s6289_s25 }
 0x428   : > { %3953 = vrot.lane.b32.xlu1 %v3734_v33, %s6290_s26 }
 0x42a   : > { %v3774_v27 = vpop.permute.xlu1 %3773  ;;  %3951 = vrot.lane.b32.xlu0 %v3733_v3, %s6290_s26 }
 0x42b   : > { %v3996_v11 = vsel %vm387_vm2, %v3676_v5, %v3774_v27 }
 0x42c   : > { %v3772_v24 = vpop.permute.xlu0 %3771  ;;  %3833 = vrot.lane.b32.xlu1 %v3642_v20, %s6289_s25 }
 0x42d   : > { %v3995_v42 = vsel %vm387_vm2, %v3675_v39, %v3772_v24 }
 0x42e   : > { %v3778_v57 = vpop.permute.xlu1 %3777  ;;  %3831 = vrot.lane.b32.xlu0 %v3641_v28, %s6289_s25  ;;  %s8542_s25 = sand.u32 1, %s6278_s30  }
 0x42f   : > { %v3998_v14 = vsel %vm387_vm2, %v3678_v32, %v3778_v57  ;;  %s5332_s19 = sshll.u32 %s8542_s25, 4  ;;  %s5200_s14 = scalar_lea.sflag [#allocation6], %s8542_s25 }
 0x430   : > { %v3776_v10 = vpop.permute.xlu0 %3775  ;;  %3957 = vrot.lane.b32.xlu1 %v3736_v30, %s6290_s26  ;;  %s8566_s20 = scalar_lea.vmem [#allocation5], %s5332_s19  ;;  %s6291_s19 = smov [#allocation5]  }
 0x431   : > { %v3997_v6 = vsel %vm387_vm2, %v3677_v58, %v3776_v10  ;;  %s6200_s21 = sshll.u32 %s6291_s19, 4  ;;  %s6201_s21 = int_to_ptr.vmem [resolvable:$false] %s6200_s21 }
 0x432   : > { %v3782_v22 = vpop.permute.xlu1 %3781  ;;  %3955 = vrot.lane.b32.xlu0 %v3735_v61, %s6290_s26 }
 0x433   : > { %v4000_v35 = vsel %vm387_vm2, %v3680_v0, %v3782_v22 }
 0x434   : > { %3961 = vrot.lane.b32.xlu1 %v3738_v48, %s6290_s26  ;;  %v3780_v60 = vpop.permute.xlu0 %3779 }
 0x435   : > { %v3999_v34 = vsel %vm387_vm2, %v3679_v7, %v3780_v60 }
 0x436   : > { %v3902_v23 = vpop.permute.xlu1 %3901  ;;  %3959 = vrot.lane.b32.xlu0 %v3737_v56, %s6290_s26 }
 0x437   : > { %v4028_v18 = vsel %vm772_vm4, %v3996_v11, %v3902_v23 }
 0x438   : > { %4060 = vst.msk [vmem:[#allocation3 + $0x18] sm:$0xff] %vm349_vm1, %v4028_v18  ;;  %v3900_v16 = vpop.permute.xlu0 %3899 }
 0x439   : > { %v4027_v36 = vsel %vm772_vm4, %v3995_v42, %v3900_v16 }
 0x43a   : > { %4059 = vst.msk [vmem:[#allocation3 + $0x10] sm:$0xff] %vm349_vm1, %v4027_v36  ;;  %v3906_v53 = vpop.permute.xlu1 %3905 }
 0x43b   : > { %v4030_v8 = vsel %vm772_vm4, %v3998_v14, %v3906_v53  ;;  %v3686_v14 = vld [vmem:[#allocation2 + $0x80] sm:$0xff] }
 0x43c   : > { %4062 = vst.msk [vmem:[#allocation3 + $0x28] sm:$0xff] %vm349_vm1, %v4030_v8  ;;  %v3904_v9 = vpop.permute.xlu0 %3903  ;;  %v3685_v8 = vld [vmem:[#allocation2 + $0x78] sm:$0xff] }
 0x43d   : > { %v4029_v21 = vsel %vm772_vm4, %v3997_v6, %v3904_v9 }
 0x43e   : > { %4061 = vst.msk [vmem:[#allocation3 + $0x20] sm:$0xff] %vm349_vm1, %v4029_v21  ;;  %v3786_v4 = vpop.permute.xlu1 %3785 }
 0x43f   : > { %v4002_v20 = vsel %vm387_vm2, %v3682_v15, %v3786_v4  ;;  %v4094_v45 = vld [vmem:[#allocation3 + $0x18] sm:$0xff] }
 0x440   : > { %v3784_v55 = vpop.permute.xlu0 %3783  ;;  %v4131_v38 = vmul.f32 %v7708_v63, %v4094_v45  ;;  %v4326_v30 = vmul.f32 %v8145_v52, %v4094_v45  ;;  %v3688_v15 = vld [vmem:[#allocation2 + $0x98] sm:$0xff] }
 0x441   : > { %v4001_v43 = vsel %vm387_vm2, %v3681_v26, %v3784_v55  ;;  %v4093_v51 = vld [vmem:[#allocation3 + $0x10] sm:$0xff] }
 0x442   : > { %v3910_v37 = vpop.permute.xlu1 %3909  ;;  %v4130_v3 = vmul.f32 %v7708_v63, %v4093_v51  ;;  %v4169_v57 = vsel %vm349_vm1, %v4131_v38, 0.0  ;;  %v4325_v60 = vmul.f32 %v8145_v52, %v4093_v51  ;;  %v4360_v56 = vsel %vm349_vm1, %v4326_v30, 0.0  ;;  %v3687_v26 = vld [vmem:[#allocation2 + $0x90] sm:$0xff] }
 0x443   : > { %v4032_v25 = vsel %vm772_vm4, %v4000_v35, %v3910_v37  ;;  %v4291_v61 = vld [vmem:[#allocation3 + $0x28] sm:$0xff] }
 0x444   : > { %4064 = vst.msk [vmem:[#allocation3 + $0x38] sm:$0xff] %vm349_vm1, %v4032_v25  ;;  %v3908_v19 = vpop.permute.xlu0 %3907  ;;  %v4166_v48 = vsel %vm349_vm1, %v4130_v3, 0.0  ;;  %v4328_v11 = vmul.f32 %v8145_v52, %v4291_v61  ;;  %v4357_v18 = vsel %vm349_vm1, %v4325_v60, 0.0  ;;  %v4133_v36 = vmul.f32 %v7708_v63, %v4291_v61 }
 0x445   : > { %v4031_v62 = vsel %vm772_vm4, %v3999_v34, %v3908_v19  ;;  %v4290_v23 = vld [vmem:[#allocation3 + $0x20] sm:$0xff]  ;;  %v4523_v35 = vmul.f32 %v7722_v17, %v4291_v61 }
 0x446   : > { %4063 = vst.msk [vmem:[#allocation3 + $0x30] sm:$0xff] %vm349_vm1, %v4031_v62  ;;  %v3790_v12 = vpop.permute.xlu1 %3789  ;;  %v4327_v42 = vmul.f32 %v8145_v52, %v4290_v23  ;;  %v4366_v32 = vsel %vm349_vm1, %v4328_v11, 0.0  ;;  %v4132_v21 = vmul.f32 %v7708_v63, %v4290_v23  ;;  %v4175_v0 = vsel %vm349_vm1, %v4133_v36, 0.0 }
 0x447   : > { %v4004_v59 = vsel %vm387_vm2, %v3684_v54, %v3790_v12  ;;  %v4522_v34 = vmul.f32 %v7722_v17, %v4290_v23  ;;  %v4557_v62 = vsel %vm349_vm1, %v4523_v35, 0.0 }
 0x448   : > { %v3788_v50 = vpop.permute.xlu0 %3787  ;;  %v4363_v9 = vsel %vm349_vm1, %v4327_v42, 0.0  ;;  %v4172_v63 = vsel %vm349_vm1, %v4132_v21, 0.0 }
 0x449   : > { %v4003_v27 = vsel %vm387_vm2, %v3683_v46, %v3788_v50 }
 0x44a   : > { %v3914_v29 = vpop.permute.xlu1 %3913 }
 0x44b   : > { %v4034_v28 = vsel %vm772_vm4, %v4002_v20, %v3914_v29  ;;  %v4293_v7 = vld [vmem:[#allocation3 + $0x38] sm:$0xff] }
 0x44c   : > { %4066 = vst.msk [vmem:[#allocation3 + $0x48] sm:$0xff] %vm349_vm1, %v4034_v28  ;;  %v3912_v31 = vpop.permute.xlu0 %3911  ;;  %v4330_v12 = vmul.f32 %v8145_v52, %v4293_v7 }
 0x44d   : > { %v4033_v44 = vsel %vm772_vm4, %v4001_v43, %v3912_v31  ;;  %v4292_v50 = vld [vmem:[#allocation3 + $0x30] sm:$0xff]  ;;  %v4554_v43 = vsel %vm349_vm1, %v4522_v34, 0.0 }
 0x44e   : > { %4065 = vst.msk [vmem:[#allocation3 + $0x40] sm:$0xff] %vm349_vm1, %v4033_v44  ;;  %v3794_v2 = vpop.permute.xlu1 %3793  ;;  %v4329_v17 = vmul.f32 %v8145_v52, %v4292_v50  ;;  %v4372_v45 = vsel %vm349_vm1, %v4330_v12, 0.0  ;;  %v3693_v12 = vld [vmem:[#allocation2 + $0xd8] sm:$0xff] }
 0x44f   : > { %v4006_v53 = vsel %vm387_vm2, %v3686_v14, %v3794_v2  ;;  %v8196_v2 = vld [vmem:[%s8706_s3] ss:$0 sm:$0xff] }
 0x450   : > { %v3792_v47 = vpop.permute.xlu0 %3791  ;;  %v4369_v54 = vsel %vm349_vm1, %v4329_v17, 0.0 }
 0x451   : > { %v4005_v4 = vsel %vm387_vm2, %v3685_v8, %v3792_v47  ;;  %v4135_v47 = vmul.f32 %v8196_v2, %v4293_v7 }
 0x452   : > { %v3918_v1 = vpop.permute.xlu1 %3917 }
 0x453   : > { %v4036_v33 = vsel %vm772_vm4, %v4004_v59, %v3918_v1  ;;  %v4134_v59 = vmul.f32 %v8196_v2, %v4292_v50  ;;  %v4181_v46 = vsel %vm349_vm1, %v4135_v47, 0.0 }
 0x454   : > { %4068 = vst.msk [vmem:[#allocation3 + $0x58] sm:$0xff] %vm349_vm1, %v4036_v33  ;;  %v3916_v24 = vpop.permute.xlu0 %3915  ;;  %v8207_v33 = vld [vmem:[%s8706_s3 + $0x2] ss:$0 sm:$0xff] }
 0x455   : > { %v4035_v10 = vsel %vm772_vm4, %v4003_v27, %v3916_v24  ;;  %4170 = vadd.xlane.f32.xlu0 %v4169_v57  ;;  %v4525_v3 = vmul.f32 %v8207_v33, %v4293_v7  ;;  %v3690_v27 = vld [vmem:[#allocation2 + $0xb0] sm:$0xff]  ;;  %v4295_v24 = vld [vmem:[#allocation3 + $0x48] sm:$0xff]  ;;  %v4294_v23 = vld [vmem:[#allocation3 + $0x40] sm:$0xff] }
 0x456   : > { %4067 = vst.msk [vmem:[#allocation3 + $0x50] sm:$0xff] %vm349_vm1, %v4035_v10  ;;  %v3798_v22 = vpop.permute.xlu1 %3797  ;;  %v3689_v10 = vld [vmem:[#allocation2 + $0xa8] sm:$0xff]  ;;  %v4332_v11 = vmul.f32 %v8145_v52, %v4295_v24  ;;  %v4137_v14 = vmul.f32 %v8196_v2, %v4295_v24  ;;  %v3694_v7 = vld [vmem:[#allocation2 + $0xe0] sm:$0xff] }
 0x457   : > { %v4008_v20 = vsel %vm387_vm2, %v3688_v15, %v3798_v22  ;;  %v4178_v22 = vsel %vm349_vm1, %v4134_v59, 0.0  ;;  %v4526_v15 = vmul.f32 %v8207_v33, %v4294_v23 }
 0x458   : > { %4167 = vadd.xlane.f32.xlu1 %v4166_v48  ;;  %v3796_v5 = vpop.permute.xlu0 %3795  ;;  %v4524_v48 = vmul.f32 %v8207_v33, %v4292_v50  ;;  %v4378_v36 = vsel %vm349_vm1, %v4332_v11, 0.0  ;;  %v4187_v35 = vsel %vm349_vm1, %v4137_v14, 0.0 }
 0x459   : > { %4361 = vadd.xlane.f32.xlu0 %v4360_v56  ;;  %v4007_v31 = vsel %vm387_vm2, %v3687_v26, %v3796_v5  ;;  %v4563_v56 = vsel %vm349_vm1, %v4525_v3, 0.0 }
 0x45a   : > { %v8160_v39 = vpop.permute.xlu1 %3801  ;;  %v4560_v42 = vsel %vm349_vm1, %v4524_v48, 0.0 }
 0x45b   : > { %v4010_v57 = vsel %vm387_vm2, %v3690_v27, %v8160_v39 }
 0x45c   : > { %4358 = vadd.xlane.f32.xlu1 %v4357_v18  ;;  %v8164_v16 = vpop.permute.xlu0 %3799 }
 0x45d   : > { %4367 = vadd.xlane.f32.xlu0 %v4366_v32  ;;  %v4009_v60 = vsel %vm387_vm2, %v3689_v10, %v8164_v16  ;;  %v4331_v32 = vmul.f32 %v8145_v52, %v4294_v23 }
 0x45e   : > { %v3922_v58 = vpop.permute.xlu1 %3921 }
 0x45f   : > { %v4038_v6 = vsel %vm772_vm4, %v4006_v53, %v3922_v58  ;;  %v3692_v53 = vld [vmem:[#allocation2 + $0xc8] sm:$0xff]  ;;  %v4375_v21 = vsel %vm349_vm1, %v4331_v32, 0.0 }
 0x460   : > { %4070 = vst.msk [vmem:[#allocation3 + $0x68] sm:$0xff] %vm349_vm1, %v4038_v6  ;;  %4364 = vadd.xlane.f32.xlu1 %v4363_v9  ;;  %v3920_v55 = vpop.permute.xlu0 %3919  ;;  %v3691_v6 = vld [vmem:[#allocation2 + $0xc0] sm:$0xff] }
 0x461   : > { %v4037_v37 = vsel %vm772_vm4, %v4005_v4, %v3920_v55  ;;  %4176 = vadd.xlane.f32.xlu0 %v4175_v0  ;;  %v4136_v4 = vmul.f32 %v8196_v2, %v4294_v23 }
 0x462   : > { %4069 = vst.msk [vmem:[#allocation3 + $0x60] sm:$0xff] %vm349_vm1, %v4037_v37  ;;  %v8178_v25 = vpop.permute.xlu1 %3805  ;;  %v4527_v37 = vmul.f32 %v8207_v33, %v4295_v24 }
 0x463   : > { %v4012_v58 = vsel %vm387_vm2, %v3692_v53, %v8178_v25  ;;  %v4184_v50 = vsel %vm349_vm1, %v4136_v4, 0.0 }
 0x464   : > { %4173 = vadd.xlane.f32.xlu1 %v4172_v63  ;;  %v8182_v19 = vpop.permute.xlu0 %3803  ;;  %v4297_v63 = vld [vmem:[#allocation3 + $0x58] sm:$0xff]  ;;  %v4569_v26 = vsel %vm349_vm1, %v4527_v37, 0.0 }
 0x465   : > { %4558 = vadd.xlane.f32.xlu0 %v4557_v62  ;;  %v4011_v55 = vsel %vm387_vm2, %v3691_v6, %v8182_v19 }
 0x466   : > { %v3926_v29 = vpop.permute.xlu1 %3925 }
 0x467   : > { %v4040_v28 = vsel %vm772_vm4, %v4008_v20, %v3926_v29  ;;  %v4299_v48 = vld [vmem:[#allocation3 + $0x68] sm:$0xff] }
 0x468   : > { %4072 = vst.msk [vmem:[#allocation3 + $0x78] sm:$0xff] %vm349_vm1, %v4040_v28  ;;  %4555 = vadd.xlane.f32.xlu1 %v4554_v43  ;;  %v3924_v44 = vpop.permute.xlu0 %3923  ;;  %v4334_v28 = vmul.f32 %v8145_v52, %v4297_v63  ;;  %v4296_v43 = vld [vmem:[#allocation3 + $0x50] sm:$0xff] }
 0x469   : > { %v4039_v38 = vsel %vm772_vm4, %v4007_v31, %v3924_v44  ;;  %4373 = vadd.xlane.f32.xlu0 %v4372_v45  ;;  %v4566_v44 = vsel %vm349_vm1, %v4526_v15, 0.0  ;;  %v4333_v45 = vmul.f32 %v8145_v52, %v4296_v43  ;;  %v4138_v24 = vmul.f32 %v8196_v2, %v4296_v43 }
 0x46a   : > { %4071 = vst.msk [vmem:[#allocation3 + $0x70] sm:$0xff] %vm349_vm1, %v4039_v38  ;;  %v3810_v51 = vpop.permute.xlu1 %3809  ;;  %v4384_v38 = vsel %vm349_vm1, %v4334_v28, 0.0 }
 0x46b   : > { %v4014_v34 = vsel %vm387_vm2, %v3694_v7, %v3810_v51  ;;  %v4139_v51 = vmul.f32 %v8196_v2, %v4297_v63  ;;  %v4381_v27 = vsel %vm349_vm1, %v4333_v45, 0.0 }
 0x46c   : > { %v3808_v1 = vpop.permute.xlu0 %3807  ;;  %4370 = vadd.xlane.f32.xlu1 %v4369_v54  ;;  %v3696_v54 = vld [vmem:[#allocation2 + $0xf8] sm:$0xff] }
 0x46d   : > { %4182 = vadd.xlane.f32.xlu0 %v4181_v46  ;;  %v4013_v20 = vsel %vm387_vm2, %v3693_v12, %v3808_v1  ;;  %v3695_v46 = vld [vmem:[#allocation2 + $0xf0] sm:$0xff]  ;;  %v4193_v10 = vsel %vm349_vm1, %v4139_v51, 0.0 }
 0x46e   : > { %v3930_v30 = vpop.permute.xlu1 %3929 }
 0x46f   : > { %v4042_v61 = vsel %vm772_vm4, %v4010_v57, %v3930_v30 }
 0x470   : > { %4074 = vst.msk [vmem:[#allocation3 + $0x88] sm:$0xff] %vm349_vm1, %v4042_v61  ;;  %v3928_v5 = vpop.permute.xlu0 %3927  ;;  %4179 = vadd.xlane.f32.xlu1 %v4178_v22  ;;  %v4529_v61 = vmul.f32 %v8207_v33, %v4297_v63  ;;  %v3700_v63 = vld [vmem:[#allocation2 + $0x128] sm:$0xff] }
 0x471   : > { %v4041_v39 = vsel %vm772_vm4, %v4009_v60, %v3928_v5  ;;  %4564 = vadd.xlane.f32.xlu0 %v4563_v56  ;;  %v4190_v5 = vsel %vm349_vm1, %v4138_v24, 0.0  ;;  %v4528_v56 = vmul.f32 %v8207_v33, %v4296_v43 }
 0x472   : > { %4073 = vst.msk [vmem:[#allocation3 + $0x80] sm:$0xff] %vm349_vm1, %v4041_v39  ;;  %v3814_v18 = vpop.permute.xlu1 %3813  ;;  %v4575_v23 = vsel %vm349_vm1, %v4529_v61, 0.0  ;;  %v4336_v39 = vmul.f32 %v8145_v52, %v4299_v48 }
 0x473   : > { %v4016_v59 = vsel %vm387_vm2, %v3696_v54, %v3814_v18  ;;  %v4298_v18 = vld [vmem:[#allocation3 + $0x60] sm:$0xff]  ;;  %v4572_v53 = vsel %vm349_vm1, %v4528_v56, 0.0 }
 0x474   : > { %v3812_v16 = vpop.permute.xlu0 %3811  ;;  %4561 = vadd.xlane.f32.xlu1 %v4560_v42  ;;  %v3698_v42 = vld [vmem:[#allocation2 + $0x110] sm:$0xff] }
 0x475   : > { %4379 = vadd.xlane.f32.xlu0 %v4378_v36  ;;  %v4015_v57 = vsel %vm387_vm2, %v3695_v46, %v3812_v16  ;;  %v3697_v36 = vld [vmem:[#allocation2 + $0x108] sm:$0xff] }
 0x476   : > { %v3934_v8 = vpop.permute.xlu1 %3933 }
 0x477   : > { %v4044_v9 = vsel %vm772_vm4, %v4012_v58, %v3934_v8  ;;  %v4335_v58 = vmul.f32 %v8145_v52, %v4298_v18 }
 0x478   : > { %4076 = vst.msk [vmem:[#allocation3 + $0x98] sm:$0xff] %vm349_vm1, %v4044_v9  ;;  %v3932_v0 = vpop.permute.xlu0 %3931  ;;  %4376 = vadd.xlane.f32.xlu1 %v4375_v21  ;;  %v4390_v9 = vsel %vm349_vm1, %v4336_v39, 0.0  ;;  %v4141_v21 = vmul.f32 %v8196_v2, %v4299_v48 }
 0x479   : > { %v4043_v25 = vsel %vm772_vm4, %v4011_v55, %v3932_v0  ;;  %4188 = vadd.xlane.f32.xlu0 %v4187_v35  ;;  %v4387_v0 = vsel %vm349_vm1, %v4335_v58, 0.0  ;;  %v4140_v35 = vmul.f32 %v8196_v2, %v4298_v18 }
 0x47a   : > { %4075 = vst.msk [vmem:[#allocation3 + $0x90] sm:$0xff] %vm349_vm1, %v4043_v25  ;;  %v3938_v62 = vpop.permute.xlu1 %3937  ;;  %v4199_v7 = vsel %vm349_vm1, %v4141_v21, 0.0  ;;  %v4531_v25 = vmul.f32 %v8207_v33, %v4299_v48 }
 0x47b   : > { %v4046_v19 = vsel %vm772_vm4, %v4014_v34, %v3938_v62  ;;  %v4301_v34 = vld [vmem:[#allocation3 + $0x78] sm:$0xff]  ;;  %v4196_v15 = vsel %vm349_vm1, %v4140_v35, 0.0 }
 0x47c   : > { %4078 = vst.msk [vmem:[#allocation3 + $0xa8] sm:$0xff] %vm349_vm1, %v4046_v19  ;;  %v3936_v29 = vpop.permute.xlu0 %3935  ;;  %4185 = vadd.xlane.f32.xlu1 %v4184_v50  ;;  %v3699_v19 = vld [vmem:[#allocation2 + $0x120] sm:$0xff]  ;;  %v4581_v28 = vsel %vm349_vm1, %v4531_v25, 0.0  ;;  %v4338_v43 = vmul.f32 %v8145_v52, %v4301_v34  ;;  %v4143_v54 = vmul.f32 %v8196_v2, %v4301_v34 }
 0x47d   : > { %v4045_v17 = vsel %vm772_vm4, %v4013_v20, %v3936_v29  ;;  %4570 = vadd.xlane.f32.xlu0 %v4569_v26  ;;  %v4530_v20 = vmul.f32 %v8207_v33, %v4298_v18 }
 0x47e   : > { %4077 = vst.msk [vmem:[#allocation3 + $0xa0] sm:$0xff] %vm349_vm1, %v4045_v17  ;;  %v3818_v31 = vpop.permute.xlu1 %3817  ;;  %v4300_v17 = vld [vmem:[#allocation3 + $0x70] sm:$0xff]  ;;  %v4396_v51 = vsel %vm349_vm1, %v4338_v43, 0.0  ;;  %v4205_v61 = vsel %vm349_vm1, %v4143_v54, 0.0 }
 0x47f   : > { %v4018_v32 = vsel %vm387_vm2, %v3698_v42, %v3818_v31  ;;  %v4578_v45 = vsel %vm349_vm1, %v4530_v20, 0.0  ;;  %v3704_v42 = vld [vmem:[#allocation2 + $0x158] sm:$0xff] }
 0x480   : > { %v3816_v47 = vpop.permute.xlu0 %3815  ;;  %4567 = vadd.xlane.f32.xlu1 %v4566_v44  ;;  %v8327_v20 = vld [vmem:[#allocation3 + $0x98] sm:$0xff] }
 0x481   : > { %4385 = vadd.xlane.f32.xlu0 %v4384_v38  ;;  %v4017_v8 = vsel %vm387_vm2, %v3697_v36, %v3816_v47  ;;  %v4337_v47 = vmul.f32 %v8145_v52, %v4300_v17  ;;  %v3703_v36 = vld [vmem:[#allocation2 + $0x150] sm:$0xff]  ;;  %v4147_v43 = vmul.f32 %v8196_v2, %v8327_v20 }
 0x482   : > { %v3942_v1 = vpop.permute.xlu1 %3941 }
 0x483   : > { %v4048_v3 = vsel %vm772_vm4, %v4016_v59, %v3942_v1  ;;  %v3702_v59 = vld [vmem:[#allocation2 + $0x140] sm:$0xff]  ;;  %v4393_v24 = vsel %vm349_vm1, %v4337_v47, 0.0  ;;  %v4342_v47 = vmul.f32 %v8145_v52, %v8327_v20 }
 0x484   : > { %4080 = vst.msk [vmem:[#allocation3 + $0xb8] sm:$0xff] %vm349_vm1, %v4048_v3  ;;  %v3940_v30 = vpop.permute.xlu0 %3939  ;;  %4382 = vadd.xlane.f32.xlu1 %v4381_v27  ;;  %v3701_v3 = vld [vmem:[#allocation2 + $0x138] sm:$0xff] }
 0x485   : > { %v4047_v22 = vsel %vm772_vm4, %v4015_v57, %v3940_v30  ;;  %4194 = vadd.xlane.f32.xlu0 %v4193_v10  ;;  %v4142_v57 = vmul.f32 %v8196_v2, %v4300_v17 }
 0x486   : > { %4079 = vst.msk [vmem:[#allocation3 + $0xb0] sm:$0xff] %vm349_vm1, %v4047_v22  ;;  %v3822_v60 = vpop.permute.xlu1 %3821  ;;  %v4533_v22 = vmul.f32 %v8207_v33, %v4301_v34 }
 0x487   : > { %v4020_v62 = vsel %vm387_vm2, %v3700_v63, %v3822_v60  ;;  %v4303_v60 = vld [vmem:[#allocation3 + $0x88] sm:$0xff]  ;;  %v4202_v56 = vsel %vm349_vm1, %v4142_v57, 0.0 }
 0x488   : > { %v3820_v11 = vpop.permute.xlu0 %3819  ;;  %4191 = vadd.xlane.f32.xlu1 %v4190_v5  ;;  %v4587_v39 = vsel %vm349_vm1, %v4533_v22, 0.0  ;;  %v4340_v18 = vmul.f32 %v8145_v52, %v4303_v60  ;;  %v4145_v58 = vmul.f32 %v8196_v2, %v4303_v60  ;;  %v4535_v21 = vmul.f32 %v8207_v33, %v4303_v60 }
 0x489   : > { %4576 = vadd.xlane.f32.xlu0 %v4575_v23  ;;  %v4019_v29 = vsel %vm387_vm2, %v3699_v19, %v3820_v11  ;;  %v4532_v11 = vmul.f32 %v8207_v33, %v4300_v17  ;;  %v8335_v17 = vld [vmem:[#allocation3 + $0x90] sm:$0xff] }
 0x48a   : > { %v3946_v16 = vpop.permute.xlu1 %3945  ;;  %v4211_v63 = vsel %vm349_vm1, %v4145_v58, 0.0  ;;  %v4593_v19 = vsel %vm349_vm1, %v4535_v21, 0.0 }
 0x48b   : > { %v4050_v14 = vsel %vm772_vm4, %v4018_v32, %v3946_v16 }
 0x48c   : > { %4082 = vst.msk [vmem:[#allocation3 + $0xc8] sm:$0xff] %vm349_vm1, %v4050_v14  ;;  %v3944_v6 = vpop.permute.xlu0 %3943  ;;  %4573 = vadd.xlane.f32.xlu1 %v4572_v53  ;;  %v4584_v53 = vsel %vm349_vm1, %v4532_v11, 0.0 }
 0x48d   : > { %v4049_v4 = vsel %vm772_vm4, %v4017_v8, %v3944_v6  ;;  %4391 = vadd.xlane.f32.xlu0 %v4390_v9  ;;  %v4402_v9 = vsel %vm349_vm1, %v4340_v18, 0.0 }
 0x48e   : > { %4081 = vst.msk [vmem:[#allocation3 + $0xc0] sm:$0xff] %vm349_vm1, %v4049_v4  ;;  %v3826_v55 = vpop.permute.xlu1 %3825  ;;  %v4302_v4 = vld [vmem:[#allocation3 + $0x80] sm:$0xff] }
 0x48f   : > { %v4022_v1 = vsel %vm387_vm2, %v3702_v59, %v3826_v55  ;;  %v3706_v55 = vld [vmem:[#allocation2 + $0x170] sm:$0xff]  ;;  %v4339_v34 = vmul.f32 %v8145_v52, %v4302_v4  ;;  %v4408_v59 = vsel %vm349_vm1, %v4342_v47, 0.0 }
 0x490   : > { %v3824_v37 = vpop.permute.xlu0 %3823  ;;  %4388 = vadd.xlane.f32.xlu1 %v4387_v0 }
 0x491   : > { %4200 = vadd.xlane.f32.xlu0 %v4199_v7  ;;  %v4021_v30 = vsel %vm387_vm2, %v3701_v3, %v3824_v37  ;;  %v3705_v7 = vld [vmem:[#allocation2 + $0x168] sm:$0xff] }
 0x492   : > { %v3950_v12 = vpop.permute.xlu1 %3949 }
 0x493   : > { %v4052_v50 = vsel %vm772_vm4, %v4020_v62, %v3950_v12 }
 0x494   : > { %4084 = vst.msk [vmem:[#allocation3 + $0xd8] sm:$0xff] %vm349_vm1, %v4052_v50  ;;  %v3948_v26 = vpop.permute.xlu0 %3947  ;;  %4197 = vadd.xlane.f32.xlu1 %v4196_v15  ;;  %v4144_v50 = vmul.f32 %v8196_v2, %v4302_v4 }
 0x495   : > { %v4051_v31 = vsel %vm772_vm4, %v4019_v29, %v3948_v26  ;;  %4582 = vadd.xlane.f32.xlu0 %v4581_v28  ;;  %v4399_v29 = vsel %vm349_vm1, %v4339_v34, 0.0  ;;  %v4534_v26 = vmul.f32 %v8207_v33, %v4302_v4  ;;  %v4310_v58 = vld [vmem:[#allocation3 + $0xc0] sm:$0xff]  ;;  %v4311_v4 = vld [vmem:[#allocation3 + $0xc8] sm:$0xff] }
 0x496   : > { %4083 = vst.msk [vmem:[#allocation3 + $0xd0] sm:$0xff] %vm349_vm1, %v4051_v31  ;;  %v3830_v44 = vpop.permute.xlu1 %3829  ;;  %v4208_v28 = vsel %vm349_vm1, %v4144_v50, 0.0  ;;  %v4153_v34 = vmul.f32 %v8196_v2, %v4311_v4 }
 0x497   : > { %v4024_v32 = vsel %vm387_vm2, %v3704_v42, %v3830_v44  ;;  %v4590_v31 = vsel %vm349_vm1, %v4534_v26, 0.0  ;;  %v4341_v44 = vmul.f32 %v8145_v52, %v8335_v17 }
 0x498   : > { %v3828_v38 = vpop.permute.xlu0 %3827  ;;  %4579 = vadd.xlane.f32.xlu1 %v4578_v45  ;;  %v4217_v45 = vsel %vm349_vm1, %v4147_v43, 0.0  ;;  %v4235_v50 = vsel %vm349_vm1, %v4153_v34, 0.0 }
 0x499   : > { %4397 = vadd.xlane.f32.xlu0 %v4396_v51  ;;  %v4023_v8 = vsel %vm387_vm2, %v3703_v36, %v3828_v38  ;;  %v4306_v38 = vld [vmem:[#allocation3 + $0xa0] sm:$0xff]  ;;  %v4405_v51 = vsel %vm349_vm1, %v4341_v44, 0.0 }
 0x49a   : > { %v3954_v46 = vpop.permute.xlu1 %3953  ;;  %v4343_v54 = vmul.f32 %v8145_v52, %v4306_v38 }
 0x49b   : > { %v4054_v27 = vsel %vm772_vm4, %v4022_v1, %v3954_v46  ;;  %v4146_v1 = vmul.f32 %v8196_v2, %v8335_v17  ;;  %v4307_v46 = vld [vmem:[#allocation3 + $0xa8] sm:$0xff] }
 0x49c   : > { %4086 = vst.msk [vmem:[#allocation3 + $0xe8] sm:$0xff] %vm349_vm1, %v4054_v27  ;;  %v3952_v10 = vpop.permute.xlu0 %3951  ;;  %4394 = vadd.xlane.f32.xlu1 %v4393_v24  ;;  %v4411_v3 = vsel %vm349_vm1, %v4343_v54, 0.0  ;;  %v4148_v27 = vmul.f32 %v8196_v2, %v4306_v38  ;;  %v4344_v57 = vmul.f32 %v8145_v52, %v4307_v46  ;;  %v4149_v22 = vmul.f32 %v8196_v2, %v4307_v46 }
 0x49d   : > { %v4053_v48 = vsel %vm772_vm4, %v4021_v30, %v3952_v10  ;;  %4206 = vadd.xlane.f32.xlu0 %v4205_v61  ;;  %v4214_v24 = vsel %vm349_vm1, %v4146_v1, 0.0  ;;  %v4538_v10 = vmul.f32 %v8207_v33, %v4306_v38  ;;  %v4539_v11 = vmul.f32 %v8207_v33, %v4307_v46 }
 0x49e   : > { %4085 = vst.msk [vmem:[#allocation3 + $0xe0] sm:$0xff] %vm349_vm1, %v4053_v48  ;;  %v3834_v5 = vpop.permute.xlu1 %3833  ;;  %v4220_v30 = vsel %vm349_vm1, %v4148_v27, 0.0  ;;  %v4414_v61 = vsel %vm349_vm1, %v4344_v57, 0.0  ;;  %v4308_v48 = vld [vmem:[#allocation3 + $0xb0] sm:$0xff] }
 0x49f   : > { %v4026_v35 = vsel %vm387_vm2, %v3706_v55, %v3834_v5  ;;  %v4602_v60 = vsel %vm349_vm1, %v4538_v10, 0.0  ;;  %v4345_v5 = vmul.f32 %v8145_v52, %v4308_v48  ;;  %v4150_v18 = vmul.f32 %v8196_v2, %v4308_v48 }
 0x4a0   : > { %v3832_v23 = vpop.permute.xlu0 %3831  ;;  %4203 = vadd.xlane.f32.xlu1 %v4202_v56  ;;  %v4223_v56 = vsel %vm349_vm1, %v4149_v22, 0.0  ;;  %v4605_v42 = vsel %vm349_vm1, %v4539_v11, 0.0  ;;  %v4540_v36 = vmul.f32 %v8207_v33, %v4308_v48 }
 0x4a1   : > { %4588 = vadd.xlane.f32.xlu0 %v4587_v39  ;;  %v4025_v62 = vsel %vm387_vm2, %v3705_v7, %v3832_v23  ;;  %v4309_v23 = vld [vmem:[#allocation3 + $0xb8] sm:$0xff]  ;;  %v4417_v39 = vsel %vm349_vm1, %v4345_v5, 0.0 }
 0x4a2   : > { %v3958_v16 = vpop.permute.xlu1 %3957  ;;  %v4541_v21 = vmul.f32 %v8207_v33, %v4309_v23 }
 0x4a3   : > { %v4056_v14 = vsel %vm772_vm4, %v4024_v32, %v3958_v16  ;;  %v4346_v32 = vmul.f32 %v8145_v52, %v4309_v23  ;;  %v4226_v16 = vsel %vm349_vm1, %v4150_v18, 0.0 }
 0x4a4   : > { %4088 = vst.msk [vmem:[#allocation3 + $0xf8] sm:$0xff] %vm349_vm1, %v4056_v14  ;;  %v3956_v6 = vpop.permute.xlu0 %3955  ;;  %4585 = vadd.xlane.f32.xlu1 %v4584_v53  ;;  %v4151_v53 = vmul.f32 %v8196_v2, %v4309_v23 }
 0x4a5   : > { %v4055_v0 = vsel %vm772_vm4, %v4023_v8, %v3956_v6  ;;  %4403 = vadd.xlane.f32.xlu0 %v4402_v9  ;;  %v4420_v14 = vsel %vm349_vm1, %v4346_v32, 0.0  ;;  %v4608_v8 = vsel %vm349_vm1, %v4540_v36, 0.0  ;;  %v4347_v6 = vmul.f32 %v8145_v52, %v4310_v58  ;;  %v4314_v54 = vld [vmem:[#allocation3 + $0xe0] sm:$0xff] }
 0x4a6   : > { %4087 = vst.msk [vmem:[#allocation3 + $0xf0] sm:$0xff] %vm349_vm1, %v4055_v0  ;;  %v3962_v37 = vpop.permute.xlu1 %3961  ;;  %v4229_v9 = vsel %vm349_vm1, %v4151_v53, 0.0  ;;  %v4152_v0 = vmul.f32 %v8196_v2, %v4310_v58  ;;  %v4546_v32 = vmul.f32 %v8207_v33, %v4314_v54 }
 0x4a7   : > { %v4058_v25 = vsel %vm772_vm4, %v4026_v35, %v3962_v37  ;;  %v4423_v55 = vsel %vm349_vm1, %v4347_v6, 0.0  ;;  %v4611_v35 = vsel %vm349_vm1, %v4541_v21, 0.0  ;;  %v4348_v37 = vmul.f32 %v8145_v52, %v4311_v4 }
 0x4a8   : > { %4090 = vst.msk [vmem:[#allocation3 + $0x108] sm:$0xff] %vm349_vm1, %v4058_v25  ;;  %v3960_v12 = vpop.permute.xlu0 %3959  ;;  %4212 = vadd.xlane.f32.xlu1 %v4211_v63  ;;  %v4232_v7 = vsel %vm349_vm1, %v4152_v0, 0.0  ;;  %v4542_v25 = vmul.f32 %v8207_v33, %v4310_v58  ;;  %v8409_v21 = vstv %s4682_s24  ;;  %s5218_s24 = sshll.u32 %s8566_s20, 4  ;;  %s8611_s24 = int_to_ptr.vmem [resolvable:$true] %s5218_s24 }
 0x4a9   : > { %v4057_v15 = vsel %vm772_vm4, %v4025_v62, %v3960_v12  ;;  %4594 = vadd.xlane.f32.xlu0 %v4593_v19  ;;  %v4426_v63 = vsel %vm349_vm1, %v4348_v37, 0.0  ;;  %v4312_v62 = vld [vmem:[#allocation3 + $0xd0] sm:$0xff]  ;;  %s6196_s18 = scalar_lea.vmem %s8611_s24, 256  ;;  %p6203_p0 = scmp.lt.s32.totalorder %s8611_s24, %s6201_s21 }
 0x4aa   : > { %4089 = vst.msk [vmem:[#allocation3 + $0x100] sm:$0xff] %vm349_vm1, %v4057_v15  ;;  %v4614_v12 = vsel %vm349_vm1, %v4542_v25, 0.0  ;;  %v4349_v19 = vmul.f32 %v8145_v52, %v4312_v62  ;;  %v4543_v15 = vmul.f32 %v8207_v33, %v4311_v4  ;;  %v4544_v47 = vmul.f32 %v8207_v33, %v4312_v62  ;;  %p6197_p11 = scmp.ne.s32.totalorder %s8611_s24, %s6196_s18 }
 0x4ab   : > { %v4317_v25 = vld [vmem:[#allocation3 + $0xf8] sm:$0xff] }
 0x4ac   : > { %4400 = vadd.xlane.f32.xlu1 %v4399_v29  ;;  %v4313_v29 = vld [vmem:[#allocation3 + $0xd8] sm:$0xff]  ;;  %v4429_v26 = vsel %vm349_vm1, %v4349_v19, 0.0  ;;  %v4617_v43 = vsel %vm349_vm1, %v4543_v15, 0.0  ;;  %v4620_v46 = vsel %vm349_vm1, %v4544_v47, 0.0  ;;  %p6198_p12 = pnand %p6197_p11, %p6380_p5 }
 0x4ad   : > { %4209 = vadd.xlane.f32.xlu0 %v4208_v28  ;;  %v4154_v28 = vmul.f32 %v8196_v2, %v4312_v62 }
 0x4ae   : > { %p6199_p13 = pneg %p6198_p12 }
 0x4b0   : > { %4591 = vadd.xlane.f32.xlu1 %v4590_v31  ;;  %v4350_v31 = vmul.f32 %v8145_v52, %v4313_v29 }
 0x4b1   : > { %4218 = vadd.xlane.f32.xlu0 %v4217_v45  ;;  %v4238_v45 = vsel %vm349_vm1, %v4154_v28, 0.0  ;;  %v4354_v28 = vmul.f32 %v8145_v52, %v4317_v25 }
 0x4b2   : > { %v4432_v38 = vsel %vm349_vm1, %v4350_v31, 0.0 }
 0x4b4   : > { %4406 = vadd.xlane.f32.xlu1 %v4405_v51  ;;  %v4155_v51 = vmul.f32 %v8196_v2, %v4313_v29 }
 0x4b5   : > { %4409 = vadd.xlane.f32.xlu0 %v4408_v59 }
 0x4b6   : > { %v4241_v27 = vsel %vm349_vm1, %v4155_v51, 0.0 }
 0x4b8   : > { %4412 = vadd.xlane.f32.xlu1 %v4411_v3  ;;  %v4351_v3 = vmul.f32 %v8145_v52, %v4314_v54 }
 0x4b9   : > { %4215 = vadd.xlane.f32.xlu0 %v4214_v24  ;;  %v4545_v24 = vmul.f32 %v8207_v33, %v4313_v29 }
 0x4ba   : > { %v4435_v48 = vsel %vm349_vm1, %v4351_v3, 0.0 }
 0x4bb   : > { %v4623_v5 = vsel %vm349_vm1, %v4545_v24, 0.0 }
 0x4bc   : > { %4221 = vadd.xlane.f32.xlu1 %v4220_v30  ;;  %v4315_v30 = vld [vmem:[#allocation3 + $0xe8] sm:$0xff] }
 0x4bd   : > { %4415 = vadd.xlane.f32.xlu0 %v4414_v61  ;;  %v4748_v61 = vlaneseq  ;;  %v4157_v36 = vmul.f32 %v8196_v2, %v4315_v30 }
 0x4bf   : > { %v4749_v18 = vand.u32 127, %v4748_v61  ;;  %v4247_v37 = vsel %vm349_vm1, %v4157_v36, 0.0 }
 0x4c0   : > { %4603 = vadd.xlane.f32.xlu1 %v4602_v60  ;;  %v4156_v60 = vmul.f32 %v8196_v2, %v4314_v54 }
 0x4c1   : > { %4224 = vadd.xlane.f32.xlu0 %v4223_v56  ;;  %v4352_v56 = vmul.f32 %v8145_v52, %v4315_v30  ;;  %v4754_v6 = vadd.s32 4294967288, %v4749_v18 }
 0x4c4   : > { %4418 = vadd.xlane.f32.xlu1 %v4417_v39 }
 0x4c5   : > { %4606 = vadd.xlane.f32.xlu0 %v4605_v42  ;;  %v4244_v42 = vsel %vm349_vm1, %v4156_v60, 0.0  ;;  %v4319_v60 = vld [vmem:[#allocation3 + $0x108] sm:$0xff] }
 0x4c8   : > { %4227 = vadd.xlane.f32.xlu1 %v4226_v16  ;;  %v4438_v16 = vsel %vm349_vm1, %v4352_v56, 0.0 }
 0x4c9   : > { %4421 = vadd.xlane.f32.xlu0 %v4420_v14  ;;  %v4316_v14 = vld [vmem:[#allocation3 + $0xf0] sm:$0xff] }
 0x4ca   : > { %v4353_v0 = vmul.f32 %v8145_v52, %v4316_v14  ;;  %v4548_v51 = vmul.f32 %v8207_v33, %v4316_v14 }
 0x4cc   : > { %4609 = vadd.xlane.f32.xlu1 %v4608_v8  ;;  %v4751_v8 = vshrl.u32 %v4748_v61, 7  ;;  %v4441_v15 = vsel %vm349_vm1, %v4353_v0, 0.0  ;;  %v4549_v61 = vmul.f32 %v8207_v33, %v4317_v25 }
 0x4cd   : > { %4230 = vadd.xlane.f32.xlu0 %v4229_v9 }
 0x4ce   : > { %v8419_v62 = vsub.s32 %v4749_v18, %v4751_v8 }
 0x4d0   : > { %4424 = vadd.xlane.f32.xlu1 %v4423_v55  ;;  %v4626_v55 = vsel %vm349_vm1, %v4546_v32, 0.0  ;;  %v4356_v32 = vmul.f32 %v8145_v52, %v4319_v60 }
 0x4d1   : > { %4612 = vadd.xlane.f32.xlu0 %v4611_v35 }
 0x4d4   : > { %4233 = vadd.xlane.f32.xlu1 %v4232_v7  ;;  %v4547_v7 = vmul.f32 %v8207_v33, %v4315_v30 }
 0x4d5   : > { %4427 = vadd.xlane.f32.xlu0 %v4426_v63  ;;  %v8416_v63 = vsub.s32 %v4754_v6, %v4751_v8  ;;  %v4536_v8 = vmul.f32 %v8207_v33, %v8335_v17  ;;  %v4537_v17 = vmul.f32 %v8207_v33, %v8327_v20 }
 0x4d8   : > { %4615 = vadd.xlane.f32.xlu1 %v4614_v12 }
 0x4d9   : > { %4236 = vadd.xlane.f32.xlu0 %v4235_v50 }
 0x4dc   : > { %4430 = vadd.xlane.f32.xlu1 %v4429_v26  ;;  %v4629_v26 = vsel %vm349_vm1, %v4547_v7, 0.0 }
 0x4dd   : > { %4618 = vadd.xlane.f32.xlu0 %v4617_v43 }
 0x4de   : > { %v4171_v44 = vpop.xlane.xlu0 %4170 }
 0x4e0   : > { %4239 = vadd.xlane.f32.xlu1 %v4238_v45 }
 0x4e1   : > { %v4168_v59 = vpop.xlane.xlu1 %4167  ;;  %4433 = vadd.xlane.f32.xlu0 %v4432_v38 }
 0x4e2   : > { %v4362_v1 = vpop.xlane.xlu0 %4361 }
 0x4e3   : > { %v4454_v53 = vadd.f32 %v4362_v1, %v8100_v49  ;;  %v4159_v1 = vmul.f32 %v8196_v2, %v4317_v25 }
 0x4e4   : > { %4621 = vadd.xlane.f32.xlu1 %v4620_v46  ;;  %v4318_v46 = vld [vmem:[#allocation3 + $0x100] sm:$0xff] }
 0x4e5   : > { %v4359_v57 = vpop.xlane.xlu1 %4358  ;;  %4242 = vadd.xlane.f32.xlu0 %v4241_v27  ;;  %v4355_v30 = vmul.f32 %v8145_v52, %v4318_v46  ;;  %v4551_v52 = vmul.f32 %v8207_v33, %v4319_v60 }
 0x4e6   : > { %v4368_v10 = vpop.xlane.xlu0 %4367  ;;  %v4453_v35 = vadd.f32 %v4359_v57, %v8097_v40  ;;  %v4158_v40 = vmul.f32 %v8196_v2, %v4316_v14  ;;  %v4632_v57 = vsel %vm349_vm1, %v4548_v51, 0.0 }
 0x4e7   : > { %v8396_v22 = vadd.f32 %v4368_v10, %v4171_v44  ;;  %v4253_v10 = vsel %vm349_vm1, %v4159_v1, 0.0  ;;  %v4641_v7 = vsel %vm349_vm1, %v4551_v52, 0.0  ;;  %v5060_v52 = vld [vmem:[%s8709_s6 + $0x8] sm:$0xff] }
 0x4e8   : > { %4436 = vadd.xlane.f32.xlu1 %v4435_v48  ;;  %v4250_v38 = vsel %vm349_vm1, %v4158_v40, 0.0  ;;  %v4599_v40 = vsel %vm349_vm1, %v4537_v17, 0.0  ;;  %6128 = vmatprep.subr.mxu1 %v5060_v52 }
 0x4e9   : > { %v4365_v11 = vpop.xlane.xlu1 %4364  ;;  %4624 = vadd.xlane.f32.xlu0 %v4623_v5  ;;  %6129 = vmatpush3.msra.mxu1 %v5060_v52 }
 0x4ea   : > { %v8402_v23 = vadd.f32 %v4365_v11, %v4168_v59  ;;  %v4177_v39 = vpop.xlane.xlu0 %4176  ;;  %v4444_v59 = vsel %vm349_vm1, %v4354_v28, 0.0 }
 0x4ec   : > { %4245 = vadd.xlane.f32.xlu1 %v4244_v42  ;;  %v4635_v42 = vsel %vm349_vm1, %v4549_v61, 0.0 }
 0x4ed   : > { %v4174_v58 = vpop.xlane.xlu1 %4173  ;;  %4439 = vadd.xlane.f32.xlu0 %v4438_v16 }
 0x4ee   : > { %v4559_v9 = vpop.xlane.xlu0 %4558 }
 0x4ef   : > { %v4651_v4 = vadd.f32 %v4559_v9, %v4454_v53  ;;  %v4450_v9 = vsel %vm349_vm1, %v4356_v32, 0.0 }
 0x4f0   : > { %4627 = vadd.xlane.f32.xlu1 %v4626_v55 }
 0x4f1   : > { %v4556_v49 = vpop.xlane.xlu1 %4555  ;;  %4248 = vadd.xlane.f32.xlu0 %v4247_v37  ;;  %v4685_v34 = vadd.f32 %v8409_v21, %v4651_v4  ;;  %v4596_v37 = vsel %vm349_vm1, %v4536_v8, 0.0 }
 0x4f2   : > { %v4650_v12 = vadd.f32 %v4556_v49, %v4453_v35  ;;  %v4374_v19 = vpop.xlane.xlu0 %4373 }
 0x4f3   : > { %v4458_v50 = vadd.f32 %v4374_v19, %v4177_v39  ;;  %v4758_v31 = vrot.slane %v4685_v34, %v8416_v63  ;;  %v4550_v39 = vmul.f32 %v8207_v33, %v4318_v46 }
 0x4f4   : > { %v4684_v29 = vadd.f32 %v8409_v21, %v4650_v12  ;;  %4442 = vadd.xlane.f32.xlu1 %v4441_v15 }
 0x4f5   : > { %4630 = vadd.xlane.f32.xlu0 %v4629_v26  ;;  %v4371_v43 = vpop.xlane.xlu1 %4370 }
 0x4f6   : > { %v4753_v44 = vrot.slane %v4684_v29, %v8419_v62  ;;  %v4457_v45 = vadd.f32 %v4371_v43, %v4174_v58  ;;  %v4183_v47 = vpop.xlane.xlu0 %4182  ;;  %v4638_v58 = vsel %vm349_vm1, %v4550_v39, 0.0 }
 0x4f8   : > { %v4760_v54 = vsel %vm4759_vm5, %v4758_v31, %v4753_v44  ;;  %4251 = vadd.xlane.f32.xlu1 %v4250_v38 }
 0x4f9   : > { %4445 = vadd.xlane.f32.xlu0 %v4444_v59  ;;  %v4180_v3 = vpop.xlane.xlu1 %4179 }
 0x4fa   : > { %v4565_v27 = vpop.xlane.xlu0 %4564 }
 0x4fb   : > { %v4653_v24 = vadd.f32 %v4565_v27, %v8396_v22  ;;  %v4447_v22 = vsel %vm349_vm1, %v4355_v30, 0.0 }
 0x4fc   : > { %4633 = vadd.xlane.f32.xlu1 %v4632_v57 }
 0x4fd   : > { %4254 = vadd.xlane.f32.xlu0 %v4253_v10  ;;  %v4562_v48 = vpop.xlane.xlu1 %4561  ;;  %v4687_v2 = vadd.f32 %v8409_v21, %v4653_v24 }
 0x4fe   : > { %v4652_v5 = vadd.f32 %v4562_v48, %v8402_v23  ;;  %v4380_v56 = vpop.xlane.xlu0 %4379 }
 0x4ff   : > { %v4460_v11 = vadd.f32 %v4380_v56, %v4183_v47  ;;  %v4768_v36 = vrot.slane %v4687_v2, %v8416_v63  ;;  %v4922_v2 = vld [vmem:[%s8708_s5] sm:$0xff] }
 0x500   : > { %v4686_v18 = vadd.f32 %v8409_v21, %v4652_v5  ;;  %4448 = vadd.xlane.f32.xlu1 %v4447_v22  ;;  %6116 = vmatprep.mubr.msk.f32.mxu0 %vm4919_vm9, %v4922_v2 }
 0x501   : > { %4636 = vadd.xlane.f32.xlu0 %v4635_v42  ;;  %v4377_v16 = vpop.xlane.xlu1 %4376 }
 0x502   : > { %v4764_v23 = vrot.slane %v4686_v18, %v8419_v62  ;;  %v4459_v14 = vadd.f32 %v4377_v16, %v4180_v3  ;;  %v4189_v53 = vpop.xlane.xlu0 %4188 }
 0x504   : > { %v4769_v6 = vsel %vm4759_vm5, %v4768_v36, %v4764_v23  ;;  %4639 = vadd.xlane.f32.xlu1 %v4638_v58 }
 0x505   : > { %v4897_v4 = vsel %vm4896_vm6, %v4769_v6, %v4760_v54  ;;  %4451 = vadd.xlane.f32.xlu0 %v4450_v9  ;;  %v4186_v55 = vpop.xlane.xlu1 %4185 }
 0x506   : > { %v4571_v0 = vpop.xlane.xlu0 %4570 }
 0x507   : > { %v4655_v35 = vadd.f32 %v4571_v0, %v4458_v50 }
 0x508   : > { %4597 = vadd.xlane.f32.xlu1 %v4596_v37 }
 0x509   : > { %4642 = vadd.xlane.f32.xlu0 %v4641_v7  ;;  %v4568_v49 = vpop.xlane.xlu1 %4567  ;;  %v4689_v25 = vadd.f32 %v8409_v21, %v4655_v35 }
 0x50a   : > { %v4654_v34 = vadd.f32 %v4568_v49, %v4457_v45  ;;  %v4386_v12 = vpop.xlane.xlu0 %4385 }
 0x50b   : > { %v4462_v19 = vadd.f32 %v4386_v12, %v4189_v53  ;;  %v4777_v29 = vrot.slane %v4689_v25, %v8416_v63 }
 0x50c   : > { %v4688_v15 = vadd.f32 %v8409_v21, %v4654_v34 }
 0x50d   : > { %4600 = vadd.xlane.f32.xlu0 %v4599_v40  ;;  %v4383_v50 = vpop.xlane.xlu1 %4382 }
 0x50e   : > { %v4773_v26 = vrot.slane %v4688_v15, %v8419_v62  ;;  %v4461_v28 = vadd.f32 %v4383_v50, %v4186_v55  ;;  %v4195_v33 = vpop.xlane.xlu0 %4194 }
 0x510   : > { %v4778_v20 = vsel %vm4759_vm5, %v4777_v29, %v4773_v26 }
 0x511   : > { %v4899_v43 = vsel %vm4898_vm7, %v4778_v20, %v4897_v4  ;;  %v4192_v31 = vpop.xlane.xlu1 %4191  ;;  %v5059_v4 = vld [vmem:[%s8709_s6] sm:$0xff] }
 0x512   : > { %v4577_v44 = vpop.xlane.xlu0 %4576  ;;  %6130 = vmatprep.subr.mxu1 %v5059_v4 }
 0x513   : > { %v4657_v45 = vadd.f32 %v4577_v44, %v4460_v11  ;;  %6131 = vmatpush3.msra.mxu1 %v5059_v4 }
 0x515   : > { %v4574_v47 = vpop.xlane.xlu1 %4573  ;;  %v4691_v38 = vadd.f32 %v8409_v21, %v4657_v45 }
 0x516   : > { %v4656_v51 = vadd.f32 %v4574_v47, %v4459_v14  ;;  %v4392_v54 = vpop.xlane.xlu0 %4391 }
 0x517   : > { %v4464_v59 = vadd.f32 %v4392_v54, %v4195_v33  ;;  %v4786_v3 = vrot.slane %v4691_v38, %v8416_v63 }
 0x518   : > { %v4690_v1 = vadd.f32 %v8409_v21, %v4656_v51 }
 0x519   : > { %v4389_v46 = vpop.xlane.xlu1 %4388 }
 0x51a   : > { %v4782_v27 = vrot.slane %v4690_v1, %v8419_v62  ;;  %v4463_v24 = vadd.f32 %v4389_v46, %v4192_v31  ;;  %v4201_v57 = vpop.xlane.xlu0 %4200 }
 0x51c   : > { %v4787_v30 = vsel %vm4759_vm5, %v4786_v3, %v4782_v27 }
 0x51d   : > { %v4198_v10 = vpop.xlane.xlu1 %4197  ;;  %v4901_v61 = vsel %vm4900_vm8, %v4787_v30, %v4899_v43 }
 0x51e   : > { %v4583_v48 = vpop.xlane.xlu0 %4582 }
 0x51f   : > { %v4659_v60 = vadd.f32 %v4583_v48, %v4462_v19 }
 0x521   : > { %v4580_v5 = vpop.xlane.xlu1 %4579  ;;  %v4693_v56 = vadd.f32 %v8409_v21, %v4659_v60 }
 0x522   : > { %v4658_v11 = vadd.f32 %v4580_v5, %v4461_v28  ;;  %v4398_v22 = vpop.xlane.xlu0 %4397 }
 0x523   : > { %v4466_v39 = vadd.f32 %v4398_v22, %v4201_v57  ;;  %v4795_v32 = vrot.slane %v4693_v56, %v8416_v63 }
 0x524   : > { %v4692_v18 = vadd.f32 %v8409_v21, %v4658_v11 }
 0x525   : > { %v4395_v42 = vpop.xlane.xlu1 %4394 }
 0x526   : > { %v4791_v16 = vrot.slane %v4692_v18, %v8419_v62  ;;  %v4465_v36 = vadd.f32 %v4395_v42, %v4198_v10  ;;  %v4207_v23 = vpop.xlane.xlu0 %4206 }
 0x528   : > { %v4796_v14 = vsel %vm4759_vm5, %v4795_v32, %v4791_v16 }
 0x529   : > { %v4204_v53 = vpop.xlane.xlu1 %4203  ;;  %v4903_v58 = vsel %vm4902_vm10, %v4796_v14, %v4901_v61 }
 0x52a   : > { %v4589_v8 = vpop.xlane.xlu0 %4588 }
 0x52b   : > { %v4661_v6 = vadd.f32 %v4589_v8, %v4464_v59 }
 0x52d   : > { %v4586_v9 = vpop.xlane.xlu1 %4585  ;;  %v4695_v55 = vadd.f32 %v8409_v21, %v4661_v6 }
 0x52e   : > { %v4660_v0 = vadd.f32 %v4586_v9, %v4463_v24  ;;  %v4404_v35 = vpop.xlane.xlu0 %4403 }
 0x52f   : > { %v8488_v37 = vadd.f32 %v4404_v35, %v4207_v23  ;;  %v4804_v49 = vrot.slane %v4695_v55, %v8416_v63 }
 0x530   : > { %v4694_v7 = vadd.f32 %v8409_v21, %v4660_v0 }
 0x531   : > { %v4213_v17 = vpop.xlane.xlu1 %4212 }
 0x532   : > { %v4800_v25 = vrot.slane %v4694_v7, %v8419_v62  ;;  %v4595_v34 = vpop.xlane.xlu0 %4594 }
 0x533   : > { %v4663_v12 = vadd.f32 %v4595_v34, %v4466_v39 }
 0x534   : > { %v4805_v19 = vsel %vm4759_vm5, %v4804_v49, %v4800_v25 }
 0x535   : > { %v4401_v15 = vpop.xlane.xlu1 %4400  ;;  %v4905_v40 = vsel %vm4904_vm11, %v4805_v19, %v4903_v58  ;;  %v4697_v28 = vadd.f32 %v8409_v21, %v4663_v12 }
 0x536   : > { %v8495_v50 = vadd.f32 %v4401_v15, %v4204_v53  ;;  %v4210_v29 = vpop.xlane.xlu0 %4209 }
 0x537   : > { %v4813_v44 = vrot.slane %v4697_v28, %v8416_v63 }
 0x539   : > { %v4592_v26 = vpop.xlane.xlu1 %4591 }
 0x53a   : > { %v4662_v33 = vadd.f32 %v4592_v26, %v4465_v36  ;;  %v4219_v20 = vpop.xlane.xlu0 %4218 }
 0x53c   : > { %v4696_v43 = vadd.f32 %v8409_v21, %v4662_v33 }
 0x53d   : > { %v4407_v31 = vpop.xlane.xlu1 %4406 }
 0x53e   : > { %v4809_v45 = vrot.slane %v4696_v43, %v8419_v62  ;;  %v4469_v47 = vadd.f32 %v4407_v31, %v4210_v29  ;;  %v4410_v38 = vpop.xlane.xlu0 %4409 }
 0x53f   : > { %v4470_v51 = vadd.f32 %v4410_v38, %v4213_v17 }
 0x540   : > { %v4814_v54 = vsel %vm4759_vm5, %v4813_v44, %v4809_v45 }
 0x541   : > { %v4413_v59 = vpop.xlane.xlu1 %4412  ;;  %v8503_v1 = vsel %vm4906_vm12, %v4814_v54, %v4905_v40 }
 0x542   : > { %v4216_v46 = vpop.xlane.xlu0 %4215 }
 0x543   : > { %v4471_v3 = vadd.f32 %v4413_v59, %v4216_v46 }
 0x545   : > { %v4222_v27 = vpop.xlane.xlu1 %4221 }
 0x546   : > { %v4416_v24 = vpop.xlane.xlu0 %4415 }
 0x547   : > { %v4472_v57 = vadd.f32 %v4416_v24, %v4219_v20 }
 0x549   : > { %v4604_v30 = vpop.xlane.xlu1 %4603 }
 0x54a   : > { %v4225_v10 = vpop.xlane.xlu0 %4224  ;;  %v4666_v61 = vadd.f32 %v4604_v30, %v4469_v47 }
 0x54c   : > { %v4700_v2 = vadd.f32 %v8409_v21, %v4666_v61 }
 0x54d   : > { %v4419_v48 = vpop.xlane.xlu1 %4418 }
 0x54e   : > { %v4607_v60 = vpop.xlane.xlu0 %4606  ;;  %v4827_v39 = vrot.slane %v4700_v2, %v8419_v62  ;;  %v4473_v55 = vadd.f32 %v4419_v48, %v4222_v27 }
 0x54f   : > { %v4667_v5 = vadd.f32 %v4607_v60, %v4470_v51 }
 0x551   : > { %v4701_v56 = vadd.f32 %v8409_v21, %v4667_v5  ;;  %v4228_v11 = vpop.xlane.xlu1 %4227 }
 0x552   : > { %v4422_v22 = vpop.xlane.xlu0 %4421 }
 0x553   : > { %v4831_v18 = vrot.slane %v4701_v56, %v8416_v63  ;;  %v4474_v25 = vadd.f32 %v4422_v22, %v4225_v10 }
 0x555   : > { %v4832_v42 = vsel %vm4759_vm5, %v4831_v18, %v4827_v39  ;;  %v4610_v32 = vpop.xlane.xlu1 %4609 }
 0x556   : > { %v4231_v16 = vpop.xlane.xlu0 %4230  ;;  %v4668_v36 = vadd.f32 %v4610_v32, %v4471_v3 }
 0x558   : > { %v4702_v53 = vadd.f32 %v8409_v21, %v4668_v36 }
 0x559   : > { %v4425_v23 = vpop.xlane.xlu1 %4424 }
 0x55a   : > { %v4613_v14 = vpop.xlane.xlu0 %4612  ;;  %v4836_v52 = vrot.slane %v4702_v53, %v8419_v62  ;;  %v4475_v10 = vadd.f32 %v4425_v23, %v4228_v11 }
 0x55b   : > { %v4669_v58 = vadd.f32 %v4613_v14, %v4472_v57 }
 0x55d   : > { %v4703_v8 = vadd.f32 %v8409_v21, %v4669_v58  ;;  %v4234_v6 = vpop.xlane.xlu1 %4233 }
 0x55e   : > { %v4428_v9 = vpop.xlane.xlu0 %4427 }
 0x55f   : > { %v4840_v4 = vrot.slane %v4703_v8, %v8416_v63  ;;  %v4476_v57 = vadd.f32 %v4428_v9, %v4231_v16 }
 0x561   : > { %v4841_v0 = vsel %vm4759_vm5, %v4840_v4, %v4836_v52  ;;  %v4616_v35 = vpop.xlane.xlu1 %4615 }
 0x562   : > { %v4910_v7 = vsel %vm4896_vm6, %v4841_v0, %v4832_v42  ;;  %v4237_v17 = vpop.xlane.xlu0 %4236  ;;  %v4670_v49 = vadd.f32 %v4616_v35, %v4473_v55 }
 0x564   : > { %v4704_v19 = vadd.f32 %v8409_v21, %v4670_v49 }
 0x565   : > { %v4431_v34 = vpop.xlane.xlu1 %4430 }
 0x566   : > { %v4619_v12 = vpop.xlane.xlu0 %4618  ;;  %v4845_v28 = vrot.slane %v4704_v19, %v8419_v62  ;;  %v4477_v2 = vadd.f32 %v4431_v34, %v4234_v6 }
 0x567   : > { %v4671_v15 = vadd.f32 %v4619_v12, %v4474_v25 }
 0x569   : > { %v4705_v40 = vadd.f32 %v8409_v21, %v4671_v15  ;;  %v4240_v29 = vpop.xlane.xlu1 %4239 }
 0x56a   : > { %v4434_v26 = vpop.xlane.xlu0 %4433 }
 0x56b   : > { %v4849_v33 = vrot.slane %v4705_v40, %v8416_v63  ;;  %v4478_v60 = vadd.f32 %v4434_v26, %v4237_v17 }
 0x56d   : > { %v4850_v20 = vsel %vm4759_vm5, %v4849_v33, %v4845_v28  ;;  %v4622_v43 = vpop.xlane.xlu1 %4621 }
 0x56e   : > { %v8522_v31 = vsel %vm4898_vm7, %v4850_v20, %v4910_v7  ;;  %v4243_v44 = vpop.xlane.xlu0 %4242  ;;  %v4672_v5 = vadd.f32 %v4622_v43, %v4475_v10 }
 0x570   : > { %v4706_v53 = vadd.f32 %v8409_v21, %v4672_v5  ;;  %v4927_v5 = vld [vmem:[%s8708_s5 + $0x28] sm:$0xff] }
 0x571   : > { %v4437_v45 = vpop.xlane.xlu1 %4436 }
 0x572   : > { %v4625_v47 = vpop.xlane.xlu0 %4624  ;;  %v4479_v18 = vadd.f32 %v4437_v45, %v4240_v29  ;;  %v4854_v35 = vrot.slane %v4706_v53, %v8419_v62 }
 0x573   : > { %v4673_v61 = vadd.f32 %v4625_v47, %v4476_v57 }
 0x575   : > { %v4246_v38 = vpop.xlane.xlu1 %4245  ;;  %v4707_v42 = vadd.f32 %v8409_v21, %v4673_v61 }
 0x576   : > { %v4440_v51 = vpop.xlane.xlu0 %4439 }
 0x577   : > { %v4480_v56 = vadd.f32 %v4440_v51, %v4243_v44  ;;  %v4858_v6 = vrot.slane %v4707_v42, %v8416_v63 }
 0x579   : > { %v4628_v54 = vpop.xlane.xlu1 %4627  ;;  %v4859_v19 = vsel %vm4759_vm5, %v4858_v6, %v4854_v35 }
 0x57a   : > { %v4249_v59 = vpop.xlane.xlu0 %4248  ;;  %v4674_v32 = vadd.f32 %v4628_v54, %v4477_v2  ;;  %v4923_v2 = vld [vmem:[%s8708_s5 + $0x8] sm:$0xff] }
 0x57c   : > { %v4708_v9 = vadd.f32 %v8409_v21, %v4674_v32 }
 0x57d   : > { %v4443_v46 = vpop.xlane.xlu1 %4442 }
 0x57e   : > { %v4631_v3 = vpop.xlane.xlu0 %4630  ;;  %v4481_v8 = vadd.f32 %v4443_v46, %v4246_v38  ;;  %v4863_v15 = vrot.slane %v4708_v9, %v8419_v62 }
 0x57f   : > { %v4675_v22 = vadd.f32 %v4631_v3, %v4478_v60 }
 0x581   : > { %v4252_v27 = vpop.xlane.xlu1 %4251  ;;  %v4709_v11 = vadd.f32 %v8409_v21, %v4675_v22  ;;  %v4929_v22 = vld [vmem:[%s8708_s5 + $0x38] sm:$0xff] }
 0x582   : > { %v4446_v24 = vpop.xlane.xlu0 %4445 }
 0x583   : > { %v4867_v49 = vrot.slane %v4709_v11, %v8416_v63  ;;  %v4482_v25 = vadd.f32 %v4446_v24, %v4249_v59 }
 0x585   : > { %v4634_v30 = vpop.xlane.xlu1 %4633  ;;  %v4868_v43 = vsel %vm4759_vm5, %v4867_v49, %v4863_v15 }
 0x586   : > { %v4255_v48 = vpop.xlane.xlu0 %4254  ;;  %v4676_v58 = vadd.f32 %v4634_v30, %v4479_v18 }
 0x588   : > { %v4710_v7 = vadd.f32 %v8409_v21, %v4676_v58 }
 0x589   : > { %v4449_v39 = vpop.xlane.xlu1 %4448 }
 0x58a   : > { %v4637_v36 = vpop.xlane.xlu0 %4636  ;;  %v4483_v16 = vadd.f32 %v4449_v39, %v4252_v27 }
 0x58b   : > { %v4677_v14 = vadd.f32 %v4637_v36, %v4480_v56  ;;  %v4928_v56 = vld [vmem:[%s8708_s5 + $0x30] sm:$0xff] }
 0x58c   : > { %v4680_v17 = vadd.f32 %v8104_v41, %v4483_v16 }
 0x58d   : > { %v4640_v23 = vpop.xlane.xlu1 %4639  ;;  %v4711_v52 = vadd.f32 %v8409_v21, %v4677_v14 }
 0x58e   : > { %v4452_v4 = vpop.xlane.xlu0 %4451  ;;  %v4678_v55 = vadd.f32 %v4640_v23, %v4481_v8  ;;  %v4714_v20 = vadd.f32 %v8409_v21, %v4680_v17 }
 0x58f   : > { %v4484_v0 = vadd.f32 %v4452_v4, %v4255_v48  ;;  %v4876_v40 = vrot.slane %v4711_v52, %v8416_v63 }
 0x590   : > { %v4712_v26 = vadd.f32 %v8409_v21, %v4678_v55  ;;  %v4890_v3 = vrot.slane %v4714_v20, %v8419_v62 }
 0x591   : > { %v4681_v34 = vadd.f32 %v8107_v13, %v4484_v0  ;;  %v4598_v12 = vpop.xlane.xlu1 %4597  ;;  %v4872_v13 = vrot.slane %v4710_v7, %v8419_v62 }
 0x592   : > { %v4643_v29 = vpop.xlane.xlu0 %4642  ;;  %v4664_v33 = vadd.f32 %v4598_v12, %v8495_v50  ;;  %v4912_v50 = vsel %vm4900_vm8, %v4859_v19, %v8522_v31  ;;  %v4881_v51 = vrot.slane %v4712_v26, %v8419_v62 }
 0x593   : > { %v4715_v28 = vadd.f32 %v8409_v21, %v4681_v34  ;;  %v4679_v41 = vadd.f32 %v4643_v29, %v4482_v25  ;;  %v4877_v38 = vsel %vm4759_vm5, %v4876_v40, %v4872_v13  ;;  %v4913_v27 = vsel %vm4902_vm10, %v4868_v43, %v4912_v50 }
 0x594   : > { %v4698_v54 = vadd.f32 %v8409_v21, %v4664_v33  ;;  %v4914_v30 = vsel %vm4904_vm11, %v4877_v38, %v4913_v27 }
 0x595   : > { %v4713_v44 = vadd.f32 %v8409_v21, %v4679_v41  ;;  %v4894_v45 = vrot.slane %v4715_v28, %v8416_v63 }
 0x596   : > { %v4601_v47 = vpop.xlane.xlu0 %4600  ;;  %v4818_v61 = vrot.slane %v4698_v54, %v8419_v62  ;;  %v4925_v62 = vld [vmem:[%s8708_s5 + $0x18] sm:$0xff] }
 0x597   : > { %v4885_v59 = vrot.slane %v4713_v44, %v8416_v63  ;;  %v4665_v46 = vadd.f32 %v4601_v47, %v8488_v37  ;;  %v4895_v31 = vsel %vm4759_vm5, %v4894_v45, %v4890_v3 }
 0x599   : > { %v4699_v24 = vadd.f32 %v8409_v21, %v4665_v46  ;;  %v4886_v57 = vsel %vm4759_vm5, %v4885_v59, %v4881_v51 }
 0x59a   : > { %v4915_v10 = vsel %vm4906_vm12, %v4886_v57, %v4914_v30 }
 0x59b   : > { %v4822_v48 = vrot.slane %v4699_v24, %v8416_v63  ;;  %v4916_v37 = vsel %vm4908_vm13, %v4895_v31, %v4915_v10  ;;  %v4924_v63 = vld [vmem:[%s8708_s5 + $0x10] sm:$0xff] }
 0x59c   : > { %4921 = vst.msk [vmem:[%s8566_s20 + $0x8] sm:$0xff] %vm4919_vm9, %v4916_v37  ;;  %6112 = vmatprep.subr.mxu0 %v4916_v37 }
 0x59d   : > { %6113 = vmatpush3.msra.mxu0 %v4916_v37  ;;  %v4823_v21 = vsel %vm4759_vm5, %v4822_v48, %v4818_v61 }
 0x59e   : > { %v4909_v60 = vsel %vm4908_vm13, %v4823_v21, %v8503_v1  ;;  %v4926_v1 = vld [vmem:[%s8708_s5 + $0x20] sm:$0xff] }
 0x59f   : > { %4920 = vst.msk [vmem:[%s8566_s20] sm:$0xff] %vm4919_vm9, %v4909_v60  ;;  %6114 = vmatprep.subr.mxu0 %v4909_v60  ;;  %s6202_s20 = scalar_lea.vmem %s6201_s21, 512 }
 0x5a0   : > { %6115 = vmatpush3.msra.mxu0 %v4909_v60  ;;  %p6204_p1 = scmp.lt.s32.totalorder %s6202_s20, %s6196_s18 }
 0x5a1   : > { %6117 = vmatmul.mubr.msk.f32.vlgmr.msra.gmra.mxu0 %vm4919_vm9, %v4923_v2 }
 0x5a2   : > { %6119 = vmatprep.mubr.msk.f32.mxu0 %vm4919_vm9, %v4924_v63  ;;  %p6205_p2 = por %p6204_p1, %p6203_p0 }
 0x5a4   : > { %p6206_p3 = pnand %p6205_p2, %p6199_p13 }
 0x5a5   : > { %6120 = vmatmul.mubr.msk.f32.gmra.mxu0 %vm4919_vm9, %v4925_v62 }
 0x5a6   : > { %6122 = vmatprep.mubr.msk.f32.mxu0 %vm4919_vm9, %v4926_v1 }
 0x5a9   : > { %6123 = vmatmul.mubr.msk.f32.gmra.mxu0 %vm4919_vm9, %v4927_v5 }
 0x5aa   : > { %6125 = vmatprep.mubr.msk.f32.mxu0 %vm4919_vm9, %v4928_v56 }
 0x5ad   : > { %6126 = vmatmul.mubr.msk.f32.gmra.mxu0 %vm4919_vm9, %v4929_v22 }
 0x661   : > { %v6118_v39 = vpop.f32.mrf.mxu0 }
 0x663   : > { %v5020_v18 = vpop.f32.mrf.mxu0 }
 0x664   : > { %6132 = vmatprep.mubr.msk.f32.mxu1 %vm4919_vm9, %v5020_v18 }
 0x665   : > { %v6121_v42 = vpop.f32.mrf.mxu0  ;;  %6133 = vmatmul.mubr.msk.f32.vlgmr.msra.gmra.mxu1 %vm4919_vm9, %v6118_v39 }
 0x667   : > { %v5030_v32 = vpop.f32.mrf.mxu0 }
 0x668   : > { %6135 = vmatprep.mubr.msk.f32.mxu1 %vm4919_vm9, %v5030_v32 }
 0x669   : > { %v6124_v36 = vpop.f32.mrf.mxu0  ;;  %6136 = vmatmul.mubr.msk.f32.gmra.mxu1 %vm4919_vm9, %v6121_v42 }
 0x66b   : > { %v5040_v14 = vpop.f32.mrf.mxu0 }
 0x66c   : > { %6138 = vmatprep.mubr.msk.f32.mxu1 %vm4919_vm9, %v5040_v14 }
 0x66d   : > { %v6127_v53 = vpop.f32.mrf.mxu0  ;;  %6139 = vmatmul.mubr.msk.f32.gmra.mxu1 %vm4919_vm9, %v6124_v36 }
 0x66f   : > { %v5050_v58 = vpop.f32.mrf.mxu0 }
 0x670   : > { %6141 = vmatprep.mubr.msk.f32.mxu1 %vm4919_vm9, %v5050_v58 }
 0x671   : > { %6142 = vmatmul.mubr.msk.f32.gmra.mxu1 %vm4919_vm9, %v6127_v53 }
 0x672   : > { %6209 = shalt.err (!%p6206_p3)
}
 0x673   : > { %s6210_s22 = scalar_lea.hbm %s8617_s13, 256  ;;  %s6214_s28 = scalar_lea.hbm %s8710_s7, 512 }
 0x674   : > { %p6211_p4 = scmp.ne.s32.totalorder %s8617_s13, %s6210_s22  ;;  %p6215_p9 = scmp.lt.s32.totalorder %s8617_s13, %s8710_s7 }
 0x675   : > { %p6216_p10 = scmp.lt.s32.totalorder %s6214_s28, %s6210_s22 }
 0x676   : > { %p6212_p7 = pnand %p6211_p4, %p6380_p5 }
 0x677   : > { %p6217_p11 = por %p6216_p10, %p6215_p9 }
 0x678   : > { %p6213_p8 = pneg %p6212_p7 }
 0x67a   : > { %p6218_p12 = pnand %p6217_p11, %p6213_p8 }
 0x67c   : > { %6221 = shalt.err (!%p6218_p12)
}
 0x67d   : > { %s6292_s18 = smov 128   ;;  %s5333_s21 = sshll.u32 %s8542_s25, 6  ;;  %vm5190_vm14 = vcmask 523264  }
 0x67e   : > { %6144 = dma.vmem_to_hbm [thread:$0]  (%p6380_p5), %s8611_s24, 256, %s8617_s13, %s5200_s14, %s6292_s18, %s6292_s18, %s6290_s26  }
 0x67f   : > { %s310_s20 = scalar_lea.vmem [#allocation7], %s5333_s21  ;;  %s5575_s13 = sshll.u32 %s6363_s4, 10 }
 0x680   : > { %s5234_s24 = sshll.u32 %s310_s20, 4  ;;  %s8659_s23 = scalar_lea.hbm %s8711_s8, %s5575_s13  ;;  %s8653_s24 = int_to_ptr.vmem [resolvable:$true] %s5234_s24 }
 0x681   : > { %s5205_s27 = scalar_lea.sflag [#allocation8], %s8542_s25  ;;  %s6222_s4 = scalar_lea.vmem %s8653_s24, 1024 }
 0x682   : > { %p6223_p13 = scmp.ne.s32.totalorder %s8653_s24, %s6222_s4  ;;  %s6293_s28 = smov [#allocation7]  }
 0x683   : > { %s6226_s11 = sshll.u32 %s6293_s28, 4  ;;  %s6227_s11 = int_to_ptr.vmem [resolvable:$false] %s6226_s11 }
 0x684   : > { %p6224_p0 = pnand %p6223_p13, %p6380_p5  ;;  %s6228_s19 = scalar_lea.vmem %s6227_s11, 2048 }
 0x685   : > { %p6229_p2 = scmp.lt.s32.totalorder %s8653_s24, %s6227_s11  ;;  %p6230_p3 = scmp.lt.s32.totalorder %s6228_s19, %s6222_s4 }
 0x686   : > { %p6225_p1 = pneg %p6224_p0 }
 0x687   : > { %p6231_p4 = por %p6230_p3, %p6229_p2 }
 0x689   : > { %p6232_p7 = pnand %p6231_p4, %p6225_p1 }
 0x725   : > { %v6134_v16 = vpop.f32.mrf.mxu1 }
 0x726   : > { %5192 = vst.msk [vmem:[%s310_s20 + $0x8] sm:$0xff] %vm5190_vm14, %v6134_v16 }
 0x727   : > { %v5151_v8 = vpop.f32.mrf.mxu1 }
 0x728   : > { %5191 = vst.msk [vmem:[%s310_s20] sm:$0xff] %vm5190_vm14, %v5151_v8 }
 0x729   : > { %v6137_v11 = vpop.f32.mrf.mxu1 }
 0x72a   : > { %5194 = vst.msk [vmem:[%s310_s20 + $0x18] sm:$0xff] %vm5190_vm14, %v6137_v11 }
 0x72b   : > { %v5161_v23 = vpop.f32.mrf.mxu1 }
 0x72c   : > { %5193 = vst.msk [vmem:[%s310_s20 + $0x10] sm:$0xff] %vm5190_vm14, %v5161_v23 }
 0x72d   : > { %v6140_v6 = vpop.f32.mrf.mxu1 }
 0x72e   : > { %5196 = vst.msk [vmem:[%s310_s20 + $0x28] sm:$0xff] %vm5190_vm14, %v6140_v6 }
 0x72f   : > { %v5171_v9 = vpop.f32.mrf.mxu1 }
 0x730   : > { %5195 = vst.msk [vmem:[%s310_s20 + $0x20] sm:$0xff] %vm5190_vm14, %v5171_v9 }
 0x731   : > { %v6143_v52 = vpop.f32.mrf.mxu1 }
 0x732   : > { %5198 = vst.msk [vmem:[%s310_s20 + $0x38] sm:$0xff] %vm5190_vm14, %v6143_v52 }
 0x733   : > { %v5181_v4 = vpop.f32.mrf.mxu1 }
 0x734   : > { %5197 = vst.msk [vmem:[%s310_s20 + $0x30] sm:$0xff] %vm5190_vm14, %v5181_v4 }
 0x735   : > { %6235 = shalt.err (!%p6232_p7)
}
 0x736   : > { %s6236_s21 = scalar_lea.hbm %s8659_s23, 1024  ;;  %s6240_s13 = scalar_lea.hbm %s8711_s8, 2048 }
 0x737   : > { %p6237_p8 = scmp.ne.s32.totalorder %s8659_s23, %s6236_s21  ;;  %p6241_p11 = scmp.lt.s32.totalorder %s8659_s23, %s8711_s8 }
 0x738   : > { %p6242_p12 = scmp.lt.s32.totalorder %s6240_s13, %s6236_s21 }
 0x739   : > { %p6238_p9 = pnand %p6237_p8, %p6380_p5 }
 0x73a   : > { %p6243_p13 = por %p6242_p12, %p6241_p11 }
 0x73b   : > { %p6239_p10 = pneg %p6238_p9 }
 0x73d   : > { %p6244_p0 = pnand %p6243_p13, %p6239_p10 }
 0x73f   : > { %6247 = shalt.err (!%p6244_p0)
}
 0x740   : > { %6145 = dma.vmem_to_hbm [thread:$0]  (%p6380_p5), %s8653_s24, 1024, %s8659_s23, %s5205_s27, %s6292_s18, %s6292_s18, %s6290_s26  }
 0x741 PF: > { %p6155_p1 = scmp.ge.s32.totalorder %s6286_s10, 2  ;;  %s5249_s4 = sand.u32 1, %s6274_s29  }
 0x742   : > { %s5250_s28 = scalar_lea.sflag [#allocation6], %s5249_s4 }
 0x743   : > { %p6149_p2 = pnand %p6155_p1, %p6384_p6 }
 0x745   : > { %p6150_p3 = pneg %p6149_p2 }
 0x747   : > { %6265 = dma.done.wait (%p6150_p3), %s5250_s28, 256  }
 0x748   : > { %6267 = vsyncadd (%p6150_p3), %s5250_s28, 4294967040  ;;  %s5259_s11 = scalar_lea.sflag [#allocation8], %s5249_s4 }
 0x749   : > { %6269 = dma.done.wait (%p6150_p3), %s5259_s11, 1024  }
 0x74a   : > { %6271 = vsyncadd (%p6150_p3), %s5259_s11, 4294966272  ;;  %p23_p5 = scmp.ge.s32.totalorder %s6367_s12, 4   ;;  %s8714_s29 = smov %s6278_s30 }
 0x74b   : > { %s8715_s30 = smov %s6282_s9  ;;  %s8716_s9 = smov %s6378_s15 }
 0x74c   : > { %s8717_s10 = smov %s6367_s12  ;;  %25 = sbr.rel (!%p23_p5) target bundleno = 7 (0x7), region = 108 }
 0x751   :  { %5264 = vsyncpa [#allocation6], 1 }
 0x752   :  { %5266 = vsyncpa [#allocation6 + $0x1], 1 }
 0x753   :  { %5267 = vsyncpa [#allocation8], 1 }
 0x754   :  { %5269 = vsyncpa [#allocation8 + $0x1], 1 }

</bundles_post_ra>
